<compile_context>
chip_gen: v5e
topology: v5e:2x2
jax: 0.10.0
libtpu: 0.0.40
codegen_flags: <defaults>
</compile_context>

<pallas_src>
import functools

import jax
import jax.numpy as jnp
from jax import lax
from jax.experimental import pallas as pl
from jax.experimental.pallas import tpu as pltpu

EPS = 1e-5  # PyTorch nn.LayerNorm default eps


# ---------------------------------------------------------------------------
# Shared in-kernel attention + residual + LayerNorm epilogue
# ---------------------------------------------------------------------------
def _attend_and_finish(x_res, q, kv, mask, wo, bo, g, bln, o_ref, attn_ref,
                       *, n_heads, inv_scale):
    """x_res: (Tq,H) residual input. q: (Tq,H). kv: (Tk,2H) = [K | V].
    mask: (Tq,Tk) int32. Writes LN(x_res + attn_out) to o_ref; optionally
    writes per-head attention probs to attn_ref (nH,Tq,Tk)."""
    Tq, H = x_res.shape
    Dh = H // n_heads
    neg = jnp.float32(-1e10)

    # residual + output-projection bias; head contributions are accumulated as
    # ctx_h @ wo[h*Dh:(h+1)*Dh, :]  (== concat(heads) @ wo, no in-kernel concat)
    y = x_res + bo
    for h in range(n_heads):
        qh = q[:, h * Dh:(h + 1) * Dh] * inv_scale          # scale folded into Q
        kh = kv[:, h * Dh:(h + 1) * Dh]
        vh = kv[:, H + h * Dh:H + (h + 1) * Dh]
        # contract last dims of both (no explicit k.T inside the kernel)
        e = lax.dot_general(qh, kh, (((1,), (1,)), ((), ())),
                            preferred_element_type=jnp.float32)   # (Tq, Tk)
        e = jnp.where(mask == 0, neg, e)
        m = jnp.max(e, axis=-1, keepdims=True)
        p = jnp.exp(e - m)
        s = jnp.sum(p, axis=-1, keepdims=True)
        p = p * pl.reciprocal(s, approx=True)                # EUP, frees VALU
        if attn_ref is not None:
            attn_ref[h, :, :] = p
        ctx = jnp.dot(p, vh, preferred_element_type=jnp.float32)  # (Tq, Dh)
        y = y + jnp.dot(ctx, wo[h * Dh:(h + 1) * Dh, :],
                        preferred_element_type=jnp.float32)

    # LayerNorm epilogue (pure VPU work riding under the matmuls)
    mean = jnp.mean(y, axis=-1, keepdims=True)
    var = jnp.mean((y - mean) ** 2, axis=-1, keepdims=True)
    o_ref[...] = (y - mean) * lax.rsqrt(var + EPS) * g + bln


# ---------------------------------------------------------------------------
# Fused kernels
# ---------------------------------------------------------------------------
def _self_attn_block_kernel(x_ref, mask_ref, wqkv_ref, bqkv_ref, wo_ref, bo_ref,
                            g_ref, bln_ref, o_ref, *, n_heads, inv_scale):
    """Fused self-attention block: QKV ([H,3H]) + attention + O-proj + add + LN.
    Self-attention probabilities stay in VMEM (never written to HBM)."""
    x = x_ref[...]                                           # (Tq, H)
    H = x.shape[-1]
    qkv = jnp.dot(x, wqkv_ref[...],
                  preferred_element_type=jnp.float32) + bqkv_ref[...]
    _attend_and_finish(x, qkv[:, :H], qkv[:, H:], mask_ref[...], wo_ref[...],
                       bo_ref[...], g_ref[...], bln_ref[...], o_ref, None,
                       n_heads=n_heads, inv_scale=inv_scale)


def _cross_attn_block_kernel(xq_ref, xkv_ref, mask_ref, wq_ref, bq_ref,
                             wkv_ref, bkv_ref, wo_ref, bo_ref, g_ref, bln_ref,
                             o_ref, *maybe_attn, n_heads, inv_scale):
    """Fused cross-attention block: Q + KV ([H,2H]) + attention + O-proj + add
    + LN. Attention probs written only when an attn output ref is provided."""
    attn_ref = maybe_attn[0] if maybe_attn else None
    xq = xq_ref[...]                                         # (Tq, H)
    q = jnp.dot(xq, wq_ref[...],
                preferred_element_type=jnp.float32) + bq_ref[...]
    kv = jnp.dot(xkv_ref[...], wkv_ref[...],
                 preferred_element_type=jnp.float32) + bkv_ref[...]
    _attend_and_finish(xq, q, kv, mask_ref[...], wo_ref[...], bo_ref[...],
                       g_ref[...], bln_ref[...], o_ref, attn_ref,
                       n_heads=n_heads, inv_scale=inv_scale)


def _ffn_block_kernel(x_ref, w1_ref, b1_ref, w2_ref, b2_ref, g_ref, bln_ref,
                      o_ref):
    """Fused position-wise FFN block: linear+ReLU+linear+residual+LayerNorm.
    The (Tq, pf_dim) intermediate stays in VMEM."""
    x = x_ref[...]                                           # (Tq, H)
    h1 = jnp.maximum(jnp.dot(x, w1_ref[...],
                             preferred_element_type=jnp.float32) + b1_ref[...],
                     0.0)
    y = x + jnp.dot(h1, w2_ref[...],
                    preferred_element_type=jnp.float32) + b2_ref[...]
    mean = jnp.mean(y, axis=-1, keepdims=True)
    var = jnp.mean((y - mean) ** 2, axis=-1, keepdims=True)
    o_ref[...] = (y - mean) * lax.rsqrt(var + EPS) * g_ref[...] + bln_ref[...]


def _out_proj_kernel(x_ref, w_ref, b_ref, o_ref):
    o_ref[...] = jnp.dot(x_ref[...], w_ref[...],
                         preferred_element_type=jnp.float32) + b_ref[...]


# ---------------------------------------------------------------------------
# pallas_call wrappers (grid over batch, batch axis marked "parallel")
# ---------------------------------------------------------------------------
_PARALLEL = pltpu.CompilerParams(dimension_semantics=("parallel",))


def self_attn_block(p, x, mask3, n_heads):
    B, Tq, H = x.shape
    kern = functools.partial(_self_attn_block_kernel, n_heads=n_heads,
                             inv_scale=1.0 / float(H // n_heads) ** 0.5)
    return pl.pallas_call(
        kern,
        out_shape=jax.ShapeDtypeStruct((B, Tq, H), jnp.float32),
        grid=(B,),
        in_specs=[
            pl.BlockSpec((None, Tq, H), lambda b: (b, 0, 0)),
            pl.BlockSpec((None, Tq, Tq), lambda b: (b, 0, 0)),
            pl.BlockSpec((H, 3 * H), lambda b: (0, 0)),
            pl.BlockSpec((1, 3 * H), lambda b: (0, 0)),
            pl.BlockSpec((H, H), lambda b: (0, 0)),
            pl.BlockSpec((1, H), lambda b: (0, 0)),
            pl.BlockSpec((1, H), lambda b: (0, 0)),
            pl.BlockSpec((1, H), lambda b: (0, 0)),
        ],
        out_specs=pl.BlockSpec((None, Tq, H), lambda b: (b, 0, 0)),
        compiler_params=_PARALLEL,
    )(x, mask3, p["wqkv"], p["bqkv"], p["wo"], p["bo"], p["g"], p["bln"])


def cross_attn_block(p, xq, xkv, mask3, n_heads, want_attn):
    B, Tq, H = xq.shape
    Tk = xkv.shape[1]
    kern = functools.partial(_cross_attn_block_kernel, n_heads=n_heads,
                             inv_scale=1.0 / float(H // n_heads) ** 0.5)
    o_shape = jax.ShapeDtypeStruct((B, Tq, H), jnp.float32)
    o_spec = pl.BlockSpec((None, Tq, H), lambda b: (b, 0, 0))
    if want_attn:
        out_shape = (o_shape,
                     jax.ShapeDtypeStruct((B, n_heads, Tq, Tk), jnp.float32))
        out_specs = (o_spec,
                     pl.BlockSpec((None, n_heads, Tq, Tk),
                                  lambda b: (b, 0, 0, 0)))
    else:
        out_shape, out_specs = o_shape, o_spec
    return pl.pallas_call(
        kern,
        out_shape=out_shape,
        grid=(B,),
        in_specs=[
            pl.BlockSpec((None, Tq, H), lambda b: (b, 0, 0)),
            pl.BlockSpec((None, Tk, H), lambda b: (b, 0, 0)),
            pl.BlockSpec((None, Tq, Tk), lambda b: (b, 0, 0)),
            pl.BlockSpec((H, H), lambda b: (0, 0)),
            pl.BlockSpec((1, H), lambda b: (0, 0)),
            pl.BlockSpec((H, 2 * H), lambda b: (0, 0)),
            pl.BlockSpec((1, 2 * H), lambda b: (0, 0)),
            pl.BlockSpec((H, H), lambda b: (0, 0)),
            pl.BlockSpec((1, H), lambda b: (0, 0)),
            pl.BlockSpec((1, H), lambda b: (0, 0)),
            pl.BlockSpec((1, H), lambda b: (0, 0)),
        ],
        out_specs=out_specs,
        compiler_params=_PARALLEL,
    )(xq, xkv, mask3, p["wq"], p["bq"], p["wkv"], p["bkv"], p["wo"], p["bo"],
      p["g"], p["bln"])


def ffn_block(p, x):
    B, Tq, H = x.shape
    P = p["w1"].shape[1]
    return pl.pallas_call(
        _ffn_block_kernel,
        out_shape=jax.ShapeDtypeStruct((B, Tq, H), jnp.float32),
        grid=(B,),
        in_specs=[
            pl.BlockSpec((None, Tq, H), lambda b: (b, 0, 0)),
            pl.BlockSpec((H, P), lambda b: (0, 0)),
            pl.BlockSpec((1, P), lambda b: (0, 0)),
            pl.BlockSpec((P, H), lambda b: (0, 0)),
            pl.BlockSpec((1, H), lambda b: (0, 0)),
            pl.BlockSpec((1, H), lambda b: (0, 0)),
            pl.BlockSpec((1, H), lambda b: (0, 0)),
        ],
        out_specs=pl.BlockSpec((None, Tq, H), lambda b: (b, 0, 0)),
        compiler_params=_PARALLEL,
    )(x, p["w1"], p["b1"], p["w2"], p["b2"], p["g"], p["bln"])


def out_proj(x, w, b):
    B, Tq, H = x.shape
    V = w.shape[1]
    return pl.pallas_call(
        _out_proj_kernel,
        out_shape=jax.ShapeDtypeStruct((B, Tq, V), jnp.float32),
        grid=(B,),
        in_specs=[
            pl.BlockSpec((None, Tq, H), lambda b: (b, 0, 0)),
            pl.BlockSpec((H, V), lambda b: (0, 0)),
            pl.BlockSpec((1, V), lambda b: (0, 0)),
        ],
        out_specs=pl.BlockSpec((None, Tq, V), lambda b: (b, 0, 0)),
        compiler_params=_PARALLEL,
    )(x, w, b.reshape(1, V))


# ---------------------------------------------------------------------------
# Decoder forward (glue in plain JAX, hot paths fused in Pallas)
# ---------------------------------------------------------------------------
def decoder_forward(params, trg_ids, enc_src, trg_mask, src_mask, *, n_heads):
    B, T = trg_ids.shape
    H = params["tok_emb"].shape[1]
    Tk = enc_src.shape[1]

    # TODO(synk): token/position embedding gather stays in XLA (jnp indexing);
    # a Pallas scalar-prefetch row-gather only pays off at much larger shapes.
    x = params["tok_emb"][trg_ids] * jnp.sqrt(jnp.float32(H)) \
        + params["pos_emb"][:T][None, :, :]
    # dropout = identity (eval mode)

    # masks are identical for every head -> [B, Tq, Tk] int32
    trg_mask3 = jnp.broadcast_to(trg_mask.astype(jnp.int32), (B, 1, T, T))[:, 0]
    src_mask3 = jnp.broadcast_to(src_mask.astype(jnp.int32), (B, 1, T, Tk))[:, 0]

    attention = None
    n_layers = len(params["layers"])
    for li, lp in enumerate(params["layers"]):
        x = self_attn_block(lp["self"], x, trg_mask3, n_heads)
        want_attn = (li == n_layers - 1)   # only the returned attn hits HBM
        res = cross_attn_block(lp["cross"], x, enc_src, src_mask3, n_heads,
                               want_attn)
        if want_attn:
            x, attention = res
        else:
            x = res
        x = ffn_block(lp["ffn"], x)

    out = out_proj(x, params["w_out"], params["b_out"])
    return out, attention


# ---------------------------------------------------------------------------
# Parameter init (PyTorch-style layout) + fusion for the kernels
# ---------------------------------------------------------------------------
def init_params(key, *, vocab, hid_dim, n_layers, pf_dim, max_length):
    def dense(k, din, dout):
        kw, kb = jax.random.split(k)
        return (jax.random.normal(kw, (din, dout), jnp.float32) * 0.05,
                jax.random.normal(kb, (dout,), jnp.float32) * 0.05)

    def attn_p(k):
        ks = jax.random.split(k, 4)
        wq, bq = dense(ks[0], hid_dim, hid_dim)
        wk, bk = dense(ks[1], hid_dim, hid_dim)
        wv, bv = dense(ks[2], hid_dim, hid_dim)
        wo, bo = dense(ks[3], hid_dim, hid_dim)
        return dict(wq=wq, bq=bq, wk=wk, bk=bk, wv=wv, bv=bv, wo=wo, bo=bo,
                    g=jnp.ones((hid_dim,), jnp.float32),
                    b=jnp.zeros((hid_dim,), jnp.float32))

    keys = jax.random.split(key, n_layers + 3)
    layers = []
    for i in range(n_layers):
        k_self, k_cross, k_ff = jax.random.split(keys[i], 3)
        w1, b1 = dense(jax.random.fold_in(k_ff, 0), hid_dim, pf_dim)
        w2, b2 = dense(jax.random.fold_in(k_ff, 1), pf_dim, hid_dim)
        layers.append(dict(
            self=attn_p(k_self), cross=attn_p(k_cross),
            ffn=dict(w1=w1, b1=b1, w2=w2, b2=b2,
                     g=jnp.ones((hid_dim,), jnp.float32),
                     b=jnp.zeros((hid_dim,), jnp.float32))))
    tok_emb = jax.random.normal(keys[-3], (vocab, hid_dim), jnp.float32) * 0.1
    pos_emb = jax.random.normal(keys[-2], (max_length, hid_dim), jnp.float32) * 0.1
    w_out, b_out = dense(keys[-1], hid_dim, vocab)
    return dict(layers=layers, tok_emb=tok_emb, pos_emb=pos_emb,
                w_out=w_out, b_out=b_out)


def fuse_params(params):
    """Pre-fuse QKV / KV weights and reshape biases so the hot loop does no
    layout work (done once, outside the forward pass)."""
    H = params["tok_emb"].shape[1]

    def fuse_self(p):
        return dict(
            wqkv=jnp.concatenate([p["wq"], p["wk"], p["wv"]], axis=1),
            bqkv=jnp.concatenate([p["bq"], p["bk"], p["bv"]]).reshape(1, 3 * H),
            wo=p["wo"], bo=p["bo"].reshape(1, H),
            g=p["g"].reshape(1, H), bln=p["b"].reshape(1, H))

    def fuse_cross(p):
        return dict(
            wq=p["wq"], bq=p["bq"].reshape(1, H),
            wkv=jnp.concatenate([p["wk"], p["wv"]], axis=1),
            bkv=jnp.concatenate([p["bk"], p["bv"]]).reshape(1, 2 * H),
            wo=p["wo"], bo=p["bo"].reshape(1, H),
            g=p["g"].reshape(1, H), bln=p["b"].reshape(1, H))

    def fuse_ffn(p):
        P = p["w1"].shape[1]
        return dict(w1=p["w1"], b1=p["b1"].reshape(1, P),
                    w2=p["w2"], b2=p["b2"].reshape(1, H),
                    g=p["g"].reshape(1, H), bln=p["b"].reshape(1, H))

    return dict(
        layers=[dict(self=fuse_self(l["self"]), cross=fuse_cross(l["cross"]),
                     ffn=fuse_ffn(l["ffn"])) for l in params["layers"]],
        tok_emb=params["tok_emb"], pos_emb=params["pos_emb"],
        w_out=params["w_out"], b_out=params["b_out"])


# ---------------------------------------------------------------------------
# Pure-JAX reference (mirrors the PyTorch math) for correctness checking
# ---------------------------------------------------------------------------
def ref_decoder(params, trg_ids, enc_src, trg_mask, src_mask, n_heads):
    H = params["tok_emb"].shape[1]
    B, T = trg_ids.shape
    x = params["tok_emb"][trg_ids] * jnp.sqrt(jnp.float32(H)) \
        + params["pos_emb"][:T][None, :, :]

    def ln(y, g, b):
        m = y.mean(-1, keepdims=True)
        v = ((y - m) ** 2).mean(-1, keepdims=True)
        return (y - m) / jnp.sqrt(v + EPS) * g + b

    def mha(p, q, k, v, mask):
        Bq, Tq, _ = q.shape
        Tk = k.shape[1]
        Dh = H // n_heads
        Q = (q @ p["wq"] + p["bq"]).reshape(Bq, Tq, n_heads, Dh).transpose(0, 2, 1, 3)
        K = (k @ p["wk"] + p["bk"]).reshape(Bq, Tk, n_heads, Dh).transpose(0, 2, 1, 3)
        V = (v @ p["wv"] + p["bv"]).reshape(Bq, Tk, n_heads, Dh).transpose(0, 2, 1, 3)
        e = jnp.einsum("bhqd,bhkd->bhqk", Q, K) / jnp.sqrt(jnp.float32(Dh))
        e = jnp.where(mask == 0, -1e10, e)
        a = jax.nn.softmax(e, axis=-1)
        o = jnp.einsum("bhqk,bhkd->bhqd", a, V).transpose(0, 2, 1, 3).reshape(Bq, Tq, H)
        return o @ p["wo"] + p["bo"], a

    attn = None
    for lp in params["layers"]:
        s, _ = mha(lp["self"], x, x, x, trg_mask)
        x = ln(x + s, lp["self"]["g"], lp["self"]["b"])
        c, attn = mha(lp["cross"], x, enc_src, enc_src, src_mask)
        x = ln(x + c, lp["cross"]["g"], lp["cross"]["b"])
        f = jax.nn.relu(x @ lp["ffn"]["w1"] + lp["ffn"]["b1"]) @ lp["ffn"]["w2"] \
            + lp["ffn"]["b2"]
        x = ln(x + f, lp["ffn"]["g"], lp["ffn"]["b"])
    out = x @ params["w_out"] + params["b_out"]
    return out, attn


if __name__ == "__main__":
    hid_dim, n_heads, pf_dim, n_layers = 32, 4, 64, 2
    vocab, max_length = 128, 32        # lane-dense output projection (128)
    B, Tq, Tk = 2, 8, 10

    key = jax.random.PRNGKey(0)
    kp, kt, ke = jax.random.split(key, 3)
    params = init_params(kp, vocab=vocab, hid_dim=hid_dim, n_layers=n_layers,
                         pf_dim=pf_dim, max_length=max_length)
    fused = fuse_params(params)

    trg_ids = jax.random.randint(kt, (B, Tq), 0, vocab)
    enc_src = jax.random.normal(ke, (B, Tk, hid_dim), jnp.float32)

    # causal target mask [B, 1, Tq, Tq]
    trg_mask = jnp.broadcast_to(
        jnp.tril(jnp.ones((Tq, Tq), jnp.int32))[None, None], (B, 1, Tq, Tq))
    # source padding mask [B, 1, 1, Tk] (batch 1 has 3 padded keys)
    valid = jnp.array([Tk, Tk - 3])
    src_mask = (jnp.arange(Tk)[None, :] < valid[:, None]).astype(jnp.int32)[:, None, None, :]

    fwd = jax.jit(functools.partial(decoder_forward, n_heads=n_heads))
    out, attention = fwd(fused, trg_ids, enc_src, trg_mask, src_mask)
    out = jax.block_until_ready(out)
    attention = jax.block_until_ready(attention)

    ref_out, ref_attn = ref_decoder(params, trg_ids, enc_src, trg_mask,
                                    src_mask, n_heads)

    assert out.shape == (B, Tq, vocab)
    assert attention.shape == (B, n_heads, Tq, Tk)
    # tolerance covers the EUP approximate-reciprocal softmax denominator
    assert jnp.allclose(out, ref_out, rtol=5e-3, atol=5e-3)
    assert jnp.allclose(attention, ref_attn, rtol=5e-3, atol=5e-3)

    print("KERNEL_OK")
</pallas_src>

<mosaic_0001>
module attributes {stable_mosaic.version = 11 : i64} {
  func.func @_ffn_block_kernel(%arg0: i32, %arg1: memref<1x8x32xf32, #tpu.memory_space<vmem>>, %arg2: memref<32x64xf32, #tpu.memory_space<vmem>>, %arg3: memref<1x64xf32, #tpu.memory_space<vmem>>, %arg4: memref<64x32xf32, #tpu.memory_space<vmem>>, %arg5: memref<1x32xf32, #tpu.memory_space<vmem>>, %arg6: memref<1x32xf32, #tpu.memory_space<vmem>>, %arg7: memref<1x32xf32, #tpu.memory_space<vmem>>, %arg8: memref<1x8x32xf32, #tpu.memory_space<vmem>>) attributes {dimension_semantics = [#tpu.dimension_semantics<parallel>], iteration_bounds = array<i64: 2>, scalar_prefetch = 0 : i64, scratch_operands = 0 : i64, tpu.core_type = #tpu.core_type<tc>, window_params = [{transform_indices = @transform_0, window_bounds = array<i64: 1, 8, 32>}, {pipeline_mode = #tpu.pipeline_mode<synchronous>, transform_indices = @transform_1, window_bounds = array<i64: 32, 64>}, {pipeline_mode = #tpu.pipeline_mode<synchronous>, transform_indices = @transform_2, window_bounds = array<i64: 1, 64>}, {pipeline_mode = #tpu.pipeline_mode<synchronous>, transform_indices = @transform_3, window_bounds = array<i64: 64, 32>}, {pipeline_mode = #tpu.pipeline_mode<synchronous>, transform_indices = @transform_4, window_bounds = array<i64: 1, 32>}, {pipeline_mode = #tpu.pipeline_mode<synchronous>, transform_indices = @transform_5, window_bounds = array<i64: 1, 32>}, {pipeline_mode = #tpu.pipeline_mode<synchronous>, transform_indices = @transform_6, window_bounds = array<i64: 1, 32>}, {transform_indices = @transform_7, window_bounds = array<i64: 1, 8, 32>}]} {
    %c0 = arith.constant 0 : index
    %c0_0 = arith.constant 0 : index
    %c0_1 = arith.constant 0 : index
    %0 = vector.load %arg1[%c0, %c0_0, %c0_1] : memref<1x8x32xf32, #tpu.memory_space<vmem>>, vector<1x8x32xf32>
    %1 = vector.shape_cast %0 : vector<1x8x32xf32> to vector<8x32xf32>
    %c0_2 = arith.constant 0 : index
    %c0_3 = arith.constant 0 : index
    %2 = vector.load %arg2[%c0_2, %c0_3] : memref<32x64xf32, #tpu.memory_space<vmem>>, vector<32x64xf32>
    %cst = arith.constant dense<0.000000e+00> : vector<8x64xf32>
    %3 = tpu.matmul %1, %2, %cst {dimension_numbers = #tpu.dot_dimension_numbers<[1], [0], [0], [1], [0, 0, 1, 1], [], []>} : vector<8x32xf32>, vector<32x64xf32>, vector<8x64xf32> -> vector<8x64xf32>
    %c0_4 = arith.constant 0 : index
    %c0_5 = arith.constant 0 : index
    %4 = vector.load %arg3[%c0_4, %c0_5] : memref<1x64xf32, #tpu.memory_space<vmem>>, vector<1x64xf32>
    %5 = vector.broadcast %4 : vector<1x64xf32> to vector<8x64xf32>
    %6 = arith.addf %3, %5 : vector<8x64xf32>
    %cst_6 = arith.constant 0.000000e+00 : f32
    %7 = vector.broadcast %cst_6 : f32 to vector<8x64xf32>
    %8 = arith.maximumf %6, %7 : vector<8x64xf32>
    %c0_7 = arith.constant 0 : index
    %c0_8 = arith.constant 0 : index
    %9 = vector.load %arg4[%c0_7, %c0_8] : memref<64x32xf32, #tpu.memory_space<vmem>>, vector<64x32xf32>
    %cst_9 = arith.constant dense<0.000000e+00> : vector<8x32xf32>
    %10 = tpu.matmul %8, %9, %cst_9 {dimension_numbers = #tpu.dot_dimension_numbers<[1], [0], [0], [1], [0, 0, 1, 1], [], []>} : vector<8x64xf32>, vector<64x32xf32>, vector<8x32xf32> -> vector<8x32xf32>
    %11 = arith.addf %1, %10 : vector<8x32xf32>
    %c0_10 = arith.constant 0 : index
    %c0_11 = arith.constant 0 : index
    %12 = vector.load %arg5[%c0_10, %c0_11] : memref<1x32xf32, #tpu.memory_space<vmem>>, vector<1x32xf32>
    %13 = vector.broadcast %12 : vector<1x32xf32> to vector<8x32xf32>
    %14 = arith.addf %11, %13 : vector<8x32xf32>
    %cst_12 = arith.constant dense<0.000000e+00> : vector<8xf32>
    %15 = vector.multi_reduction <add>, %14, %cst_12 [1] : vector<8x32xf32> to vector<8xf32>
    %16 = vector.shape_cast %15 : vector<8xf32> to vector<8x1xf32>
    %cst_13 = arith.constant 3.200000e+01 : f32
    %17 = vector.broadcast %cst_13 : f32 to vector<8x1xf32>
    %18 = arith.divf %16, %17 : vector<8x1xf32>
    %19 = vector.broadcast %18 : vector<8x1xf32> to vector<8x32xf32>
    %20 = arith.subf %14, %19 : vector<8x32xf32>
    %21 = arith.mulf %20, %20 : vector<8x32xf32>
    %cst_14 = arith.constant dense<0.000000e+00> : vector<8xf32>
    %22 = vector.multi_reduction <add>, %21, %cst_14 [1] : vector<8x32xf32> to vector<8xf32>
    %23 = vector.shape_cast %22 : vector<8xf32> to vector<8x1xf32>
    %cst_15 = arith.constant 3.200000e+01 : f32
    %24 = vector.broadcast %cst_15 : f32 to vector<8x1xf32>
    %25 = arith.divf %23, %24 : vector<8x1xf32>
    %26 = vector.broadcast %18 : vector<8x1xf32> to vector<8x32xf32>
    %27 = arith.subf %14, %26 : vector<8x32xf32>
    %cst_16 = arith.constant 9.99999974E-6 : f32
    %28 = vector.broadcast %cst_16 : f32 to vector<8x1xf32>
    %29 = arith.addf %25, %28 : vector<8x1xf32>
    %30 = math.rsqrt %29 : vector<8x1xf32>
    %31 = vector.broadcast %30 : vector<8x1xf32> to vector<8x32xf32>
    %32 = arith.mulf %27, %31 : vector<8x32xf32>
    %c0_17 = arith.constant 0 : index
    %c0_18 = arith.constant 0 : index
    %33 = vector.load %arg6[%c0_17, %c0_18] : memref<1x32xf32, #tpu.memory_space<vmem>>, vector<1x32xf32>
    %34 = vector.broadcast %33 : vector<1x32xf32> to vector<8x32xf32>
    %35 = arith.mulf %32, %34 : vector<8x32xf32>
    %c0_19 = arith.constant 0 : index
    %c0_20 = arith.constant 0 : index
    %36 = vector.load %arg7[%c0_19, %c0_20] : memref<1x32xf32, #tpu.memory_space<vmem>>, vector<1x32xf32>
    %37 = vector.broadcast %36 : vector<1x32xf32> to vector<8x32xf32>
    %38 = arith.addf %35, %37 : vector<8x32xf32>
    %c0_21 = arith.constant 0 : index
    %c0_22 = arith.constant 0 : index
    %c0_23 = arith.constant 0 : index
    %39 = vector.load %arg8[%c0_21, %c0_22, %c0_23] : memref<1x8x32xf32, #tpu.memory_space<vmem>>, vector<1x8x32xf32>
    %40 = vector.shape_cast %39 : vector<1x8x32xf32> to vector<8x32xf32>
    %41 = vector.shape_cast %38 : vector<8x32xf32> to vector<1x8x32xf32>
    tpu.vector_store %arg8[%c0_21, %c0_22, %c0_23], %41 {strides = array<i32>} : memref<1x8x32xf32, #tpu.memory_space<vmem>>, vector<1x8x32xf32>,
    return
  }
  func.func @transform_0(%arg0: i32) -> (i32, i32, i32) {
    %c0_i32 = arith.constant 0 : i32
    %c0_i32_0 = arith.constant 0 : i32
    %c0_i32_1 = arith.constant 0 : i32
    return %arg0, %c0_i32, %c0_i32_0 : i32, i32, i32
  }
  func.func @transform_1(%arg0: i32) -> (i32, i32) {
    %c0_i32 = arith.constant 0 : i32
    %c0_i32_0 = arith.constant 0 : i32
    %c0_i32_1 = arith.constant 0 : i32
    return %c0_i32, %c0_i32_0 : i32, i32
  }
  func.func @transform_2(%arg0: i32) -> (i32, i32) {
    %c0_i32 = arith.constant 0 : i32
    %c0_i32_0 = arith.constant 0 : i32
    %c0_i32_1 = arith.constant 0 : i32
    return %c0_i32, %c0_i32_0 : i32, i32
  }
  func.func @transform_3(%arg0: i32) -> (i32, i32) {
    %c0_i32 = arith.constant 0 : i32
    %c0_i32_0 = arith.constant 0 : i32
    %c0_i32_1 = arith.constant 0 : i32
    return %c0_i32, %c0_i32_0 : i32, i32
  }
  func.func @transform_4(%arg0: i32) -> (i32, i32) {
    %c0_i32 = arith.constant 0 : i32
    %c0_i32_0 = arith.constant 0 : i32
    %c0_i32_1 = arith.constant 0 : i32
    return %c0_i32, %c0_i32_0 : i32, i32
  }
  func.func @transform_5(%arg0: i32) -> (i32, i32) {
    %c0_i32 = arith.constant 0 : i32
    %c0_i32_0 = arith.constant 0 : i32
    %c0_i32_1 = arith.constant 0 : i32
    return %c0_i32, %c0_i32_0 : i32, i32
  }
  func.func @transform_6(%arg0: i32) -> (i32, i32) {
    %c0_i32 = arith.constant 0 : i32
    %c0_i32_0 = arith.constant 0 : i32
    %c0_i32_1 = arith.constant 0 : i32
    return %c0_i32, %c0_i32_0 : i32, i32
  }
  func.func @transform_7(%arg0: i32) -> (i32, i32, i32) {
    %c0_i32 = arith.constant 0 : i32
    %c0_i32_0 = arith.constant 0 : i32
    %c0_i32_1 = arith.constant 0 : i32
    return %arg0, %c0_i32, %c0_i32_0 : i32, i32, i32
  }
}

module attributes {stable_mosaic.version = 11 : i64} {
  func.func @_self_attn_block_kernel(%arg0: i32, %arg1: memref<1x8x32xf32, #tpu.memory_space<vmem>>, %arg2: memref<1x8x8xi32, #tpu.memory_space<vmem>>, %arg3: memref<32x96xf32, #tpu.memory_space<vmem>>, %arg4: memref<1x96xf32, #tpu.memory_space<vmem>>, %arg5: memref<32x32xf32, #tpu.memory_space<vmem>>, %arg6: memref<1x32xf32, #tpu.memory_space<vmem>>, %arg7: memref<1x32xf32, #tpu.memory_space<vmem>>, %arg8: memref<1x32xf32, #tpu.memory_space<vmem>>, %arg9: memref<1x8x32xf32, #tpu.memory_space<vmem>>) attributes {dimension_semantics = [#tpu.dimension_semantics<parallel>], iteration_bounds = array<i64: 2>, scalar_prefetch = 0 : i64, scratch_operands = 0 : i64, tpu.core_type = #tpu.core_type<tc>, window_params = [{transform_indices = @transform_0, window_bounds = array<i64: 1, 8, 32>}, {transform_indices = @transform_1, window_bounds = array<i64: 1, 8, 8>}, {pipeline_mode = #tpu.pipeline_mode<synchronous>, transform_indices = @transform_2, window_bounds = array<i64: 32, 96>}, {pipeline_mode = #tpu.pipeline_mode<synchronous>, transform_indices = @transform_3, window_bounds = array<i64: 1, 96>}, {pipeline_mode = #tpu.pipeline_mode<synchronous>, transform_indices = @transform_4, window_bounds = array<i64: 32, 32>}, {pipeline_mode = #tpu.pipeline_mode<synchronous>, transform_indices = @transform_5, window_bounds = array<i64: 1, 32>}, {pipeline_mode = #tpu.pipeline_mode<synchronous>, transform_indices = @transform_6, window_bounds = array<i64: 1, 32>}, {pipeline_mode = #tpu.pipeline_mode<synchronous>, transform_indices = @transform_7, window_bounds = array<i64: 1, 32>}, {transform_indices = @transform_8, window_bounds = array<i64: 1, 8, 32>}]} {
    %c0 = arith.constant 0 : index
    %c0_0 = arith.constant 0 : index
    %c0_1 = arith.constant 0 : index
    %0 = vector.load %arg1[%c0, %c0_0, %c0_1] : memref<1x8x32xf32, #tpu.memory_space<vmem>>, vector<1x8x32xf32>
    %1 = vector.shape_cast %0 : vector<1x8x32xf32> to vector<8x32xf32>
    %c0_2 = arith.constant 0 : index
    %c0_3 = arith.constant 0 : index
    %2 = vector.load %arg3[%c0_2, %c0_3] : memref<32x96xf32, #tpu.memory_space<vmem>>, vector<32x96xf32>
    %cst = arith.constant dense<0.000000e+00> : vector<8x96xf32>
    %3 = tpu.matmul %1, %2, %cst {dimension_numbers = #tpu.dot_dimension_numbers<[1], [0], [0], [1], [0, 0, 1, 1], [], []>} : vector<8x32xf32>, vector<32x96xf32>, vector<8x96xf32> -> vector<8x96xf32>
    %c0_4 = arith.constant 0 : index
    %c0_5 = arith.constant 0 : index
    %4 = vector.load %arg4[%c0_4, %c0_5] : memref<1x96xf32, #tpu.memory_space<vmem>>, vector<1x96xf32>
    %5 = vector.broadcast %4 : vector<1x96xf32> to vector<8x96xf32>
    %6 = arith.addf %3, %5 : vector<8x96xf32>
    %7 = vector.extract_strided_slice %6 {offsets = [0, 0], sizes = [8, 32], strides = [1, 1]} : vector<8x96xf32> to vector<8x32xf32>
    %8 = vector.extract_strided_slice %6 {offsets = [0, 32], sizes = [8, 64], strides = [1, 1]} : vector<8x96xf32> to vector<8x64xf32>
    %c0_6 = arith.constant 0 : index
    %c0_7 = arith.constant 0 : index
    %c0_8 = arith.constant 0 : index
    %9 = vector.load %arg2[%c0_6, %c0_7, %c0_8] : memref<1x8x8xi32, #tpu.memory_space<vmem>>, vector<1x8x8xi32>
    %10 = vector.shape_cast %9 : vector<1x8x8xi32> to vector<8x8xi32>
    %c0_9 = arith.constant 0 : index
    %c0_10 = arith.constant 0 : index
    %11 = vector.load %arg5[%c0_9, %c0_10] : memref<32x32xf32, #tpu.memory_space<vmem>>, vector<32x32xf32>
    %c0_11 = arith.constant 0 : index
    %c0_12 = arith.constant 0 : index
    %12 = vector.load %arg6[%c0_11, %c0_12] : memref<1x32xf32, #tpu.memory_space<vmem>>, vector<1x32xf32>
    %c0_13 = arith.constant 0 : index
    %c0_14 = arith.constant 0 : index
    %13 = vector.load %arg7[%c0_13, %c0_14] : memref<1x32xf32, #tpu.memory_space<vmem>>, vector<1x32xf32>
    %c0_15 = arith.constant 0 : index
    %c0_16 = arith.constant 0 : index
    %14 = vector.load %arg8[%c0_15, %c0_16] : memref<1x32xf32, #tpu.memory_space<vmem>>, vector<1x32xf32>
    %15 = vector.broadcast %12 : vector<1x32xf32> to vector<8x32xf32>
    %16 = arith.addf %1, %15 : vector<8x32xf32>
    %17 = vector.extract_strided_slice %7 {offsets = [0, 0], sizes = [8, 8], strides = [1, 1]} : vector<8x32xf32> to vector<8x8xf32>
    %cst_17 = arith.constant 0.353553385 : f32
    %18 = vector.broadcast %cst_17 : f32 to vector<8x8xf32>
    %19 = arith.mulf %17, %18 : vector<8x8xf32>
    %20 = vector.extract_strided_slice %8 {offsets = [0, 0], sizes = [8, 8], strides = [1, 1]} : vector<8x64xf32> to vector<8x8xf32>
    %21 = vector.extract_strided_slice %8 {offsets = [0, 32], sizes = [8, 8], strides = [1, 1]} : vector<8x64xf32> to vector<8x8xf32>
    %cst_18 = arith.constant dense<0.000000e+00> : vector<8x8xf32>
    %22 = tpu.matmul %19, %20, %cst_18 {dimension_numbers = #tpu.dot_dimension_numbers<[1], [1], [0], [0], [0, 0, 1, 0], [], []>} : vector<8x8xf32>, vector<8x8xf32>, vector<8x8xf32> -> vector<8x8xf32>
    %c0_i32 = arith.constant 0 : i32
    %23 = vector.broadcast %c0_i32 : i32 to vector<8x8xi32>
    %24 = arith.cmpi eq, %10, %23 : vector<8x8xi32>
    %cst_19 = arith.constant -1.000000e+10 : f32
    %25 = vector.broadcast %cst_19 : f32 to vector<8x8xf32>
    %26 = arith.select %24, %25, %22 : vector<8x8xi1>, vector<8x8xf32>
    %cst_20 = arith.constant dense<0xFF800000> : vector<8xf32>
    %27 = vector.multi_reduction <maximumf>, %26, %cst_20 [1] : vector<8x8xf32> to vector<8xf32>
    %28 = vector.shape_cast %27 : vector<8xf32> to vector<8x1xf32>
    %29 = vector.broadcast %28 : vector<8x1xf32> to vector<8x8xf32>
    %30 = arith.subf %26, %29 : vector<8x8xf32>
    %31 = math.exp %30 : vector<8x8xf32>
    %cst_21 = arith.constant dense<0.000000e+00> : vector<8xf32>
    %32 = vector.multi_reduction <add>, %31, %cst_21 [1] : vector<8x8xf32> to vector<8xf32>
    %33 = vector.shape_cast %32 : vector<8xf32> to vector<8x1xf32>
    %34 = tpu.reciprocal %33 {approx = true} : vector<8x1xf32> -> vector<8x1xf32>
    %35 = vector.broadcast %34 : vector<8x1xf32> to vector<8x8xf32>
    %36 = arith.mulf %31, %35 : vector<8x8xf32>
    %cst_22 = arith.constant dense<0.000000e+00> : vector<8x8xf32>
    %37 = tpu.matmul %36, %21, %cst_22 {dimension_numbers = #tpu.dot_dimension_numbers<[1], [0], [0], [1], [0, 0, 1, 1], [], []>} : vector<8x8xf32>, vector<8x8xf32>, vector<8x8xf32> -> vector<8x8xf32>
    %38 = vector.extract_strided_slice %11 {offsets = [0, 0], sizes = [8, 32], strides = [1, 1]} : vector<32x32xf32> to vector<8x32xf32>
    %cst_23 = arith.constant dense<0.000000e+00> : vector<8x32xf32>
    %39 = tpu.matmul %37, %38, %cst_23 {dimension_numbers = #tpu.dot_dimension_numbers<[1], [0], [0], [1], [0, 0, 1, 1], [], []>} : vector<8x8xf32>, vector<8x32xf32>, vector<8x32xf32> -> vector<8x32xf32>
    %40 = arith.addf %16, %39 : vector<8x32xf32>
    %41 = vector.extract_strided_slice %7 {offsets = [0, 8], sizes = [8, 8], strides = [1, 1]} : vector<8x32xf32> to vector<8x8xf32>
    %cst_24 = arith.constant 0.353553385 : f32
    %42 = vector.broadcast %cst_24 : f32 to vector<8x8xf32>
    %43 = arith.mulf %41, %42 : vector<8x8xf32>
    %44 = vector.extract_strided_slice %8 {offsets = [0, 8], sizes = [8, 8], strides = [1, 1]} : vector<8x64xf32> to vector<8x8xf32>
    %45 = vector.extract_strided_slice %8 {offsets = [0, 40], sizes = [8, 8], strides = [1, 1]} : vector<8x64xf32> to vector<8x8xf32>
    %cst_25 = arith.constant dense<0.000000e+00> : vector<8x8xf32>
    %46 = tpu.matmul %43, %44, %cst_25 {dimension_numbers = #tpu.dot_dimension_numbers<[1], [1], [0], [0], [0, 0, 1, 0], [], []>} : vector<8x8xf32>, vector<8x8xf32>, vector<8x8xf32> -> vector<8x8xf32>
    %c0_i32_26 = arith.constant 0 : i32
    %47 = vector.broadcast %c0_i32_26 : i32 to vector<8x8xi32>
    %48 = arith.cmpi eq, %10, %47 : vector<8x8xi32>
    %cst_27 = arith.constant -1.000000e+10 : f32
    %49 = vector.broadcast %cst_27 : f32 to vector<8x8xf32>
    %50 = arith.select %48, %49, %46 : vector<8x8xi1>, vector<8x8xf32>
    %cst_28 = arith.constant dense<0xFF800000> : vector<8xf32>
    %51 = vector.multi_reduction <maximumf>, %50, %cst_28 [1] : vector<8x8xf32> to vector<8xf32>
    %52 = vector.shape_cast %51 : vector<8xf32> to vector<8x1xf32>
    %53 = vector.broadcast %52 : vector<8x1xf32> to vector<8x8xf32>
    %54 = arith.subf %50, %53 : vector<8x8xf32>
    %55 = math.exp %54 : vector<8x8xf32>
    %cst_29 = arith.constant dense<0.000000e+00> : vector<8xf32>
    %56 = vector.multi_reduction <add>, %55, %cst_29 [1] : vector<8x8xf32> to vector<8xf32>
    %57 = vector.shape_cast %56 : vector<8xf32> to vector<8x1xf32>
    %58 = tpu.reciprocal %57 {approx = true} : vector<8x1xf32> -> vector<8x1xf32>
    %59 = vector.broadcast %58 : vector<8x1xf32> to vector<8x8xf32>
    %60 = arith.mulf %55, %59 : vector<8x8xf32>
    %cst_30 = arith.constant dense<0.000000e+00> : vector<8x8xf32>
    %61 = tpu.matmul %60, %45, %cst_30 {dimension_numbers = #tpu.dot_dimension_numbers<[1], [0], [0], [1], [0, 0, 1, 1], [], []>} : vector<8x8xf32>, vector<8x8xf32>, vector<8x8xf32> -> vector<8x8xf32>
    %62 = vector.extract_strided_slice %11 {offsets = [8, 0], sizes = [8, 32], strides = [1, 1]} : vector<32x32xf32> to vector<8x32xf32>
    %cst_31 = arith.constant dense<0.000000e+00> : vector<8x32xf32>
    %63 = tpu.matmul %61, %62, %cst_31 {dimension_numbers = #tpu.dot_dimension_numbers<[1], [0], [0], [1], [0, 0, 1, 1], [], []>} : vector<8x8xf32>, vector<8x32xf32>, vector<8x32xf32> -> vector<8x32xf32>
    %64 = arith.addf %40, %63 : vector<8x32xf32>
    %65 = vector.extract_strided_slice %7 {offsets = [0, 16], sizes = [8, 8], strides = [1, 1]} : vector<8x32xf32> to vector<8x8xf32>
    %cst_32 = arith.constant 0.353553385 : f32
    %66 = vector.broadcast %cst_32 : f32 to vector<8x8xf32>
    %67 = arith.mulf %65, %66 : vector<8x8xf32>
    %68 = vector.extract_strided_slice %8 {offsets = [0, 16], sizes = [8, 8], strides = [1, 1]} : vector<8x64xf32> to vector<8x8xf32>
    %69 = vector.extract_strided_slice %8 {offsets = [0, 48], sizes = [8, 8], strides = [1, 1]} : vector<8x64xf32> to vector<8x8xf32>
    %cst_33 = arith.constant dense<0.000000e+00> : vector<8x8xf32>
    %70 = tpu.matmul %67, %68, %cst_33 {dimension_numbers = #tpu.dot_dimension_numbers<[1], [1], [0], [0], [0, 0, 1, 0], [], []>} : vector<8x8xf32>, vector<8x8xf32>, vector<8x8xf32> -> vector<8x8xf32>
    %c0_i32_34 = arith.constant 0 : i32
    %71 = vector.broadcast %c0_i32_34 : i32 to vector<8x8xi32>
    %72 = arith.cmpi eq, %10, %71 : vector<8x8xi32>
    %cst_35 = arith.constant -1.000000e+10 : f32
    %73 = vector.broadcast %cst_35 : f32 to vector<8x8xf32>
    %74 = arith.select %72, %73, %70 : vector<8x8xi1>, vector<8x8xf32>
    %cst_36 = arith.constant dense<0xFF800000> : vector<8xf32>
    %75 = vector.multi_reduction <maximumf>, %74, %cst_36 [1] : vector<8x8xf32> to vector<8xf32>
    %76 = vector.shape_cast %75 : vector<8xf32> to vector<8x1xf32>
    %77 = vector.broadcast %76 : vector<8x1xf32> to vector<8x8xf32>
    %78 = arith.subf %74, %77 : vector<8x8xf32>
    %79 = math.exp %78 : vector<8x8xf32>
    %cst_37 = arith.constant dense<0.000000e+00> : vector<8xf32>
    %80 = vector.multi_reduction <add>, %79, %cst_37 [1] : vector<8x8xf32> to vector<8xf32>
    %81 = vector.shape_cast %80 : vector<8xf32> to vector<8x1xf32>
    %82 = tpu.reciprocal %81 {approx = true} : vector<8x1xf32> -> vector<8x1xf32>
    %83 = vector.broadcast %82 : vector<8x1xf32> to vector<8x8xf32>
    %84 = arith.mulf %79, %83 : vector<8x8xf32>
    %cst_38 = arith.constant dense<0.000000e+00> : vector<8x8xf32>
    %85 = tpu.matmul %84, %69, %cst_38 {dimension_numbers = #tpu.dot_dimension_numbers<[1], [0], [0], [1], [0, 0, 1, 1], [], []>} : vector<8x8xf32>, vector<8x8xf32>, vector<8x8xf32> -> vector<8x8xf32>
    %86 = vector.extract_strided_slice %11 {offsets = [16, 0], sizes = [8, 32], strides = [1, 1]} : vector<32x32xf32> to vector<8x32xf32>
    %cst_39 = arith.constant dense<0.000000e+00> : vector<8x32xf32>
    %87 = tpu.matmul %85, %86, %cst_39 {dimension_numbers = #tpu.dot_dimension_numbers<[1], [0], [0], [1], [0, 0, 1, 1], [], []>} : vector<8x8xf32>, vector<8x32xf32>, vector<8x32xf32> -> vector<8x32xf32>
    %88 = arith.addf %64, %87 : vector<8x32xf32>
    %89 = vector.extract_strided_slice %7 {offsets = [0, 24], sizes = [8, 8], strides = [1, 1]} : vector<8x32xf32> to vector<8x8xf32>
    %cst_40 = arith.constant 0.353553385 : f32
    %90 = vector.broadcast %cst_40 : f32 to vector<8x8xf32>
    %91 = arith.mulf %89, %90 : vector<8x8xf32>
    %92 = vector.extract_strided_slice %8 {offsets = [0, 24], sizes = [8, 8], strides = [1, 1]} : vector<8x64xf32> to vector<8x8xf32>
    %93 = vector.extract_strided_slice %8 {offsets = [0, 56], sizes = [8, 8], strides = [1, 1]} : vector<8x64xf32> to vector<8x8xf32>
    %cst_41 = arith.constant dense<0.000000e+00> : vector<8x8xf32>
    %94 = tpu.matmul %91, %92, %cst_41 {dimension_numbers = #tpu.dot_dimension_numbers<[1], [1], [0], [0], [0, 0, 1, 0], [], []>} : vector<8x8xf32>, vector<8x8xf32>, vector<8x8xf32> -> vector<8x8xf32>
    %c0_i32_42 = arith.constant 0 : i32
    %95 = vector.broadcast %c0_i32_42 : i32 to vector<8x8xi32>
    %96 = arith.cmpi eq, %10, %95 : vector<8x8xi32>
    %cst_43 = arith.constant -1.000000e+10 : f32
    %97 = vector.broadcast %cst_43 : f32 to vector<8x8xf32>
    %98 = arith.select %96, %97, %94 : vector<8x8xi1>, vector<8x8xf32>
    %cst_44 = arith.constant dense<0xFF800000> : vector<8xf32>
    %99 = vector.multi_reduction <maximumf>, %98, %cst_44 [1] : vector<8x8xf32> to vector<8xf32>
    %100 = vector.shape_cast %99 : vector<8xf32> to vector<8x1xf32>
    %101 = vector.broadcast %100 : vector<8x1xf32> to vector<8x8xf32>
    %102 = arith.subf %98, %101 : vector<8x8xf32>
    %103 = math.exp %102 : vector<8x8xf32>
    %cst_45 = arith.constant dense<0.000000e+00> : vector<8xf32>
    %104 = vector.multi_reduction <add>, %103, %cst_45 [1] : vector<8x8xf32> to vector<8xf32>
    %105 = vector.shape_cast %104 : vector<8xf32> to vector<8x1xf32>
    %106 = tpu.reciprocal %105 {approx = true} : vector<8x1xf32> -> vector<8x1xf32>
    %107 = vector.broadcast %106 : vector<8x1xf32> to vector<8x8xf32>
    %108 = arith.mulf %103, %107 : vector<8x8xf32>
    %cst_46 = arith.constant dense<0.000000e+00> : vector<8x8xf32>
    %109 = tpu.matmul %108, %93, %cst_46 {dimension_numbers = #tpu.dot_dimension_numbers<[1], [0], [0], [1], [0, 0, 1, 1], [], []>} : vector<8x8xf32>, vector<8x8xf32>, vector<8x8xf32> -> vector<8x8xf32>
    %110 = vector.extract_strided_slice %11 {offsets = [24, 0], sizes = [8, 32], strides = [1, 1]} : vector<32x32xf32> to vector<8x32xf32>
    %cst_47 = arith.constant dense<0.000000e+00> : vector<8x32xf32>
    %111 = tpu.matmul %109, %110, %cst_47 {dimension_numbers = #tpu.dot_dimension_numbers<[1], [0], [0], [1], [0, 0, 1, 1], [], []>} : vector<8x8xf32>, vector<8x32xf32>, vector<8x32xf32> -> vector<8x32xf32>
    %112 = arith.addf %88, %111 : vector<8x32xf32>
    %cst_48 = arith.constant dense<0.000000e+00> : vector<8xf32>
    %113 = vector.multi_reduction <add>, %112, %cst_48 [1] : vector<8x32xf32> to vector<8xf32>
    %114 = vector.shape_cast %113 : vector<8xf32> to vector<8x1xf32>
    %cst_49 = arith.constant 3.200000e+01 : f32
    %115 = vector.broadcast %cst_49 : f32 to vector<8x1xf32>
    %116 = arith.divf %114, %115 : vector<8x1xf32>
    %117 = vector.broadcast %116 : vector<8x1xf32> to vector<8x32xf32>
    %118 = arith.subf %112, %117 : vector<8x32xf32>
    %119 = arith.mulf %118, %118 : vector<8x32xf32>
    %cst_50 = arith.constant dense<0.000000e+00> : vector<8xf32>
    %120 = vector.multi_reduction <add>, %119, %cst_50 [1] : vector<8x32xf32> to vector<8xf32>
    %121 = vector.shape_cast %120 : vector<8xf32> to vector<8x1xf32>
    %cst_51 = arith.constant 3.200000e+01 : f32
    %122 = vector.broadcast %cst_51 : f32 to vector<8x1xf32>
    %123 = arith.divf %121, %122 : vector<8x1xf32>
    %124 = vector.broadcast %116 : vector<8x1xf32> to vector<8x32xf32>
    %125 = arith.subf %112, %124 : vector<8x32xf32>
    %cst_52 = arith.constant 9.99999974E-6 : f32
    %126 = vector.broadcast %cst_52 : f32 to vector<8x1xf32>
    %127 = arith.addf %123, %126 : vector<8x1xf32>
    %128 = math.rsqrt %127 : vector<8x1xf32>
    %129 = vector.broadcast %128 : vector<8x1xf32> to vector<8x32xf32>
    %130 = arith.mulf %125, %129 : vector<8x32xf32>
    %131 = vector.broadcast %13 : vector<1x32xf32> to vector<8x32xf32>
    %132 = arith.mulf %130, %131 : vector<8x32xf32>
    %133 = vector.broadcast %14 : vector<1x32xf32> to vector<8x32xf32>
    %134 = arith.addf %132, %133 : vector<8x32xf32>
    %c0_53 = arith.constant 0 : index
    %c0_54 = arith.constant 0 : index
    %c0_55 = arith.constant 0 : index
    %135 = vector.load %arg9[%c0_53, %c0_54, %c0_55] : memref<1x8x32xf32, #tpu.memory_space<vmem>>, vector<1x8x32xf32>
    %136 = vector.shape_cast %135 : vector<1x8x32xf32> to vector<8x32xf32>
    %137 = vector.shape_cast %134 : vector<8x32xf32> to vector<1x8x32xf32>
    tpu.vector_store %arg9[%c0_53, %c0_54, %c0_55], %137 {strides = array<i32>} : memref<1x8x32xf32, #tpu.memory_space<vmem>>, vector<1x8x32xf32>,
    return
  }
  func.func @transform_0(%arg0: i32) -> (i32, i32, i32) {
    %c0_i32 = arith.constant 0 : i32
    %c0_i32_0 = arith.constant 0 : i32
    %c0_i32_1 = arith.constant 0 : i32
    return %arg0, %c0_i32, %c0_i32_0 : i32, i32, i32
  }
  func.func @transform_1(%arg0: i32) -> (i32, i32, i32) {
    %c0_i32 = arith.constant 0 : i32
    %c0_i32_0 = arith.constant 0 : i32
    %c0_i32_1 = arith.constant 0 : i32
    return %arg0, %c0_i32, %c0_i32_0 : i32, i32, i32
  }
  func.func @transform_2(%arg0: i32) -> (i32, i32) {
    %c0_i32 = arith.constant 0 : i32
    %c0_i32_0 = arith.constant 0 : i32
    %c0_i32_1 = arith.constant 0 : i32
    return %c0_i32, %c0_i32_0 : i32, i32
  }
  func.func @transform_3(%arg0: i32) -> (i32, i32) {
    %c0_i32 = arith.constant 0 : i32
    %c0_i32_0 = arith.constant 0 : i32
    %c0_i32_1 = arith.constant 0 : i32
    return %c0_i32, %c0_i32_0 : i32, i32
  }
  func.func @transform_4(%arg0: i32) -> (i32, i32) {
    %c0_i32 = arith.constant 0 : i32
    %c0_i32_0 = arith.constant 0 : i32
    %c0_i32_1 = arith.constant 0 : i32
    return %c0_i32, %c0_i32_0 : i32, i32
  }
  func.func @transform_5(%arg0: i32) -> (i32, i32) {
    %c0_i32 = arith.constant 0 : i32
    %c0_i32_0 = arith.constant 0 : i32
    %c0_i32_1 = arith.constant 0 : i32
    return %c0_i32, %c0_i32_0 : i32, i32
  }
  func.func @transform_6(%arg0: i32) -> (i32, i32) {
    %c0_i32 = arith.constant 0 : i32
    %c0_i32_0 = arith.constant 0 : i32
    %c0_i32_1 = arith.constant 0 : i32
    return %c0_i32, %c0_i32_0 : i32, i32
  }
  func.func @transform_7(%arg0: i32) -> (i32, i32) {
    %c0_i32 = arith.constant 0 : i32
    %c0_i32_0 = arith.constant 0 : i32
    %c0_i32_1 = arith.constant 0 : i32
    return %c0_i32, %c0_i32_0 : i32, i32
  }
  func.func @transform_8(%arg0: i32) -> (i32, i32, i32) {
    %c0_i32 = arith.constant 0 : i32
    %c0_i32_0 = arith.constant 0 : i32
    %c0_i32_1 = arith.constant 0 : i32
    return %arg0, %c0_i32, %c0_i32_0 : i32, i32, i32
  }
}

module attributes {stable_mosaic.version = 11 : i64} {
  func.func @_cross_attn_block_kernel(%arg0: i32, %arg1: memref<1x8x32xf32, #tpu.memory_space<vmem>>, %arg2: memref<1x10x32xf32, #tpu.memory_space<vmem>>, %arg3: memref<1x8x10xi32, #tpu.memory_space<vmem>>, %arg4: memref<32x32xf32, #tpu.memory_space<vmem>>, %arg5: memref<1x32xf32, #tpu.memory_space<vmem>>, %arg6: memref<32x64xf32, #tpu.memory_space<vmem>>, %arg7: memref<1x64xf32, #tpu.memory_space<vmem>>, %arg8: memref<32x32xf32, #tpu.memory_space<vmem>>, %arg9: memref<1x32xf32, #tpu.memory_space<vmem>>, %arg10: memref<1x32xf32, #tpu.memory_space<vmem>>, %arg11: memref<1x32xf32, #tpu.memory_space<vmem>>, %arg12: memref<1x8x32xf32, #tpu.memory_space<vmem>>) attributes {dimension_semantics = [#tpu.dimension_semantics<parallel>], iteration_bounds = array<i64: 2>, scalar_prefetch = 0 : i64, scratch_operands = 0 : i64, tpu.core_type = #tpu.core_type<tc>, window_params = [{transform_indices = @transform_0, window_bounds = array<i64: 1, 8, 32>}, {transform_indices = @transform_1, window_bounds = array<i64: 1, 10, 32>}, {transform_indices = @transform_2, window_bounds = array<i64: 1, 8, 10>}, {pipeline_mode = #tpu.pipeline_mode<synchronous>, transform_indices = @transform_3, window_bounds = array<i64: 32, 32>}, {pipeline_mode = #tpu.pipeline_mode<synchronous>, transform_indices = @transform_4, window_bounds = array<i64: 1, 32>}, {pipeline_mode = #tpu.pipeline_mode<synchronous>, transform_indices = @transform_5, window_bounds = array<i64: 32, 64>}, {pipeline_mode = #tpu.pipeline_mode<synchronous>, transform_indices = @transform_6, window_bounds = array<i64: 1, 64>}, {pipeline_mode = #tpu.pipeline_mode<synchronous>, transform_indices = @transform_7, window_bounds = array<i64: 32, 32>}, {pipeline_mode = #tpu.pipeline_mode<synchronous>, transform_indices = @transform_8, window_bounds = array<i64: 1, 32>}, {pipeline_mode = #tpu.pipeline_mode<synchronous>, transform_indices = @transform_9, window_bounds = array<i64: 1, 32>}, {pipeline_mode = #tpu.pipeline_mode<synchronous>, transform_indices = @transform_10, window_bounds = array<i64: 1, 32>}, {transform_indices = @transform_11, window_bounds = array<i64: 1, 8, 32>}]} {
    %c0 = arith.constant 0 : index
    %c0_0 = arith.constant 0 : index
    %c0_1 = arith.constant 0 : index
    %0 = vector.load %arg1[%c0, %c0_0, %c0_1] : memref<1x8x32xf32, #tpu.memory_space<vmem>>, vector<1x8x32xf32>
    %1 = vector.shape_cast %0 : vector<1x8x32xf32> to vector<8x32xf32>
    %c0_2 = arith.constant 0 : index
    %c0_3 = arith.constant 0 : index
    %2 = vector.load %arg4[%c0_2, %c0_3] : memref<32x32xf32, #tpu.memory_space<vmem>>, vector<32x32xf32>
    %cst = arith.constant dense<0.000000e+00> : vector<8x32xf32>
    %3 = tpu.matmul %1, %2, %cst {dimension_numbers = #tpu.dot_dimension_numbers<[1], [0], [0], [1], [0, 0, 1, 1], [], []>} : vector<8x32xf32>, vector<32x32xf32>, vector<8x32xf32> -> vector<8x32xf32>
    %c0_4 = arith.constant 0 : index
    %c0_5 = arith.constant 0 : index
    %4 = vector.load %arg5[%c0_4, %c0_5] : memref<1x32xf32, #tpu.memory_space<vmem>>, vector<1x32xf32>
    %5 = vector.broadcast %4 : vector<1x32xf32> to vector<8x32xf32>
    %6 = arith.addf %3, %5 : vector<8x32xf32>
    %c0_6 = arith.constant 0 : index
    %c0_7 = arith.constant 0 : index
    %c0_8 = arith.constant 0 : index
    %7 = vector.load %arg2[%c0_6, %c0_7, %c0_8] : memref<1x10x32xf32, #tpu.memory_space<vmem>>, vector<1x10x32xf32>
    %8 = vector.shape_cast %7 : vector<1x10x32xf32> to vector<10x32xf32>
    %c0_9 = arith.constant 0 : index
    %c0_10 = arith.constant 0 : index
    %9 = vector.load %arg6[%c0_9, %c0_10] : memref<32x64xf32, #tpu.memory_space<vmem>>, vector<32x64xf32>
    %cst_11 = arith.constant dense<0.000000e+00> : vector<10x64xf32>
    %10 = tpu.matmul %8, %9, %cst_11 {dimension_numbers = #tpu.dot_dimension_numbers<[1], [0], [0], [1], [0, 0, 1, 1], [], []>} : vector<10x32xf32>, vector<32x64xf32>, vector<10x64xf32> -> vector<10x64xf32>
    %c0_12 = arith.constant 0 : index
    %c0_13 = arith.constant 0 : index
    %11 = vector.load %arg7[%c0_12, %c0_13] : memref<1x64xf32, #tpu.memory_space<vmem>>, vector<1x64xf32>
    %12 = vector.broadcast %11 : vector<1x64xf32> to vector<10x64xf32>
    %13 = arith.addf %10, %12 : vector<10x64xf32>
    %c0_14 = arith.constant 0 : index
    %c0_15 = arith.constant 0 : index
    %c0_16 = arith.constant 0 : index
    %14 = vector.load %arg3[%c0_14, %c0_15, %c0_16] : memref<1x8x10xi32, #tpu.memory_space<vmem>>, vector<1x8x10xi32>
    %15 = vector.shape_cast %14 : vector<1x8x10xi32> to vector<8x10xi32>
    %c0_17 = arith.constant 0 : index
    %c0_18 = arith.constant 0 : index
    %16 = vector.load %arg8[%c0_17, %c0_18] : memref<32x32xf32, #tpu.memory_space<vmem>>, vector<32x32xf32>
    %c0_19 = arith.constant 0 : index
    %c0_20 = arith.constant 0 : index
    %17 = vector.load %arg9[%c0_19, %c0_20] : memref<1x32xf32, #tpu.memory_space<vmem>>, vector<1x32xf32>
    %c0_21 = arith.constant 0 : index
    %c0_22 = arith.constant 0 : index
    %18 = vector.load %arg10[%c0_21, %c0_22] : memref<1x32xf32, #tpu.memory_space<vmem>>, vector<1x32xf32>
    %c0_23 = arith.constant 0 : index
    %c0_24 = arith.constant 0 : index
    %19 = vector.load %arg11[%c0_23, %c0_24] : memref<1x32xf32, #tpu.memory_space<vmem>>, vector<1x32xf32>
    %20 = vector.broadcast %17 : vector<1x32xf32> to vector<8x32xf32>
    %21 = arith.addf %1, %20 : vector<8x32xf32>
    %22 = vector.extract_strided_slice %6 {offsets = [0, 0], sizes = [8, 8], strides = [1, 1]} : vector<8x32xf32> to vector<8x8xf32>
    %cst_25 = arith.constant 0.353553385 : f32
    %23 = vector.broadcast %cst_25 : f32 to vector<8x8xf32>
    %24 = arith.mulf %22, %23 : vector<8x8xf32>
    %25 = vector.extract_strided_slice %13 {offsets = [0, 0], sizes = [10, 8], strides = [1, 1]} : vector<10x64xf32> to vector<10x8xf32>
    %26 = vector.extract_strided_slice %13 {offsets = [0, 32], sizes = [10, 8], strides = [1, 1]} : vector<10x64xf32> to vector<10x8xf32>
    %cst_26 = arith.constant dense<0.000000e+00> : vector<8x10xf32>
    %27 = tpu.matmul %24, %25, %cst_26 {dimension_numbers = #tpu.dot_dimension_numbers<[1], [1], [0], [0], [0, 0, 1, 0], [], []>} : vector<8x8xf32>, vector<10x8xf32>, vector<8x10xf32> -> vector<8x10xf32>
    %c0_i32 = arith.constant 0 : i32
    %28 = vector.broadcast %c0_i32 : i32 to vector<8x10xi32>
    %29 = arith.cmpi eq, %15, %28 : vector<8x10xi32>
    %cst_27 = arith.constant -1.000000e+10 : f32
    %30 = vector.broadcast %cst_27 : f32 to vector<8x10xf32>
    %31 = arith.select %29, %30, %27 : vector<8x10xi1>, vector<8x10xf32>
    %cst_28 = arith.constant dense<0xFF800000> : vector<8xf32>
    %32 = vector.multi_reduction <maximumf>, %31, %cst_28 [1] : vector<8x10xf32> to vector<8xf32>
    %33 = vector.shape_cast %32 : vector<8xf32> to vector<8x1xf32>
    %34 = vector.broadcast %33 : vector<8x1xf32> to vector<8x10xf32>
    %35 = arith.subf %31, %34 : vector<8x10xf32>
    %36 = math.exp %35 : vector<8x10xf32>
    %cst_29 = arith.constant dense<0.000000e+00> : vector<8xf32>
    %37 = vector.multi_reduction <add>, %36, %cst_29 [1] : vector<8x10xf32> to vector<8xf32>
    %38 = vector.shape_cast %37 : vector<8xf32> to vector<8x1xf32>
    %39 = tpu.reciprocal %38 {approx = true} : vector<8x1xf32> -> vector<8x1xf32>
    %40 = vector.broadcast %39 : vector<8x1xf32> to vector<8x10xf32>
    %41 = arith.mulf %36, %40 : vector<8x10xf32>
    %cst_30 = arith.constant dense<0.000000e+00> : vector<8x8xf32>
    %42 = tpu.matmul %41, %26, %cst_30 {dimension_numbers = #tpu.dot_dimension_numbers<[1], [0], [0], [1], [0, 0, 1, 1], [], []>} : vector<8x10xf32>, vector<10x8xf32>, vector<8x8xf32> -> vector<8x8xf32>
    %43 = vector.extract_strided_slice %16 {offsets = [0, 0], sizes = [8, 32], strides = [1, 1]} : vector<32x32xf32> to vector<8x32xf32>
    %cst_31 = arith.constant dense<0.000000e+00> : vector<8x32xf32>
    %44 = tpu.matmul %42, %43, %cst_31 {dimension_numbers = #tpu.dot_dimension_numbers<[1], [0], [0], [1], [0, 0, 1, 1], [], []>} : vector<8x8xf32>, vector<8x32xf32>, vector<8x32xf32> -> vector<8x32xf32>
    %45 = arith.addf %21, %44 : vector<8x32xf32>
    %46 = vector.extract_strided_slice %6 {offsets = [0, 8], sizes = [8, 8], strides = [1, 1]} : vector<8x32xf32> to vector<8x8xf32>
    %cst_32 = arith.constant 0.353553385 : f32
    %47 = vector.broadcast %cst_32 : f32 to vector<8x8xf32>
    %48 = arith.mulf %46, %47 : vector<8x8xf32>
    %49 = vector.extract_strided_slice %13 {offsets = [0, 8], sizes = [10, 8], strides = [1, 1]} : vector<10x64xf32> to vector<10x8xf32>
    %50 = vector.extract_strided_slice %13 {offsets = [0, 40], sizes = [10, 8], strides = [1, 1]} : vector<10x64xf32> to vector<10x8xf32>
    %cst_33 = arith.constant dense<0.000000e+00> : vector<8x10xf32>
    %51 = tpu.matmul %48, %49, %cst_33 {dimension_numbers = #tpu.dot_dimension_numbers<[1], [1], [0], [0], [0, 0, 1, 0], [], []>} : vector<8x8xf32>, vector<10x8xf32>, vector<8x10xf32> -> vector<8x10xf32>
    %c0_i32_34 = arith.constant 0 : i32
    %52 = vector.broadcast %c0_i32_34 : i32 to vector<8x10xi32>
    %53 = arith.cmpi eq, %15, %52 : vector<8x10xi32>
    %cst_35 = arith.constant -1.000000e+10 : f32
    %54 = vector.broadcast %cst_35 : f32 to vector<8x10xf32>
    %55 = arith.select %53, %54, %51 : vector<8x10xi1>, vector<8x10xf32>
    %cst_36 = arith.constant dense<0xFF800000> : vector<8xf32>
    %56 = vector.multi_reduction <maximumf>, %55, %cst_36 [1] : vector<8x10xf32> to vector<8xf32>
    %57 = vector.shape_cast %56 : vector<8xf32> to vector<8x1xf32>
    %58 = vector.broadcast %57 : vector<8x1xf32> to vector<8x10xf32>
    %59 = arith.subf %55, %58 : vector<8x10xf32>
    %60 = math.exp %59 : vector<8x10xf32>
    %cst_37 = arith.constant dense<0.000000e+00> : vector<8xf32>
    %61 = vector.multi_reduction <add>, %60, %cst_37 [1] : vector<8x10xf32> to vector<8xf32>
    %62 = vector.shape_cast %61 : vector<8xf32> to vector<8x1xf32>
    %63 = tpu.reciprocal %62 {approx = true} : vector<8x1xf32> -> vector<8x1xf32>
    %64 = vector.broadcast %63 : vector<8x1xf32> to vector<8x10xf32>
    %65 = arith.mulf %60, %64 : vector<8x10xf32>
    %cst_38 = arith.constant dense<0.000000e+00> : vector<8x8xf32>
    %66 = tpu.matmul %65, %50, %cst_38 {dimension_numbers = #tpu.dot_dimension_numbers<[1], [0], [0], [1], [0, 0, 1, 1], [], []>} : vector<8x10xf32>, vector<10x8xf32>, vector<8x8xf32> -> vector<8x8xf32>
    %67 = vector.extract_strided_slice %16 {offsets = [8, 0], sizes = [8, 32], strides = [1, 1]} : vector<32x32xf32> to vector<8x32xf32>
    %cst_39 = arith.constant dense<0.000000e+00> : vector<8x32xf32>
    %68 = tpu.matmul %66, %67, %cst_39 {dimension_numbers = #tpu.dot_dimension_numbers<[1], [0], [0], [1], [0, 0, 1, 1], [], []>} : vector<8x8xf32>, vector<8x32xf32>, vector<8x32xf32> -> vector<8x32xf32>
    %69 = arith.addf %45, %68 : vector<8x32xf32>
    %70 = vector.extract_strided_slice %6 {offsets = [0, 16], sizes = [8, 8], strides = [1, 1]} : vector<8x32xf32> to vector<8x8xf32>
    %cst_40 = arith.constant 0.353553385 : f32
    %71 = vector.broadcast %cst_40 : f32 to vector<8x8xf32>
    %72 = arith.mulf %70, %71 : vector<8x8xf32>
    %73 = vector.extract_strided_slice %13 {offsets = [0, 16], sizes = [10, 8], strides = [1, 1]} : vector<10x64xf32> to vector<10x8xf32>
    %74 = vector.extract_strided_slice %13 {offsets = [0, 48], sizes = [10, 8], strides = [1, 1]} : vector<10x64xf32> to vector<10x8xf32>
    %cst_41 = arith.constant dense<0.000000e+00> : vector<8x10xf32>
    %75 = tpu.matmul %72, %73, %cst_41 {dimension_numbers = #tpu.dot_dimension_numbers<[1], [1], [0], [0], [0, 0, 1, 0], [], []>} : vector<8x8xf32>, vector<10x8xf32>, vector<8x10xf32> -> vector<8x10xf32>
    %c0_i32_42 = arith.constant 0 : i32
    %76 = vector.broadcast %c0_i32_42 : i32 to vector<8x10xi32>
    %77 = arith.cmpi eq, %15, %76 : vector<8x10xi32>
    %cst_43 = arith.constant -1.000000e+10 : f32
    %78 = vector.broadcast %cst_43 : f32 to vector<8x10xf32>
    %79 = arith.select %77, %78, %75 : vector<8x10xi1>, vector<8x10xf32>
    %cst_44 = arith.constant dense<0xFF800000> : vector<8xf32>
    %80 = vector.multi_reduction <maximumf>, %79, %cst_44 [1] : vector<8x10xf32> to vector<8xf32>
    %81 = vector.shape_cast %80 : vector<8xf32> to vector<8x1xf32>
    %82 = vector.broadcast %81 : vector<8x1xf32> to vector<8x10xf32>
    %83 = arith.subf %79, %82 : vector<8x10xf32>
    %84 = math.exp %83 : vector<8x10xf32>
    %cst_45 = arith.constant dense<0.000000e+00> : vector<8xf32>
    %85 = vector.multi_reduction <add>, %84, %cst_45 [1] : vector<8x10xf32> to vector<8xf32>
    %86 = vector.shape_cast %85 : vector<8xf32> to vector<8x1xf32>
    %87 = tpu.reciprocal %86 {approx = true} : vector<8x1xf32> -> vector<8x1xf32>
    %88 = vector.broadcast %87 : vector<8x1xf32> to vector<8x10xf32>
    %89 = arith.mulf %84, %88 : vector<8x10xf32>
    %cst_46 = arith.constant dense<0.000000e+00> : vector<8x8xf32>
    %90 = tpu.matmul %89, %74, %cst_46 {dimension_numbers = #tpu.dot_dimension_numbers<[1], [0], [0], [1], [0, 0, 1, 1], [], []>} : vector<8x10xf32>, vector<10x8xf32>, vector<8x8xf32> -> vector<8x8xf32>
    %91 = vector.extract_strided_slice %16 {offsets = [16, 0], sizes = [8, 32], strides = [1, 1]} : vector<32x32xf32> to vector<8x32xf32>
    %cst_47 = arith.constant dense<0.000000e+00> : vector<8x32xf32>
    %92 = tpu.matmul %90, %91, %cst_47 {dimension_numbers = #tpu.dot_dimension_numbers<[1], [0], [0], [1], [0, 0, 1, 1], [], []>} : vector<8x8xf32>, vector<8x32xf32>, vector<8x32xf32> -> vector<8x32xf32>
    %93 = arith.addf %69, %92 : vector<8x32xf32>
    %94 = vector.extract_strided_slice %6 {offsets = [0, 24], sizes = [8, 8], strides = [1, 1]} : vector<8x32xf32> to vector<8x8xf32>
    %cst_48 = arith.constant 0.353553385 : f32
    %95 = vector.broadcast %cst_48 : f32 to vector<8x8xf32>
    %96 = arith.mulf %94, %95 : vector<8x8xf32>
    %97 = vector.extract_strided_slice %13 {offsets = [0, 24], sizes = [10, 8], strides = [1, 1]} : vector<10x64xf32> to vector<10x8xf32>
    %98 = vector.extract_strided_slice %13 {offsets = [0, 56], sizes = [10, 8], strides = [1, 1]} : vector<10x64xf32> to vector<10x8xf32>
    %cst_49 = arith.constant dense<0.000000e+00> : vector<8x10xf32>
    %99 = tpu.matmul %96, %97, %cst_49 {dimension_numbers = #tpu.dot_dimension_numbers<[1], [1], [0], [0], [0, 0, 1, 0], [], []>} : vector<8x8xf32>, vector<10x8xf32>, vector<8x10xf32> -> vector<8x10xf32>
    %c0_i32_50 = arith.constant 0 : i32
    %100 = vector.broadcast %c0_i32_50 : i32 to vector<8x10xi32>
    %101 = arith.cmpi eq, %15, %100 : vector<8x10xi32>
    %cst_51 = arith.constant -1.000000e+10 : f32
    %102 = vector.broadcast %cst_51 : f32 to vector<8x10xf32>
    %103 = arith.select %101, %102, %99 : vector<8x10xi1>, vector<8x10xf32>
    %cst_52 = arith.constant dense<0xFF800000> : vector<8xf32>
    %104 = vector.multi_reduction <maximumf>, %103, %cst_52 [1] : vector<8x10xf32> to vector<8xf32>
    %105 = vector.shape_cast %104 : vector<8xf32> to vector<8x1xf32>
    %106 = vector.broadcast %105 : vector<8x1xf32> to vector<8x10xf32>
    %107 = arith.subf %103, %106 : vector<8x10xf32>
    %108 = math.exp %107 : vector<8x10xf32>
    %cst_53 = arith.constant dense<0.000000e+00> : vector<8xf32>
    %109 = vector.multi_reduction <add>, %108, %cst_53 [1] : vector<8x10xf32> to vector<8xf32>
    %110 = vector.shape_cast %109 : vector<8xf32> to vector<8x1xf32>
    %111 = tpu.reciprocal %110 {approx = true} : vector<8x1xf32> -> vector<8x1xf32>
    %112 = vector.broadcast %111 : vector<8x1xf32> to vector<8x10xf32>
    %113 = arith.mulf %108, %112 : vector<8x10xf32>
    %cst_54 = arith.constant dense<0.000000e+00> : vector<8x8xf32>
    %114 = tpu.matmul %113, %98, %cst_54 {dimension_numbers = #tpu.dot_dimension_numbers<[1], [0], [0], [1], [0, 0, 1, 1], [], []>} : vector<8x10xf32>, vector<10x8xf32>, vector<8x8xf32> -> vector<8x8xf32>
    %115 = vector.extract_strided_slice %16 {offsets = [24, 0], sizes = [8, 32], strides = [1, 1]} : vector<32x32xf32> to vector<8x32xf32>
    %cst_55 = arith.constant dense<0.000000e+00> : vector<8x32xf32>
    %116 = tpu.matmul %114, %115, %cst_55 {dimension_numbers = #tpu.dot_dimension_numbers<[1], [0], [0], [1], [0, 0, 1, 1], [], []>} : vector<8x8xf32>, vector<8x32xf32>, vector<8x32xf32> -> vector<8x32xf32>
    %117 = arith.addf %93, %116 : vector<8x32xf32>
    %cst_56 = arith.constant dense<0.000000e+00> : vector<8xf32>
    %118 = vector.multi_reduction <add>, %117, %cst_56 [1] : vector<8x32xf32> to vector<8xf32>
    %119 = vector.shape_cast %118 : vector<8xf32> to vector<8x1xf32>
    %cst_57 = arith.constant 3.200000e+01 : f32
    %120 = vector.broadcast %cst_57 : f32 to vector<8x1xf32>
    %121 = arith.divf %119, %120 : vector<8x1xf32>
    %122 = vector.broadcast %121 : vector<8x1xf32> to vector<8x32xf32>
    %123 = arith.subf %117, %122 : vector<8x32xf32>
    %124 = arith.mulf %123, %123 : vector<8x32xf32>
    %cst_58 = arith.constant dense<0.000000e+00> : vector<8xf32>
    %125 = vector.multi_reduction <add>, %124, %cst_58 [1] : vector<8x32xf32> to vector<8xf32>
    %126 = vector.shape_cast %125 : vector<8xf32> to vector<8x1xf32>
    %cst_59 = arith.constant 3.200000e+01 : f32
    %127 = vector.broadcast %cst_59 : f32 to vector<8x1xf32>
    %128 = arith.divf %126, %127 : vector<8x1xf32>
    %129 = vector.broadcast %121 : vector<8x1xf32> to vector<8x32xf32>
    %130 = arith.subf %117, %129 : vector<8x32xf32>
    %cst_60 = arith.constant 9.99999974E-6 : f32
    %131 = vector.broadcast %cst_60 : f32 to vector<8x1xf32>
    %132 = arith.addf %128, %131 : vector<8x1xf32>
    %133 = math.rsqrt %132 : vector<8x1xf32>
    %134 = vector.broadcast %133 : vector<8x1xf32> to vector<8x32xf32>
    %135 = arith.mulf %130, %134 : vector<8x32xf32>
    %136 = vector.broadcast %18 : vector<1x32xf32> to vector<8x32xf32>
    %137 = arith.mulf %135, %136 : vector<8x32xf32>
    %138 = vector.broadcast %19 : vector<1x32xf32> to vector<8x32xf32>
    %139 = arith.addf %137, %138 : vector<8x32xf32>
    %c0_61 = arith.constant 0 : index
    %c0_62 = arith.constant 0 : index
    %c0_63 = arith.constant 0 : index
    %140 = vector.load %arg12[%c0_61, %c0_62, %c0_63] : memref<1x8x32xf32, #tpu.memory_space<vmem>>, vector<1x8x32xf32>
    %141 = vector.shape_cast %140 : vector<1x8x32xf32> to vector<8x32xf32>
    %142 = vector.shape_cast %139 : vector<8x32xf32> to vector<1x8x32xf32>
    tpu.vector_store %arg12[%c0_61, %c0_62, %c0_63], %142 {strides = array<i32>} : memref<1x8x32xf32, #tpu.memory_space<vmem>>, vector<1x8x32xf32>,
    return
  }
  func.func @transform_0(%arg0: i32) -> (i32, i32, i32) {
    %c0_i32 = arith.constant 0 : i32
    %c0_i32_0 = arith.constant 0 : i32
    %c0_i32_1 = arith.constant 0 : i32
    return %arg0, %c0_i32, %c0_i32_0 : i32, i32, i32
  }
  func.func @transform_1(%arg0: i32) -> (i32, i32, i32) {
    %c0_i32 = arith.constant 0 : i32
    %c0_i32_0 = arith.constant 0 : i32
    %c0_i32_1 = arith.constant 0 : i32
    return %arg0, %c0_i32, %c0_i32_0 : i32, i32, i32
  }
  func.func @transform_2(%arg0: i32) -> (i32, i32, i32) {
    %c0_i32 = arith.constant 0 : i32
    %c0_i32_0 = arith.constant 0 : i32
    %c0_i32_1 = arith.constant 0 : i32
    return %arg0, %c0_i32, %c0_i32_0 : i32, i32, i32
  }
  func.func @transform_3(%arg0: i32) -> (i32, i32) {
    %c0_i32 = arith.constant 0 : i32
    %c0_i32_0 = arith.constant 0 : i32
    %c0_i32_1 = arith.constant 0 : i32
    return %c0_i32, %c0_i32_0 : i32, i32
  }
  func.func @transform_4(%arg0: i32) -> (i32, i32) {
    %c0_i32 = arith.constant 0 : i32
    %c0_i32_0 = arith.constant 0 : i32
    %c0_i32_1 = arith.constant 0 : i32
    return %c0_i32, %c0_i32_0 : i32, i32
  }
  func.func @transform_5(%arg0: i32) -> (i32, i32) {
    %c0_i32 = arith.constant 0 : i32
    %c0_i32_0 = arith.constant 0 : i32
    %c0_i32_1 = arith.constant 0 : i32
    return %c0_i32, %c0_i32_0 : i32, i32
  }
  func.func @transform_6(%arg0: i32) -> (i32, i32) {
    %c0_i32 = arith.constant 0 : i32
    %c0_i32_0 = arith.constant 0 : i32
    %c0_i32_1 = arith.constant 0 : i32
    return %c0_i32, %c0_i32_0 : i32, i32
  }
  func.func @transform_7(%arg0: i32) -> (i32, i32) {
    %c0_i32 = arith.constant 0 : i32
    %c0_i32_0 = arith.constant 0 : i32
    %c0_i32_1 = arith.constant 0 : i32
    return %c0_i32, %c0_i32_0 : i32, i32
  }
  func.func @transform_8(%arg0: i32) -> (i32, i32) {
    %c0_i32 = arith.constant 0 : i32
    %c0_i32_0 = arith.constant 0 : i32
    %c0_i32_1 = arith.constant 0 : i32
    return %c0_i32, %c0_i32_0 : i32, i32
  }
  func.func @transform_9(%arg0: i32) -> (i32, i32) {
    %c0_i32 = arith.constant 0 : i32
    %c0_i32_0 = arith.constant 0 : i32
    %c0_i32_1 = arith.constant 0 : i32
    return %c0_i32, %c0_i32_0 : i32, i32
  }
  func.func @transform_10(%arg0: i32) -> (i32, i32) {
    %c0_i32 = arith.constant 0 : i32
    %c0_i32_0 = arith.constant 0 : i32
    %c0_i32_1 = arith.constant 0 : i32
    return %c0_i32, %c0_i32_0 : i32, i32
  }
  func.func @transform_11(%arg0: i32) -> (i32, i32, i32) {
    %c0_i32 = arith.constant 0 : i32
    %c0_i32_0 = arith.constant 0 : i32
    %c0_i32_1 = arith.constant 0 : i32
    return %arg0, %c0_i32, %c0_i32_0 : i32, i32, i32
  }
}

module attributes {stable_mosaic.version = 11 : i64} {
  func.func @_cross_attn_block_kernel(%arg0: i32, %arg1: memref<1x8x32xf32, #tpu.memory_space<vmem>>, %arg2: memref<1x10x32xf32, #tpu.memory_space<vmem>>, %arg3: memref<1x8x10xi32, #tpu.memory_space<vmem>>, %arg4: memref<32x32xf32, #tpu.memory_space<vmem>>, %arg5: memref<1x32xf32, #tpu.memory_space<vmem>>, %arg6: memref<32x64xf32, #tpu.memory_space<vmem>>, %arg7: memref<1x64xf32, #tpu.memory_space<vmem>>, %arg8: memref<32x32xf32, #tpu.memory_space<vmem>>, %arg9: memref<1x32xf32, #tpu.memory_space<vmem>>, %arg10: memref<1x32xf32, #tpu.memory_space<vmem>>, %arg11: memref<1x32xf32, #tpu.memory_space<vmem>>, %arg12: memref<1x8x32xf32, #tpu.memory_space<vmem>>, %arg13: memref<1x4x8x10xf32, #tpu.memory_space<vmem>>) attributes {dimension_semantics = [#tpu.dimension_semantics<parallel>], iteration_bounds = array<i64: 2>, scalar_prefetch = 0 : i64, scratch_operands = 0 : i64, tpu.core_type = #tpu.core_type<tc>, window_params = [{transform_indices = @transform_0, window_bounds = array<i64: 1, 8, 32>}, {transform_indices = @transform_1, window_bounds = array<i64: 1, 10, 32>}, {transform_indices = @transform_2, window_bounds = array<i64: 1, 8, 10>}, {pipeline_mode = #tpu.pipeline_mode<synchronous>, transform_indices = @transform_3, window_bounds = array<i64: 32, 32>}, {pipeline_mode = #tpu.pipeline_mode<synchronous>, transform_indices = @transform_4, window_bounds = array<i64: 1, 32>}, {pipeline_mode = #tpu.pipeline_mode<synchronous>, transform_indices = @transform_5, window_bounds = array<i64: 32, 64>}, {pipeline_mode = #tpu.pipeline_mode<synchronous>, transform_indices = @transform_6, window_bounds = array<i64: 1, 64>}, {pipeline_mode = #tpu.pipeline_mode<synchronous>, transform_indices = @transform_7, window_bounds = array<i64: 32, 32>}, {pipeline_mode = #tpu.pipeline_mode<synchronous>, transform_indices = @transform_8, window_bounds = array<i64: 1, 32>}, {pipeline_mode = #tpu.pipeline_mode<synchronous>, transform_indices = @transform_9, window_bounds = array<i64: 1, 32>}, {pipeline_mode = #tpu.pipeline_mode<synchronous>, transform_indices = @transform_10, window_bounds = array<i64: 1, 32>}, {transform_indices = @transform_11, window_bounds = array<i64: 1, 8, 32>}, {transform_indices = @transform_12, window_bounds = array<i64: 1, 4, 8, 10>}]} {
    %c0 = arith.constant 0 : index
    %c0_0 = arith.constant 0 : index
    %c0_1 = arith.constant 0 : index
    %0 = vector.load %arg1[%c0, %c0_0, %c0_1] : memref<1x8x32xf32, #tpu.memory_space<vmem>>, vector<1x8x32xf32>
    %1 = vector.shape_cast %0 : vector<1x8x32xf32> to vector<8x32xf32>
    %c0_2 = arith.constant 0 : index
    %c0_3 = arith.constant 0 : index
    %2 = vector.load %arg4[%c0_2, %c0_3] : memref<32x32xf32, #tpu.memory_space<vmem>>, vector<32x32xf32>
    %cst = arith.constant dense<0.000000e+00> : vector<8x32xf32>
    %3 = tpu.matmul %1, %2, %cst {dimension_numbers = #tpu.dot_dimension_numbers<[1], [0], [0], [1], [0, 0, 1, 1], [], []>} : vector<8x32xf32>, vector<32x32xf32>, vector<8x32xf32> -> vector<8x32xf32>
    %c0_4 = arith.constant 0 : index
    %c0_5 = arith.constant 0 : index
    %4 = vector.load %arg5[%c0_4, %c0_5] : memref<1x32xf32, #tpu.memory_space<vmem>>, vector<1x32xf32>
    %5 = vector.broadcast %4 : vector<1x32xf32> to vector<8x32xf32>
    %6 = arith.addf %3, %5 : vector<8x32xf32>
    %c0_6 = arith.constant 0 : index
    %c0_7 = arith.constant 0 : index
    %c0_8 = arith.constant 0 : index
    %7 = vector.load %arg2[%c0_6, %c0_7, %c0_8] : memref<1x10x32xf32, #tpu.memory_space<vmem>>, vector<1x10x32xf32>
    %8 = vector.shape_cast %7 : vector<1x10x32xf32> to vector<10x32xf32>
    %c0_9 = arith.constant 0 : index
    %c0_10 = arith.constant 0 : index
    %9 = vector.load %arg6[%c0_9, %c0_10] : memref<32x64xf32, #tpu.memory_space<vmem>>, vector<32x64xf32>
    %cst_11 = arith.constant dense<0.000000e+00> : vector<10x64xf32>
    %10 = tpu.matmul %8, %9, %cst_11 {dimension_numbers = #tpu.dot_dimension_numbers<[1], [0], [0], [1], [0, 0, 1, 1], [], []>} : vector<10x32xf32>, vector<32x64xf32>, vector<10x64xf32> -> vector<10x64xf32>
    %c0_12 = arith.constant 0 : index
    %c0_13 = arith.constant 0 : index
    %11 = vector.load %arg7[%c0_12, %c0_13] : memref<1x64xf32, #tpu.memory_space<vmem>>, vector<1x64xf32>
    %12 = vector.broadcast %11 : vector<1x64xf32> to vector<10x64xf32>
    %13 = arith.addf %10, %12 : vector<10x64xf32>
    %c0_14 = arith.constant 0 : index
    %c0_15 = arith.constant 0 : index
    %c0_16 = arith.constant 0 : index
    %14 = vector.load %arg3[%c0_14, %c0_15, %c0_16] : memref<1x8x10xi32, #tpu.memory_space<vmem>>, vector<1x8x10xi32>
    %15 = vector.shape_cast %14 : vector<1x8x10xi32> to vector<8x10xi32>
    %c0_17 = arith.constant 0 : index
    %c0_18 = arith.constant 0 : index
    %16 = vector.load %arg8[%c0_17, %c0_18] : memref<32x32xf32, #tpu.memory_space<vmem>>, vector<32x32xf32>
    %c0_19 = arith.constant 0 : index
    %c0_20 = arith.constant 0 : index
    %17 = vector.load %arg9[%c0_19, %c0_20] : memref<1x32xf32, #tpu.memory_space<vmem>>, vector<1x32xf32>
    %c0_21 = arith.constant 0 : index
    %c0_22 = arith.constant 0 : index
    %18 = vector.load %arg10[%c0_21, %c0_22] : memref<1x32xf32, #tpu.memory_space<vmem>>, vector<1x32xf32>
    %c0_23 = arith.constant 0 : index
    %c0_24 = arith.constant 0 : index
    %19 = vector.load %arg11[%c0_23, %c0_24] : memref<1x32xf32, #tpu.memory_space<vmem>>, vector<1x32xf32>
    %20 = vector.broadcast %17 : vector<1x32xf32> to vector<8x32xf32>
    %21 = arith.addf %1, %20 : vector<8x32xf32>
    %22 = vector.extract_strided_slice %6 {offsets = [0, 0], sizes = [8, 8], strides = [1, 1]} : vector<8x32xf32> to vector<8x8xf32>
    %cst_25 = arith.constant 0.353553385 : f32
    %23 = vector.broadcast %cst_25 : f32 to vector<8x8xf32>
    %24 = arith.mulf %22, %23 : vector<8x8xf32>
    %25 = vector.extract_strided_slice %13 {offsets = [0, 0], sizes = [10, 8], strides = [1, 1]} : vector<10x64xf32> to vector<10x8xf32>
    %26 = vector.extract_strided_slice %13 {offsets = [0, 32], sizes = [10, 8], strides = [1, 1]} : vector<10x64xf32> to vector<10x8xf32>
    %cst_26 = arith.constant dense<0.000000e+00> : vector<8x10xf32>
    %27 = tpu.matmul %24, %25, %cst_26 {dimension_numbers = #tpu.dot_dimension_numbers<[1], [1], [0], [0], [0, 0, 1, 0], [], []>} : vector<8x8xf32>, vector<10x8xf32>, vector<8x10xf32> -> vector<8x10xf32>
    %c0_i32 = arith.constant 0 : i32
    %28 = vector.broadcast %c0_i32 : i32 to vector<8x10xi32>
    %29 = arith.cmpi eq, %15, %28 : vector<8x10xi32>
    %cst_27 = arith.constant -1.000000e+10 : f32
    %30 = vector.broadcast %cst_27 : f32 to vector<8x10xf32>
    %31 = arith.select %29, %30, %27 : vector<8x10xi1>, vector<8x10xf32>
    %cst_28 = arith.constant dense<0xFF800000> : vector<8xf32>
    %32 = vector.multi_reduction <maximumf>, %31, %cst_28 [1] : vector<8x10xf32> to vector<8xf32>
    %33 = vector.shape_cast %32 : vector<8xf32> to vector<8x1xf32>
    %34 = vector.broadcast %33 : vector<8x1xf32> to vector<8x10xf32>
    %35 = arith.subf %31, %34 : vector<8x10xf32>
    %36 = math.exp %35 : vector<8x10xf32>
    %cst_29 = arith.constant dense<0.000000e+00> : vector<8xf32>
    %37 = vector.multi_reduction <add>, %36, %cst_29 [1] : vector<8x10xf32> to vector<8xf32>
    %38 = vector.shape_cast %37 : vector<8xf32> to vector<8x1xf32>
    %39 = tpu.reciprocal %38 {approx = true} : vector<8x1xf32> -> vector<8x1xf32>
    %40 = vector.broadcast %39 : vector<8x1xf32> to vector<8x10xf32>
    %41 = arith.mulf %36, %40 : vector<8x10xf32>
    %c0_30 = arith.constant 0 : index
    %c0_31 = arith.constant 0 : index
    %c0_32 = arith.constant 0 : index
    %c0_33 = arith.constant 0 : index
    %42 = vector.load %arg13[%c0_30, %c0_31, %c0_32, %c0_33] : memref<1x4x8x10xf32, #tpu.memory_space<vmem>>, vector<1x1x8x10xf32>
    %43 = vector.shape_cast %42 : vector<1x1x8x10xf32> to vector<8x10xf32>
    %44 = vector.shape_cast %41 : vector<8x10xf32> to vector<1x1x8x10xf32>
    tpu.vector_store %arg13[%c0_30, %c0_31, %c0_32, %c0_33], %44 {strides = array<i32>} : memref<1x4x8x10xf32, #tpu.memory_space<vmem>>, vector<1x1x8x10xf32>,
    %cst_34 = arith.constant dense<0.000000e+00> : vector<8x8xf32>
    %45 = tpu.matmul %41, %26, %cst_34 {dimension_numbers = #tpu.dot_dimension_numbers<[1], [0], [0], [1], [0, 0, 1, 1], [], []>} : vector<8x10xf32>, vector<10x8xf32>, vector<8x8xf32> -> vector<8x8xf32>
    %46 = vector.extract_strided_slice %16 {offsets = [0, 0], sizes = [8, 32], strides = [1, 1]} : vector<32x32xf32> to vector<8x32xf32>
    %cst_35 = arith.constant dense<0.000000e+00> : vector<8x32xf32>
    %47 = tpu.matmul %45, %46, %cst_35 {dimension_numbers = #tpu.dot_dimension_numbers<[1], [0], [0], [1], [0, 0, 1, 1], [], []>} : vector<8x8xf32>, vector<8x32xf32>, vector<8x32xf32> -> vector<8x32xf32>
    %48 = arith.addf %21, %47 : vector<8x32xf32>
    %49 = vector.extract_strided_slice %6 {offsets = [0, 8], sizes = [8, 8], strides = [1, 1]} : vector<8x32xf32> to vector<8x8xf32>
    %cst_36 = arith.constant 0.353553385 : f32
    %50 = vector.broadcast %cst_36 : f32 to vector<8x8xf32>
    %51 = arith.mulf %49, %50 : vector<8x8xf32>
    %52 = vector.extract_strided_slice %13 {offsets = [0, 8], sizes = [10, 8], strides = [1, 1]} : vector<10x64xf32> to vector<10x8xf32>
    %53 = vector.extract_strided_slice %13 {offsets = [0, 40], sizes = [10, 8], strides = [1, 1]} : vector<10x64xf32> to vector<10x8xf32>
    %cst_37 = arith.constant dense<0.000000e+00> : vector<8x10xf32>
    %54 = tpu.matmul %51, %52, %cst_37 {dimension_numbers = #tpu.dot_dimension_numbers<[1], [1], [0], [0], [0, 0, 1, 0], [], []>} : vector<8x8xf32>, vector<10x8xf32>, vector<8x10xf32> -> vector<8x10xf32>
    %c0_i32_38 = arith.constant 0 : i32
    %55 = vector.broadcast %c0_i32_38 : i32 to vector<8x10xi32>
    %56 = arith.cmpi eq, %15, %55 : vector<8x10xi32>
    %cst_39 = arith.constant -1.000000e+10 : f32
    %57 = vector.broadcast %cst_39 : f32 to vector<8x10xf32>
    %58 = arith.select %56, %57, %54 : vector<8x10xi1>, vector<8x10xf32>
    %cst_40 = arith.constant dense<0xFF800000> : vector<8xf32>
    %59 = vector.multi_reduction <maximumf>, %58, %cst_40 [1] : vector<8x10xf32> to vector<8xf32>
    %60 = vector.shape_cast %59 : vector<8xf32> to vector<8x1xf32>
    %61 = vector.broadcast %60 : vector<8x1xf32> to vector<8x10xf32>
    %62 = arith.subf %58, %61 : vector<8x10xf32>
    %63 = math.exp %62 : vector<8x10xf32>
    %cst_41 = arith.constant dense<0.000000e+00> : vector<8xf32>
    %64 = vector.multi_reduction <add>, %63, %cst_41 [1] : vector<8x10xf32> to vector<8xf32>
    %65 = vector.shape_cast %64 : vector<8xf32> to vector<8x1xf32>
    %66 = tpu.reciprocal %65 {approx = true} : vector<8x1xf32> -> vector<8x1xf32>
    %67 = vector.broadcast %66 : vector<8x1xf32> to vector<8x10xf32>
    %68 = arith.mulf %63, %67 : vector<8x10xf32>
    %c0_42 = arith.constant 0 : index
    %c1 = arith.constant 1 : index
    %c0_43 = arith.constant 0 : index
    %c0_44 = arith.constant 0 : index
    %69 = vector.load %arg13[%c0_42, %c1, %c0_43, %c0_44] : memref<1x4x8x10xf32, #tpu.memory_space<vmem>>, vector<1x1x8x10xf32>
    %70 = vector.shape_cast %69 : vector<1x1x8x10xf32> to vector<8x10xf32>
    %71 = vector.shape_cast %68 : vector<8x10xf32> to vector<1x1x8x10xf32>
    tpu.vector_store %arg13[%c0_42, %c1, %c0_43, %c0_44], %71 {strides = array<i32>} : memref<1x4x8x10xf32, #tpu.memory_space<vmem>>, vector<1x1x8x10xf32>,
    %cst_45 = arith.constant dense<0.000000e+00> : vector<8x8xf32>
    %72 = tpu.matmul %68, %53, %cst_45 {dimension_numbers = #tpu.dot_dimension_numbers<[1], [0], [0], [1], [0, 0, 1, 1], [], []>} : vector<8x10xf32>, vector<10x8xf32>, vector<8x8xf32> -> vector<8x8xf32>
    %73 = vector.extract_strided_slice %16 {offsets = [8, 0], sizes = [8, 32], strides = [1, 1]} : vector<32x32xf32> to vector<8x32xf32>
    %cst_46 = arith.constant dense<0.000000e+00> : vector<8x32xf32>
    %74 = tpu.matmul %72, %73, %cst_46 {dimension_numbers = #tpu.dot_dimension_numbers<[1], [0], [0], [1], [0, 0, 1, 1], [], []>} : vector<8x8xf32>, vector<8x32xf32>, vector<8x32xf32> -> vector<8x32xf32>
    %75 = arith.addf %48, %74 : vector<8x32xf32>
    %76 = vector.extract_strided_slice %6 {offsets = [0, 16], sizes = [8, 8], strides = [1, 1]} : vector<8x32xf32> to vector<8x8xf32>
    %cst_47 = arith.constant 0.353553385 : f32
    %77 = vector.broadcast %cst_47 : f32 to vector<8x8xf32>
    %78 = arith.mulf %76, %77 : vector<8x8xf32>
    %79 = vector.extract_strided_slice %13 {offsets = [0, 16], sizes = [10, 8], strides = [1, 1]} : vector<10x64xf32> to vector<10x8xf32>
    %80 = vector.extract_strided_slice %13 {offsets = [0, 48], sizes = [10, 8], strides = [1, 1]} : vector<10x64xf32> to vector<10x8xf32>
    %cst_48 = arith.constant dense<0.000000e+00> : vector<8x10xf32>
    %81 = tpu.matmul %78, %79, %cst_48 {dimension_numbers = #tpu.dot_dimension_numbers<[1], [1], [0], [0], [0, 0, 1, 0], [], []>} : vector<8x8xf32>, vector<10x8xf32>, vector<8x10xf32> -> vector<8x10xf32>
    %c0_i32_49 = arith.constant 0 : i32
    %82 = vector.broadcast %c0_i32_49 : i32 to vector<8x10xi32>
    %83 = arith.cmpi eq, %15, %82 : vector<8x10xi32>
    %cst_50 = arith.constant -1.000000e+10 : f32
    %84 = vector.broadcast %cst_50 : f32 to vector<8x10xf32>
    %85 = arith.select %83, %84, %81 : vector<8x10xi1>, vector<8x10xf32>
    %cst_51 = arith.constant dense<0xFF800000> : vector<8xf32>
    %86 = vector.multi_reduction <maximumf>, %85, %cst_51 [1] : vector<8x10xf32> to vector<8xf32>
    %87 = vector.shape_cast %86 : vector<8xf32> to vector<8x1xf32>
    %88 = vector.broadcast %87 : vector<8x1xf32> to vector<8x10xf32>
    %89 = arith.subf %85, %88 : vector<8x10xf32>
    %90 = math.exp %89 : vector<8x10xf32>
    %cst_52 = arith.constant dense<0.000000e+00> : vector<8xf32>
    %91 = vector.multi_reduction <add>, %90, %cst_52 [1] : vector<8x10xf32> to vector<8xf32>
    %92 = vector.shape_cast %91 : vector<8xf32> to vector<8x1xf32>
    %93 = tpu.reciprocal %92 {approx = true} : vector<8x1xf32> -> vector<8x1xf32>
    %94 = vector.broadcast %93 : vector<8x1xf32> to vector<8x10xf32>
    %95 = arith.mulf %90, %94 : vector<8x10xf32>
    %c0_53 = arith.constant 0 : index
    %c2 = arith.constant 2 : index
    %c0_54 = arith.constant 0 : index
    %c0_55 = arith.constant 0 : index
    %96 = vector.load %arg13[%c0_53, %c2, %c0_54, %c0_55] : memref<1x4x8x10xf32, #tpu.memory_space<vmem>>, vector<1x1x8x10xf32>
    %97 = vector.shape_cast %96 : vector<1x1x8x10xf32> to vector<8x10xf32>
    %98 = vector.shape_cast %95 : vector<8x10xf32> to vector<1x1x8x10xf32>
    tpu.vector_store %arg13[%c0_53, %c2, %c0_54, %c0_55], %98 {strides = array<i32>} : memref<1x4x8x10xf32, #tpu.memory_space<vmem>>, vector<1x1x8x10xf32>,
    %cst_56 = arith.constant dense<0.000000e+00> : vector<8x8xf32>
    %99 = tpu.matmul %95, %80, %cst_56 {dimension_numbers = #tpu.dot_dimension_numbers<[1], [0], [0], [1], [0, 0, 1, 1], [], []>} : vector<8x10xf32>, vector<10x8xf32>, vector<8x8xf32> -> vector<8x8xf32>
    %100 = vector.extract_strided_slice %16 {offsets = [16, 0], sizes = [8, 32], strides = [1, 1]} : vector<32x32xf32> to vector<8x32xf32>
    %cst_57 = arith.constant dense<0.000000e+00> : vector<8x32xf32>
    %101 = tpu.matmul %99, %100, %cst_57 {dimension_numbers = #tpu.dot_dimension_numbers<[1], [0], [0], [1], [0, 0, 1, 1], [], []>} : vector<8x8xf32>, vector<8x32xf32>, vector<8x32xf32> -> vector<8x32xf32>
    %102 = arith.addf %75, %101 : vector<8x32xf32>
    %103 = vector.extract_strided_slice %6 {offsets = [0, 24], sizes = [8, 8], strides = [1, 1]} : vector<8x32xf32> to vector<8x8xf32>
    %cst_58 = arith.constant 0.353553385 : f32
    %104 = vector.broadcast %cst_58 : f32 to vector<8x8xf32>
    %105 = arith.mulf %103, %104 : vector<8x8xf32>
    %106 = vector.extract_strided_slice %13 {offsets = [0, 24], sizes = [10, 8], strides = [1, 1]} : vector<10x64xf32> to vector<10x8xf32>
    %107 = vector.extract_strided_slice %13 {offsets = [0, 56], sizes = [10, 8], strides = [1, 1]} : vector<10x64xf32> to vector<10x8xf32>
    %cst_59 = arith.constant dense<0.000000e+00> : vector<8x10xf32>
    %108 = tpu.matmul %105, %106, %cst_59 {dimension_numbers = #tpu.dot_dimension_numbers<[1], [1], [0], [0], [0, 0, 1, 0], [], []>} : vector<8x8xf32>, vector<10x8xf32>, vector<8x10xf32> -> vector<8x10xf32>
    %c0_i32_60 = arith.constant 0 : i32
    %109 = vector.broadcast %c0_i32_60 : i32 to vector<8x10xi32>
    %110 = arith.cmpi eq, %15, %109 : vector<8x10xi32>
    %cst_61 = arith.constant -1.000000e+10 : f32
    %111 = vector.broadcast %cst_61 : f32 to vector<8x10xf32>
    %112 = arith.select %110, %111, %108 : vector<8x10xi1>, vector<8x10xf32>
    %cst_62 = arith.constant dense<0xFF800000> : vector<8xf32>
    %113 = vector.multi_reduction <maximumf>, %112, %cst_62 [1] : vector<8x10xf32> to vector<8xf32>
    %114 = vector.shape_cast %113 : vector<8xf32> to vector<8x1xf32>
    %115 = vector.broadcast %114 : vector<8x1xf32> to vector<8x10xf32>
    %116 = arith.subf %112, %115 : vector<8x10xf32>
    %117 = math.exp %116 : vector<8x10xf32>
    %cst_63 = arith.constant dense<0.000000e+00> : vector<8xf32>
    %118 = vector.multi_reduction <add>, %117, %cst_63 [1] : vector<8x10xf32> to vector<8xf32>
    %119 = vector.shape_cast %118 : vector<8xf32> to vector<8x1xf32>
    %120 = tpu.reciprocal %119 {approx = true} : vector<8x1xf32> -> vector<8x1xf32>
    %121 = vector.broadcast %120 : vector<8x1xf32> to vector<8x10xf32>
    %122 = arith.mulf %117, %121 : vector<8x10xf32>
    %c0_64 = arith.constant 0 : index
    %c3 = arith.constant 3 : index
    %c0_65 = arith.constant 0 : index
    %c0_66 = arith.constant 0 : index
    %123 = vector.load %arg13[%c0_64, %c3, %c0_65, %c0_66] : memref<1x4x8x10xf32, #tpu.memory_space<vmem>>, vector<1x1x8x10xf32>
    %124 = vector.shape_cast %123 : vector<1x1x8x10xf32> to vector<8x10xf32>
    %125 = vector.shape_cast %122 : vector<8x10xf32> to vector<1x1x8x10xf32>
    tpu.vector_store %arg13[%c0_64, %c3, %c0_65, %c0_66], %125 {strides = array<i32>} : memref<1x4x8x10xf32, #tpu.memory_space<vmem>>, vector<1x1x8x10xf32>,
    %cst_67 = arith.constant dense<0.000000e+00> : vector<8x8xf32>
    %126 = tpu.matmul %122, %107, %cst_67 {dimension_numbers = #tpu.dot_dimension_numbers<[1], [0], [0], [1], [0, 0, 1, 1], [], []>} : vector<8x10xf32>, vector<10x8xf32>, vector<8x8xf32> -> vector<8x8xf32>
    %127 = vector.extract_strided_slice %16 {offsets = [24, 0], sizes = [8, 32], strides = [1, 1]} : vector<32x32xf32> to vector<8x32xf32>
    %cst_68 = arith.constant dense<0.000000e+00> : vector<8x32xf32>
    %128 = tpu.matmul %126, %127, %cst_68 {dimension_numbers = #tpu.dot_dimension_numbers<[1], [0], [0], [1], [0, 0, 1, 1], [], []>} : vector<8x8xf32>, vector<8x32xf32>, vector<8x32xf32> -> vector<8x32xf32>
    %129 = arith.addf %102, %128 : vector<8x32xf32>
    %cst_69 = arith.constant dense<0.000000e+00> : vector<8xf32>
    %130 = vector.multi_reduction <add>, %129, %cst_69 [1] : vector<8x32xf32> to vector<8xf32>
    %131 = vector.shape_cast %130 : vector<8xf32> to vector<8x1xf32>
    %cst_70 = arith.constant 3.200000e+01 : f32
    %132 = vector.broadcast %cst_70 : f32 to vector<8x1xf32>
    %133 = arith.divf %131, %132 : vector<8x1xf32>
    %134 = vector.broadcast %133 : vector<8x1xf32> to vector<8x32xf32>
    %135 = arith.subf %129, %134 : vector<8x32xf32>
    %136 = arith.mulf %135, %135 : vector<8x32xf32>
    %cst_71 = arith.constant dense<0.000000e+00> : vector<8xf32>
    %137 = vector.multi_reduction <add>, %136, %cst_71 [1] : vector<8x32xf32> to vector<8xf32>
    %138 = vector.shape_cast %137 : vector<8xf32> to vector<8x1xf32>
    %cst_72 = arith.constant 3.200000e+01 : f32
    %139 = vector.broadcast %cst_72 : f32 to vector<8x1xf32>
    %140 = arith.divf %138, %139 : vector<8x1xf32>
    %141 = vector.broadcast %133 : vector<8x1xf32> to vector<8x32xf32>
    %142 = arith.subf %129, %141 : vector<8x32xf32>
    %cst_73 = arith.constant 9.99999974E-6 : f32
    %143 = vector.broadcast %cst_73 : f32 to vector<8x1xf32>
    %144 = arith.addf %140, %143 : vector<8x1xf32>
    %145 = math.rsqrt %144 : vector<8x1xf32>
    %146 = vector.broadcast %145 : vector<8x1xf32> to vector<8x32xf32>
    %147 = arith.mulf %142, %146 : vector<8x32xf32>
    %148 = vector.broadcast %18 : vector<1x32xf32> to vector<8x32xf32>
    %149 = arith.mulf %147, %148 : vector<8x32xf32>
    %150 = vector.broadcast %19 : vector<1x32xf32> to vector<8x32xf32>
    %151 = arith.addf %149, %150 : vector<8x32xf32>
    %c0_74 = arith.constant 0 : index
    %c0_75 = arith.constant 0 : index
    %c0_76 = arith.constant 0 : index
    %152 = vector.load %arg12[%c0_74, %c0_75, %c0_76] : memref<1x8x32xf32, #tpu.memory_space<vmem>>, vector<1x8x32xf32>
    %153 = vector.shape_cast %152 : vector<1x8x32xf32> to vector<8x32xf32>
    %154 = vector.shape_cast %151 : vector<8x32xf32> to vector<1x8x32xf32>
    tpu.vector_store %arg12[%c0_74, %c0_75, %c0_76], %154 {strides = array<i32>} : memref<1x8x32xf32, #tpu.memory_space<vmem>>, vector<1x8x32xf32>,
    return
  }
  func.func @transform_0(%arg0: i32) -> (i32, i32, i32) {
    %c0_i32 = arith.constant 0 : i32
    %c0_i32_0 = arith.constant 0 : i32
    %c0_i32_1 = arith.constant 0 : i32
    return %arg0, %c0_i32, %c0_i32_0 : i32, i32, i32
  }
  func.func @transform_1(%arg0: i32) -> (i32, i32, i32) {
    %c0_i32 = arith.constant 0 : i32
    %c0_i32_0 = arith.constant 0 : i32
    %c0_i32_1 = arith.constant 0 : i32
    return %arg0, %c0_i32, %c0_i32_0 : i32, i32, i32
  }
  func.func @transform_2(%arg0: i32) -> (i32, i32, i32) {
    %c0_i32 = arith.constant 0 : i32
    %c0_i32_0 = arith.constant 0 : i32
    %c0_i32_1 = arith.constant 0 : i32
    return %arg0, %c0_i32, %c0_i32_0 : i32, i32, i32
  }
  func.func @transform_3(%arg0: i32) -> (i32, i32) {
    %c0_i32 = arith.constant 0 : i32
    %c0_i32_0 = arith.constant 0 : i32
    %c0_i32_1 = arith.constant 0 : i32
    return %c0_i32, %c0_i32_0 : i32, i32
  }
  func.func @transform_4(%arg0: i32) -> (i32, i32) {
    %c0_i32 = arith.constant 0 : i32
    %c0_i32_0 = arith.constant 0 : i32
    %c0_i32_1 = arith.constant 0 : i32
    return %c0_i32, %c0_i32_0 : i32, i32
  }
  func.func @transform_5(%arg0: i32) -> (i32, i32) {
    %c0_i32 = arith.constant 0 : i32
    %c0_i32_0 = arith.constant 0 : i32
    %c0_i32_1 = arith.constant 0 : i32
    return %c0_i32, %c0_i32_0 : i32, i32
  }
  func.func @transform_6(%arg0: i32) -> (i32, i32) {
    %c0_i32 = arith.constant 0 : i32
    %c0_i32_0 = arith.constant 0 : i32
    %c0_i32_1 = arith.constant 0 : i32
    return %c0_i32, %c0_i32_0 : i32, i32
  }
  func.func @transform_7(%arg0: i32) -> (i32, i32) {
    %c0_i32 = arith.constant 0 : i32
    %c0_i32_0 = arith.constant 0 : i32
    %c0_i32_1 = arith.constant 0 : i32
    return %c0_i32, %c0_i32_0 : i32, i32
  }
  func.func @transform_8(%arg0: i32) -> (i32, i32) {
    %c0_i32 = arith.constant 0 : i32
    %c0_i32_0 = arith.constant 0 : i32
    %c0_i32_1 = arith.constant 0 : i32
    return %c0_i32, %c0_i32_0 : i32, i32
  }
  func.func @transform_9(%arg0: i32) -> (i32, i32) {
    %c0_i32 = arith.constant 0 : i32
    %c0_i32_0 = arith.constant 0 : i32
    %c0_i32_1 = arith.constant 0 : i32
    return %c0_i32, %c0_i32_0 : i32, i32
  }
  func.func @transform_10(%arg0: i32) -> (i32, i32) {
    %c0_i32 = arith.constant 0 : i32
    %c0_i32_0 = arith.constant 0 : i32
    %c0_i32_1 = arith.constant 0 : i32
    return %c0_i32, %c0_i32_0 : i32, i32
  }
  func.func @transform_11(%arg0: i32) -> (i32, i32, i32) {
    %c0_i32 = arith.constant 0 : i32
    %c0_i32_0 = arith.constant 0 : i32
    %c0_i32_1 = arith.constant 0 : i32
    return %arg0, %c0_i32, %c0_i32_0 : i32, i32, i32
  }
  func.func @transform_12(%arg0: i32) -> (i32, i32, i32, i32) {
    %c0_i32 = arith.constant 0 : i32
    %c0_i32_0 = arith.constant 0 : i32
    %c0_i32_1 = arith.constant 0 : i32
    %c0_i32_2 = arith.constant 0 : i32
    return %arg0, %c0_i32, %c0_i32_0, %c0_i32_1 : i32, i32, i32, i32
  }
}

module attributes {stable_mosaic.version = 11 : i64} {
  func.func @_out_proj_kernel(%arg0: i32, %arg1: memref<1x8x32xf32, #tpu.memory_space<vmem>>, %arg2: memref<32x128xf32, #tpu.memory_space<vmem>>, %arg3: memref<1x128xf32, #tpu.memory_space<vmem>>, %arg4: memref<1x8x128xf32, #tpu.memory_space<vmem>>) attributes {dimension_semantics = [#tpu.dimension_semantics<parallel>], iteration_bounds = array<i64: 2>, scalar_prefetch = 0 : i64, scratch_operands = 0 : i64, tpu.core_type = #tpu.core_type<tc>, window_params = [{transform_indices = @transform_0, window_bounds = array<i64: 1, 8, 32>}, {pipeline_mode = #tpu.pipeline_mode<synchronous>, transform_indices = @transform_1, window_bounds = array<i64: 32, 128>}, {pipeline_mode = #tpu.pipeline_mode<synchronous>, transform_indices = @transform_2, window_bounds = array<i64: 1, 128>}, {transform_indices = @transform_3, window_bounds = array<i64: 1, 8, 128>}]} {
    %c0 = arith.constant 0 : index
    %c0_0 = arith.constant 0 : index
    %c0_1 = arith.constant 0 : index
    %0 = vector.load %arg1[%c0, %c0_0, %c0_1] : memref<1x8x32xf32, #tpu.memory_space<vmem>>, vector<1x8x32xf32>
    %1 = vector.shape_cast %0 : vector<1x8x32xf32> to vector<8x32xf32>
    %c0_2 = arith.constant 0 : index
    %c0_3 = arith.constant 0 : index
    %2 = vector.load %arg2[%c0_2, %c0_3] : memref<32x128xf32, #tpu.memory_space<vmem>>, vector<32x128xf32>
    %cst = arith.constant dense<0.000000e+00> : vector<8x128xf32>
    %3 = tpu.matmul %1, %2, %cst {dimension_numbers = #tpu.dot_dimension_numbers<[1], [0], [0], [1], [0, 0, 1, 1], [], []>} : vector<8x32xf32>, vector<32x128xf32>, vector<8x128xf32> -> vector<8x128xf32>
    %c0_4 = arith.constant 0 : index
    %c0_5 = arith.constant 0 : index
    %4 = vector.load %arg3[%c0_4, %c0_5] : memref<1x128xf32, #tpu.memory_space<vmem>>, vector<1x128xf32>
    %5 = vector.broadcast %4 : vector<1x128xf32> to vector<8x128xf32>
    %6 = arith.addf %3, %5 : vector<8x128xf32>
    %c0_6 = arith.constant 0 : index
    %c0_7 = arith.constant 0 : index
    %c0_8 = arith.constant 0 : index
    %7 = vector.load %arg4[%c0_6, %c0_7, %c0_8] : memref<1x8x128xf32, #tpu.memory_space<vmem>>, vector<1x8x128xf32>
    %8 = vector.shape_cast %7 : vector<1x8x128xf32> to vector<8x128xf32>
    %9 = vector.shape_cast %6 : vector<8x128xf32> to vector<1x8x128xf32>
    tpu.vector_store %arg4[%c0_6, %c0_7, %c0_8], %9 {strides = array<i32>} : memref<1x8x128xf32, #tpu.memory_space<vmem>>, vector<1x8x128xf32>,
    return
  }
  func.func @transform_0(%arg0: i32) -> (i32, i32, i32) {
    %c0_i32 = arith.constant 0 : i32
    %c0_i32_0 = arith.constant 0 : i32
    %c0_i32_1 = arith.constant 0 : i32
    return %arg0, %c0_i32, %c0_i32_0 : i32, i32, i32
  }
  func.func @transform_1(%arg0: i32) -> (i32, i32) {
    %c0_i32 = arith.constant 0 : i32
    %c0_i32_0 = arith.constant 0 : i32
    %c0_i32_1 = arith.constant 0 : i32
    return %c0_i32, %c0_i32_0 : i32, i32
  }
  func.func @transform_2(%arg0: i32) -> (i32, i32) {
    %c0_i32 = arith.constant 0 : i32
    %c0_i32_0 = arith.constant 0 : i32
    %c0_i32_1 = arith.constant 0 : i32
    return %c0_i32, %c0_i32_0 : i32, i32
  }
  func.func @transform_3(%arg0: i32) -> (i32, i32, i32) {
    %c0_i32 = arith.constant 0 : i32
    %c0_i32_0 = arith.constant 0 : i32
    %c0_i32_1 = arith.constant 0 : i32
    return %arg0, %c0_i32, %c0_i32_0 : i32, i32, i32
  }
}

</mosaic_0001>

<bundles_post_ra>
// kernel: decoder_forward.9
= control target key start
LH: loop header
LB: loop body
LE: loop exit
PB: predicated region body
PF: predicated region fallthrough
CT: control target
= control target key end

     0   :  { %s516_s24 = smov 0   ;;  %s592_s0 = inlined_call_operand.vmem [shape: f32[2,8,32], index: 0, kind: input, shape index: {}]   ;;  %s593_s1 = inlined_call_operand.vmem [shape: f32[32,64], index: 1, kind: input, shape index: {}]   ;;  %s594_s2 = inlined_call_operand.vmem [shape: f32[1,64], index: 2, kind: input, shape index: {}]   ;;  %s595_s3 = inlined_call_operand.vmem [shape: f32[64,32], index: 3, kind: input, shape index: {}]   ;;  %s596_s4 = inlined_call_operand.vmem [shape: f32[1,32], index: 4, kind: input, shape index: {}]   ;;  %s597_s5 = inlined_call_operand.vmem [shape: f32[1,32], index: 5, kind: input, shape index: {}]   ;;  %s598_s6 = inlined_call_operand.vmem [shape: f32[1,32], index: 6, kind: input, shape index: {}]   ;;  %s599_s7 = inlined_call_operand.vmem [shape: f32[2,8,32], index: 7, kind: output, shape index: {}]  }
   0x1 LB: > { %s439_s25 = sadd.s32 4294967295, %s473_s24   ;;  %p443_p0 = scmp.ge.s32.totalorder %s473_s24, 1  ;;  %s473_s24 = sphi %s516_s24, %s17_s24  }
   0x2   : > { %p236_p1 = scmp.lt.s32.totalorder %s473_s24, 3 }
   0x4   : > { %p237_p2 = pnand %p443_p0, %p236_p1 }
   0x5   : > { %p266_p3 = scmp.lt.s32.totalorder (!%p237_p2), %s439_s25, 1 }
   0x6   : > { %240 = sbr.rel (%p237_p2) target bundleno = 548 (0x224), region = 48 }
   0xb   : > { %v278_v0 = vld [vmem:[%s593_s1 + $0x18] sm:$0xff]  ;;  %v277_v1 = vld [vmem:[%s593_s1 + $0x10] sm:$0xff]  ;;  %v276_v4 = vld [vmem:[%s593_s1 + $0x8] sm:$0xff]  ;;  %s601_s25 = smov (!%p266_p3, %s439_s25), 1  ;;  %vm283_vm0 = vcmask 261120   ;;  %vm316_vm1 = vcmask 523264  }
   0xc   : > { %299 = vmatpush.msra.mxu0 %v278_v0  ;;  %v315_v2 = vld [vmem:[%s595_s3 + $0x38] sm:$0xff]  ;;  %v314_v3 = vld [vmem:[%s595_s3 + $0x30] sm:$0xff]  ;;  %v313_v5 = vld [vmem:[%s595_s3 + $0x28] sm:$0xff]  ;;  %s444_s17 = sshll.u32 %s601_s25, 3  ;;  %v475_v22 = vmov 32.0  }
   0xd   : > { %328 = vmatpush.msra.mxu1 %v315_v2  ;;  %v275_v6 = vld [vmem:[%s593_s1] sm:$0xff]  ;;  %s269_s20 = scalar_lea.vmem %s592_s0, %s444_s17  ;;  %v311_v9 = vld [vmem:[%s595_s3 + $0x18] sm:$0xff]  ;;  %v310_v10 = vld [vmem:[%s595_s3 + $0x10] sm:$0xff]  ;;  %463 = vrcp.f32 %v475_v22  ;;  %s273_s21 = scalar_lea.vmem %s599_s7, %s444_s17 }
   0xe   : > { %300 = vmatpush.msra.mxu0 %v277_v1  ;;  %v312_v7 = vld [vmem:[%s595_s3 + $0x20] sm:$0xff]  ;;  %v309_v11 = vld [vmem:[%s595_s3 + $0x8] sm:$0xff] }
   0xf   : > { %329 = vmatpush.msra.mxu1 %v314_v3  ;;  %v274_v8 = vld [vmem:[%s269_s20] sm:$0xff] }
  0x10   : > { %301 = vmatpush.msra.mxu0 %v276_v4  ;;  %v308_v12 = vld [vmem:[%s595_s3] sm:$0xff] }
  0x11   : > { %330 = vmatpush.msra.mxu1 %v313_v5  ;;  %v459_v13 = vld [vmem:[%s594_s2] ss:$0 sm:$0xff] }
  0x12   : > { %302 = vmatpush.msra.mxu0 %v275_v6  ;;  %v460_v17 = vld [vmem:[%s596_s4] ss:$0 sm:$0xff] }
  0x13   : > { %446 = vmatmul.msk.f32.vlgmr.msra.gmra.mxu0 %vm283_vm0, %v274_v8  ;;  %331 = vmatpush.msra.mxu1 %v312_v7  ;;  %v464_v23 = vpop.eup %463  ;;  %v461_v43 = vld [vmem:[%s597_s5] ss:$0 sm:$0xff] }
  0x14   : > { %v350_v24 = vmul.f32 32.0, %v464_v23  ;;  %vm354_vm2 = vweird.f32 %v464_v23  ;;  %v462_v45 = vld [vmem:[%s598_s6] ss:$0 sm:$0xff] }
  0x15   : > { %332 = vmatpush.msra.mxu1 %v311_v9 }
  0x16   : > { %v351_v25 = vsub.f32 1.0, %v350_v24 }
  0x17   : > { %333 = vmatpush.msra.mxu1 %v310_v10 }
  0x18   : > { %v352_v26 = vmul.f32 %v464_v23, %v351_v25 }
  0x19   : > { %334 = vmatpush.msra.mxu1 %v309_v11 }
  0x1a   : > { %v353_v27 = vadd.f32 %v464_v23, %v352_v26 }
  0x1b   : > { %335 = vmatpush.msra.mxu1 %v308_v12 }
  0x1c   : > { %v355_v28 = vsel %vm354_vm2, %v464_v23, %v353_v27 }
  0x90   : > { %v304_v14 = vpop.f32.mrf.mxu0 }
  0x91   : > { %v305_v15 = vadd.f32 %v459_v13, %v304_v14 }
  0x93   : > { %v307_v16 = vmax.f32 %v305_v15, 0.0 }
  0x95   : > { %447 = vmatmul.msk.f32.vlgmr.msra.gmra.mxu1 %vm316_vm1, %v307_v16 }
 0x112   : > { %v337_v18 = vpop.f32.mrf.mxu1 }
 0x113   : > { %v340_v19 = vadd.f32 %v337_v18, %v274_v8 }
 0x115   : > { %v345_v20 = vadd.f32 %v460_v17, %v340_v19 }
 0x117   : > { %v346_v21 = vsel %vm283_vm0, %v345_v20, 0.0 }
 0x118   : > { %347 = vadd.xlane.f32.xlu0 %v346_v21 }
 0x18b   : > { %v348_v29 = vpop.xlane.xlu0 %347 }
 0x18c   : > { %v356_v30 = vmul.f32 %v355_v28, %v348_v29 }
 0x18e   : > { %v357_v31 = vsub.f32 %v345_v20, %v356_v30 }
 0x190   : > { %v358_v32 = vmul.f32 %v357_v31, %v357_v31 }
 0x192   : > { %v359_v33 = vsel %vm283_vm0, %v358_v32, 0.0 }
 0x193   : > { %360 = vadd.xlane.f32.xlu0 %v359_v33 }
 0x206   : > { %v361_v34 = vpop.xlane.xlu0 %360 }
 0x207   : > { %v362_v35 = vmul.f32 %v361_v34, %v355_v28 }
 0x209   : > { %v363_v36 = vadd.f32 1e-05, %v362_v35 }
 0x20b   : > { %465 = vrsqrt.f32 %v363_v36  ;;  %vm370_vm4 = vweird.f32 %v363_v36 }
 0x211   : > { %v466_v37 = vpop.eup %465 }
 0x212   : > { %v365_v38 = vmul.f32 %v466_v37, %v363_v36  ;;  %vm371_vm3 = vweird.f32 %v466_v37 }
 0x213   : > { %vm372_vm5 = vmor %vm370_vm4, %vm371_vm3 }
 0x214   : > { %v366_v39 = vmul.f32 %v466_v37, %v365_v38 }
 0x216   : > { %v367_v40 = vmul.f32 0.5, %v366_v39 }
 0x218   : > { %v368_v41 = vsub.f32 1.5, %v367_v40 }
 0x21a   : > { %v369_v42 = vmul.f32 %v466_v37, %v368_v41 }
 0x21c   : > { %v373_v44 = vsel %vm372_vm5, %v466_v37, %v369_v42 }
 0x21d   : > { %v374_v46 = vmul.f32 %v373_v44, %v357_v31 }
 0x21f   : > { %v379_v47 = vmul.f32 %v461_v43, %v374_v46 }
 0x221   : > { %v384_v48 = vadd.f32 %v462_v45, %v379_v47 }
 0x223   : > { %385 = vst.msk [vmem:[%s273_s21] sm:$0xff] %vm283_vm0, %v384_v48 }
 0x224 PF: > { %s17_s24 = sadd.s32 1, %s473_s24  }
 0x225   : > { %p14_p4 = scmp.ge.s32.totalorder %s17_s24, 4  }
 0x227   :  { %16 = sbr.rel (!%p14_p4) target bundleno = 1 (0x1), region = 78 }

// kernel: decoder_forward.7
= control target key start
LH: loop header
LB: loop body
LE: loop exit
PB: predicated region body
PF: predicated region fallthrough
CT: control target
= control target key end

     0   :  { %s965_s27 = smov 0   ;;  %s1080_s0 = inlined_call_operand.vmem [shape: f32[2,8,32], index: 0, kind: input, shape index: {}]   ;;  %s1081_s1 = inlined_call_operand.vmem [shape: s32[2,8,8], index: 1, kind: input, shape index: {}]   ;;  %s1082_s2 = inlined_call_operand.vmem [shape: f32[32,96], index: 2, kind: input, shape index: {}]   ;;  %s1083_s3 = inlined_call_operand.vmem [shape: f32[1,96], index: 3, kind: input, shape index: {}]   ;;  %s1084_s4 = inlined_call_operand.vmem [shape: f32[32,32], index: 4, kind: input, shape index: {}]   ;;  %s1085_s5 = inlined_call_operand.vmem [shape: f32[1,32], index: 5, kind: input, shape index: {}]   ;;  %s1086_s6 = inlined_call_operand.vmem [shape: f32[1,32], index: 6, kind: input, shape index: {}]   ;;  %s1087_s7 = inlined_call_operand.vmem [shape: f32[1,32], index: 7, kind: input, shape index: {}]   ;;  %s1088_s8 = inlined_call_operand.vmem [shape: f32[2,8,32], index: 8, kind: output, shape index: {}]  }
   0x1 LB: > { %s829_s28 = sadd.s32 4294967295, %s906_s27   ;;  %p833_p0 = scmp.ge.s32.totalorder %s906_s27, 1  ;;  %s906_s27 = sphi %s965_s27, %s18_s27  }
   0x2   : > { %p270_p1 = scmp.lt.s32.totalorder %s906_s27, 3 }
   0x4   : > { %p271_p2 = pnand %p833_p0, %p270_p1 }
   0x5   : > { %p306_p3 = scmp.lt.s32.totalorder (!%p271_p2), %s829_s28, 1  ;;  %s908_s21 = smov (!%p271_p2), 88  }
   0x6   : > { %274 = sbr.rel (%p271_p2) target bundleno = 2107 (0x83b), region = 52  ;;  %s909_s22 = smov (!%p271_p2), 96  }
   0x7   : > { %s910_s23 = smov (!%p271_p2), 120   ;;  %s912_s29 = smov (!%p271_p2), 112  }
   0x8   : > { %s913_s30 = smov (!%p271_p2), 104   ;;  %s914_s11 = smov (!%p271_p2), 64  }
   0x9   : > { %s915_s12 = smov (!%p271_p2), 80   ;;  %s916_s13 = smov (!%p271_p2), 72  }
   0xa   : > { %s917_s17 = smov (!%p271_p2), 48  }
   0xb   : > { %v322_v0 = vld [vmem:[%s1082_s2 + $0x18] sm:$0xff]  ;;  %v321_v1 = vld [vmem:[%s1082_s2 + $0x10] sm:$0xff]  ;;  %v320_v2 = vld [vmem:[%s1082_s2 + $0x8] sm:$0xff]  ;;  %s1090_s28 = smov (!%p306_p3, %s829_s28), 1  ;;  %vm327_vm0 = vcmask 261120   ;;  %vm367_vm1 = vcmask 64512  }
   0xc   : > { %343 = vmatpush.msra.mxu0 %v322_v0  ;;  %v319_v3 = vld [vmem:[%s1082_s2] sm:$0xff]  ;;  %s985_s15 = sshll.u32 %s1090_s28, 3  ;;  %s911_s28 = smov 56   ;;  %v353_v38 = vld [vmem:[%s1084_s4 + $0x8] sm:$0xff] }
   0xd   : > { %s309_s18 = scalar_lea.vmem %s1080_s0, %s985_s15  ;;  %v876_v5 = vld [vmem:[%s1083_s3] ss:$0 sm:$0xff]  ;;  %s313_s26 = scalar_lea.vmem %s1081_s1, %s985_s15 }
   0xe   : > { %344 = vmatpush.msra.mxu0 %v321_v1  ;;  %v991_v4 = vld [vmem:[%s309_s18] sm:$0xff]  ;;  %s918_s18 = smov 40   ;;  %s317_s10 = scalar_lea.vmem %s1088_s8, %s985_s15 }
   0xf   : > { %v1009_v10 = vld [vmem:[%s313_s26] sm:$0xff] }
  0x10   : > { %345 = vmatpush.msra.mxu0 %v320_v2  ;;  %vm393_vm2 = vcmp.eq.s32.totalorder %v1009_v10, 0  ;;  %v352_v14 = vld [vmem:[%s1084_s4] sm:$0xff] }
  0x11   : > { %450 = vmatpush.msra.mxu3 %v352_v14 }
  0x12   : > { %346 = vmatpush.msra.mxu0 %v319_v3  ;;  %v354_v3 = vld [vmem:[%s1084_s4 + $0x10] sm:$0xff] }
  0x13   : > { %837 = vmatmul.msk.f32.vlgmr.msra.gmra.mxu0 %vm327_vm0, %v991_v4 }
  0x90   : > { %v348_v6 = vpop.f32.mrf.mxu0 }
  0x91   : > { %v998_v7 = vadd.f32 %v876_v5, %v348_v6 }
  0x93   : > { %458 = vrot.lane.b32.xlu2 %v998_v7, %s908_s21  ;;  %365 = vrot.lane.b32.xlu0 %v998_v7, %s909_s22  ;;  %v363_v8 = vmul.f32 0.35355338, %v998_v7 }
  0x9b   : > { %456 = vrot.lane.b32.xlu2 %v363_v8, %s910_s23 }
  0xed   : > { %v459_v23 = vpop.permute.xlu2 %458 }
  0xf5   : > { %v457_v26 = vpop.permute.xlu2 %456 }
 0x105   : > { %v366_v9 = vpop.permute.xlu0 %365 }
 0x106   : > { %838 = vmatpush.xpose.msk.msra.mxu1 %vm367_vm1, %v366_v9 }
 0x109   : > { %839 = vmatmul.msk.f32.vlgmr.msra.gmra.mxu1 %vm367_vm1, %v363_v8 }
 0x10a   : > { %540 = vmatpush.msrb.mxu1 %v353_v38 }
 0x186   : > { %v390_v11 = vpop.f32.mrf.mxu1 }
 0x187   : > { %v394_v12 = vsel %vm393_vm2, -1e+10, %v390_v11 }
 0x188   : > { %v395_v13 = vsel %vm367_vm1, %v394_v12, -inf }
 0x189   : > { %396 = vmax.xlane.f32.xlu0 %v395_v13 }
 0x19d   : > { %496 = vrot.lane.b32.xlu0 %v998_v7, %s911_s28 }
 0x1a5   : > { %546 = vrot.lane.b32.xlu0 %v363_v8, %s912_s29 }
 0x1ad   : > { %636 = vrot.lane.b32.xlu0 %v363_v8, %s913_s30 }
 0x1fc   : > { %v397_v15 = vpop.xlane.xlu0 %396 }
 0x1fd   : > { %v398_v16 = vsub.f32 %v394_v12, %v397_v15  ;;  %v877_v12 = vld [vmem:[%s1085_s5] ss:$0 sm:$0xff] }
 0x1fe   : > { %v362_v13 = vadd.f32 %v877_v12, %v991_v4 }
 0x1ff   : > { %v399_v17 = vmul.f32 1.442695, %v398_v16 }
 0x201   : > { %880 = vpow2.f32 %v399_v17 }
 0x207   : > { %v881_v18 = vpop.eup %880 }
 0x208   : > { %v401_v19 = vsel %vm367_vm1, %v881_v18, 0.0 }
 0x209   : > { %402 = vadd.xlane.f32.xlu1 %v401_v19 }
 0x20f   : > { %v497_v20 = vpop.permute.xlu0 %496 }
 0x210   : > { %517 = vmatpush.msrb.mxu3 %v497_v20 }
 0x217   : > { %v547_v36 = vpop.permute.xlu0 %546 }
 0x21f   : > { %v637_v53 = vpop.permute.xlu0 %636 }
 0x222   : > { %406 = vrot.lane.b32.xlu1 %v998_v7, %s914_s11 }
 0x27c   : > { %v403_v21 = vpop.xlane.xlu1 %402 }
 0x27d   : > { %882 = vrcp.f32 %v403_v21  ;;  %v919_v21 = vmov 32.0  }
 0x283   : > { %v883_v22 = vpop.eup %882 }
 0x284   : > { %v405_v25 = vmul.f32 %v883_v22, %v881_v18 }
 0x294   : > { %v407_v24 = vpop.permute.xlu1 %406 }
 0x295   : > { %427 = vmatpush.msra.mxu2 %v407_v24 }
 0x296   : > { %840 = vmatmul.msk.f32.vlgmr.msra.gmra.mxu2 %vm367_vm1, %v405_v25 }
 0x297   : > { %842 = vmatpush.xpose.msk.msrb.mxu2 %vm367_vm1, %v459_v23 }
 0x29e   : > { %843 = vmatmul.msk.f32.vlgmr.msrb.gmra.mxu2 %vm367_vm1, %v457_v26 }
 0x319   : > { %v429_v27 = vpop.f32.mrf.mxu2 }
 0x31a   : > { %841 = vmatmul.msk.f32.vlgmr.msra.gmra.mxu3 %vm367_vm1, %v429_v27 }
 0x31b   : > { %630 = vmatpush.msra.mxu3 %v354_v3 }
 0x321   : > { %v481_v28 = vpop.f32.mrf.mxu2 }
 0x322   : > { %v484_v29 = vsel %vm393_vm2, -1e+10, %v481_v28 }
 0x323   : > { %v485_v30 = vsel %vm367_vm1, %v484_v29, -inf }
 0x324   : > { %486 = vmax.xlane.f32.xlu2 %v485_v30 }
 0x33c   : > { %548 = vrot.lane.b32.xlu2 %v998_v7, %s915_s12 }
 0x397   : > { %v487_v31 = vpop.xlane.xlu2 %486 }
 0x398   : > { %v488_v32 = vsub.f32 %v484_v29, %v487_v31 }
 0x39a   : > { %v489_v33 = vmul.f32 1.442695, %v488_v32 }
 0x39c   : > { %884 = vpow2.f32 %v489_v33 }
 0x39d   : > { %v452_v49 = vpop.f32.mrf.mxu3 }
 0x39e   : > { %v455_v14 = vadd.f32 %v452_v49, %v362_v13 }
 0x39f   : > { %v549_v34 = vpop.permute.xlu2 %548 }
 0x3a0   : > { %846 = vmatpush.xpose.msk.msrb.mxu0 %vm367_vm1, %v549_v34 }
 0x3a2   : > { %v885_v35 = vpop.eup %884 }
 0x3a3   : > { %847 = vmatmul.msk.f32.vlgmr.msrb.gmra.mxu0 %vm367_vm1, %v547_v36  ;;  %v491_v37 = vsel %vm367_vm1, %v885_v35, 0.0 }
 0x3a4   : > { %492 = vadd.xlane.f32.xlu1 %v491_v37 }
 0x3bd   : > { %638 = vrot.lane.b32.xlu1 %v998_v7, %s916_s13 }
 0x417   : > { %v493_v39 = vpop.xlane.xlu1 %492 }
 0x418   : > { %886 = vrcp.f32 %v493_v39 }
 0x41e   : > { %v887_v40 = vpop.eup %886 }
 0x41f   : > { %v495_v41 = vmul.f32 %v887_v40, %v885_v35 }
 0x420   : > { %v571_v42 = vpop.f32.mrf.mxu0 }
 0x421   : > { %v574_v43 = vsel %vm393_vm2, -1e+10, %v571_v42  ;;  %844 = vmatmul.msk.f32.vlgmr.msrb.gmra.mxu3 %vm367_vm1, %v495_v41  ;;  %v878_v41 = vld [vmem:[%s1086_s6] ss:$0 sm:$0xff] }
 0x422   : > { %v575_v44 = vsel %vm367_vm1, %v574_v43, -inf }
 0x423   : > { %576 = vmax.xlane.f32.xlu2 %v575_v44 }
 0x42f   : > { %v639_v45 = vpop.permute.xlu1 %638 }
 0x430   : > { %850 = vmatpush.xpose.msk.msra.mxu1 %vm367_vm1, %v639_v45 }
 0x496   : > { %v577_v46 = vpop.xlane.xlu2 %576 }
 0x497   : > { %v578_v47 = vsub.f32 %v574_v43, %v577_v46  ;;  %v879_v43 = vld [vmem:[%s1087_s7] ss:$0 sm:$0xff] }
 0x499   : > { %v579_v48 = vmul.f32 1.442695, %v578_v47 }
 0x49b   : > { %888 = vpow2.f32 %v579_v48 }
 0x4a1   : > { %v889_v50 = vpop.eup %888 }
 0x4a2   : > { %v581_v51 = vsel %vm367_vm1, %v889_v50, 0.0 }
 0x4a3   : > { %582 = vadd.xlane.f32.xlu1 %v581_v51 }
 0x4a4   : > { %v519_v52 = vpop.f32.mrf.mxu3 }
 0x4a5   : > { %845 = vmatmul.msk.f32.vlgmr.msrb.gmra.mxu1 %vm367_vm1, %v519_v52 }
 0x4ad   : > { %851 = vmatmul.msk.f32.vlgmr.msra.gmra.mxu1 %vm367_vm1, %v637_v53 }
 0x516   : > { %v583_v61 = vpop.xlane.xlu1 %582 }
 0x522   : > { %v542_v54 = vpop.f32.mrf.mxu1 }
 0x523   : > { %v545_v16 = vadd.f32 %v542_v54, %v455_v14 }
 0x52a   : > { %v661_v55 = vpop.f32.mrf.mxu1 }
 0x52b   : > { %v664_v56 = vsel %vm393_vm2, -1e+10, %v661_v55 }
 0x52c   : > { %v665_v57 = vsel %vm367_vm1, %v664_v56, -inf }
 0x52d   : > { %666 = vmax.xlane.f32.xlu0 %v665_v57 }
 0x541   : > { %586 = vrot.lane.b32.xlu0 %v998_v7, %s917_s17 }
 0x5a0   : > { %v667_v58 = vpop.xlane.xlu0 %666 }
 0x5a1   : > { %v668_v59 = vsub.f32 %v664_v56, %v667_v58 }
 0x5a3   : > { %v669_v60 = vmul.f32 1.442695, %v668_v59 }
 0x5a5   : > { %890 = vpow2.f32 %v669_v60 }
 0x5a6   : > { %892 = vrcp.f32 %v583_v61 }
 0x5ab   : > { %v891_v62 = vpop.eup %890 }
 0x5ac   : > { %v671_v63 = vsel %vm367_vm1, %v891_v62, 0.0  ;;  %v893_v0 = vpop.eup %892 }
 0x5ad   : > { %672 = vadd.xlane.f32.xlu2 %v671_v63  ;;  %v585_v1 = vmul.f32 %v893_v0, %v889_v50 }
 0x5b3   : > { %v587_v2 = vpop.permute.xlu0 %586 }
 0x5b4   : > { %607 = vmatpush.msra.mxu2 %v587_v2 }
 0x5b5   : > { %848 = vmatmul.msk.f32.vlgmr.msra.gmra.mxu2 %vm367_vm1, %v585_v1 }
 0x5c5   : > { %676 = vrot.lane.b32.xlu2 %v998_v7, %s918_s18  ;;  %v355_v7 = vld [vmem:[%s1084_s4 + $0x18] sm:$0xff] }
 0x5c6   : > { %720 = vmatpush.msrb.mxu2 %v355_v7 }
 0x620   : > { %v673_v5 = vpop.xlane.xlu2 %672 }
 0x621   : > { %894 = vrcp.f32 %v673_v5 }
 0x622   : > { %896 = vrcp.f32 %v919_v21 }
 0x627   : > { %v895_v6 = vpop.eup %894 }
 0x628   : > { %v675_v8 = vmul.f32 %v895_v6, %v891_v62  ;;  %v677_v9 = vpop.permute.xlu2 %676  ;;  %v897_v22 = vpop.eup %896 }
 0x629   : > { %697 = vmatpush.msra.mxu0 %v677_v9  ;;  %v730_v23 = vmul.f32 32.0, %v897_v22  ;;  %vm734_vm3 = vweird.f32 %v897_v22 }
 0x62a   : > { %852 = vmatmul.msk.f32.vlgmr.msra.gmra.mxu0 %vm367_vm1, %v675_v8 }
 0x62b   : > { %v731_v24 = vsub.f32 1.0, %v730_v23 }
 0x62d   : > { %v732_v25 = vmul.f32 %v897_v22, %v731_v24 }
 0x62f   : > { %v733_v26 = vadd.f32 %v897_v22, %v732_v25 }
 0x631   : > { %v735_v27 = vsel %vm734_vm3, %v897_v22, %v733_v26 }
 0x638   : > { %v609_v10 = vpop.f32.mrf.mxu2 }
 0x639   : > { %849 = vmatmul.msk.f32.vlgmr.msra.gmra.mxu3 %vm367_vm1, %v609_v10 }
 0x6a7   : > { %v699_v11 = vpop.f32.mrf.mxu0 }
 0x6a8   : > { %853 = vmatmul.msk.f32.vlgmr.msrb.gmra.mxu2 %vm367_vm1, %v699_v11 }
 0x6bc   : > { %v632_v15 = vpop.f32.mrf.mxu3 }
 0x6bd   : > { %v635_v17 = vadd.f32 %v632_v15, %v545_v16 }
 0x72b   : > { %v722_v18 = vpop.f32.mrf.mxu2 }
 0x72c   : > { %v725_v19 = vadd.f32 %v722_v18, %v635_v17 }
 0x72e   : > { %v726_v20 = vsel %vm327_vm0, %v725_v19, 0.0 }
 0x72f   : > { %727 = vadd.xlane.f32.xlu1 %v726_v20 }
 0x7a2   : > { %v728_v28 = vpop.xlane.xlu1 %727 }
 0x7a3   : > { %v736_v4 = vmul.f32 %v735_v27, %v728_v28 }
 0x7a5   : > { %v737_v29 = vsub.f32 %v725_v19, %v736_v4 }
 0x7a7   : > { %v738_v30 = vmul.f32 %v737_v29, %v737_v29 }
 0x7a9   : > { %v739_v31 = vsel %vm327_vm0, %v738_v30, 0.0 }
 0x7aa   : > { %740 = vadd.xlane.f32.xlu0 %v739_v31 }
 0x81d   : > { %v741_v32 = vpop.xlane.xlu0 %740 }
 0x81e   : > { %v742_v33 = vmul.f32 %v741_v32, %v735_v27 }
 0x820   : > { %v743_v34 = vadd.f32 1e-05, %v742_v33 }
 0x822   : > { %898 = vrsqrt.f32 %v743_v34  ;;  %vm750_vm5 = vweird.f32 %v743_v34 }
 0x828   : > { %v899_v35 = vpop.eup %898 }
 0x829   : > { %v745_v36 = vmul.f32 %v899_v35, %v743_v34  ;;  %vm751_vm4 = vweird.f32 %v899_v35 }
 0x82a   : > { %vm752_vm6 = vmor %vm750_vm5, %vm751_vm4 }
 0x82b   : > { %v746_v37 = vmul.f32 %v899_v35, %v745_v36 }
 0x82d   : > { %v747_v38 = vmul.f32 0.5, %v746_v37 }
 0x82f   : > { %v748_v39 = vsub.f32 1.5, %v747_v38 }
 0x831   : > { %v749_v40 = vmul.f32 %v899_v35, %v748_v39 }
 0x833   : > { %v753_v42 = vsel %vm752_vm6, %v899_v35, %v749_v40 }
 0x834   : > { %v754_v44 = vmul.f32 %v753_v42, %v737_v29 }
 0x836   : > { %v758_v45 = vmul.f32 %v878_v41, %v754_v44 }
 0x838   : > { %v762_v46 = vadd.f32 %v879_v43, %v758_v45 }
 0x83a   : > { %763 = vst.msk [vmem:[%s317_s10] sm:$0xff] %vm327_vm0, %v762_v46 }
 0x83b PF: > { %s18_s27 = sadd.s32 1, %s906_s27  }
 0x83c   : > { %p15_p4 = scmp.ge.s32.totalorder %s18_s27, 4  }
 0x83e   :  { %17 = sbr.rel (!%p15_p4) target bundleno = 1 (0x1), region = 85 }

// kernel: decoder_forward.11
= control target key start
LH: loop header
LB: loop body
LE: loop exit
PB: predicated region body
PF: predicated region fallthrough
CT: control target
= control target key end

     0   :  { %s1701_s0 = inlined_call_operand.vmem [shape: f32[2,8,32], index: 0, kind: input, shape index: {}]   ;;  %s1702_s1 = inlined_call_operand.vmem [shape: f32[2,10,32], index: 1, kind: input, shape index: {}]   ;;  %s1703_s2 = inlined_call_operand.vmem [shape: s32[2,8,10], index: 2, kind: input, shape index: {}]   ;;  %s1704_s3 = inlined_call_operand.vmem [shape: f32[32,32], index: 3, kind: input, shape index: {}]   ;;  %s1705_s4 = inlined_call_operand.vmem [shape: f32[1,32], index: 4, kind: input, shape index: {}]   ;;  %s1706_s5 = inlined_call_operand.vmem [shape: f32[32,64], index: 5, kind: input, shape index: {}]   ;;  %s1707_s6 = inlined_call_operand.vmem [shape: f32[1,64], index: 6, kind: input, shape index: {}]   ;;  %s1708_s7 = inlined_call_operand.vmem [shape: f32[32,32], index: 7, kind: input, shape index: {}]   ;;  %s1709_s8 = inlined_call_operand.vmem [shape: f32[1,32], index: 8, kind: input, shape index: {}]   ;;  %s1710_s9 = inlined_call_operand.vmem [shape: f32[1,32], index: 9, kind: input, shape index: {}]   ;;  %s1711_s10 = inlined_call_operand.hbm [shape: f32[1,32], index: 10, kind: input, shape index: {}]   ;;  %s1712_s11 = inlined_call_operand.vmem [shape: f32[2,8,32], index: 11, kind: output, shape index: {0}]   ;;  %s1713_s12 = inlined_call_operand.hbm [shape: f32[2,4,8,10], index: 12, kind: output, shape index: {1}]  }
   0x1   :  { %1718 = sst [smem:[#allocation12_spill]] %s1701_s0 }
   0x2   :  { %1719 = sst [smem:[#allocation13_spill]] %s1711_s10 }
   0x3   :  { %18 = vsyncpa [#allocation3], 0 }
   0x4   :  { %19 = vsyncpa [#allocation4], 0 }
   0x5   :  { %21 = vsyncpa [#allocation4 + $0x1], 0  ;;  %s1448_s21 = smov 0   ;;  %s1450_s22 = smov 0  }
   0x6   :  { %s1452_s23 = smov 0   ;;  %s1454_s24 = smov 0  }
   0x7 LB: > { %1720 = sst [smem:[#allocation8_spill]] %s1366_s23  ;;  %s1469_s25 = sadd.s32 4294967295, %s1370_s24   ;;  %s1370_s24 = sphi %s1454_s24, %s1729_s24   ;;  %s1366_s23 = sphi %s1452_s23, %s1731_s23   ;;  %s1362_s22 = sphi %s1450_s22, %s1733_s22   ;;  %s1358_s21 = sphi %s1448_s21, %s1732_s21  }
   0x8   : > { %s1140_s26 = sadd.s32 4294967294, %s1370_s24   ;;  %s1473_s27 = sadd.s32 1, %s1370_s24  }
   0x9   : > { %1721 = sst [smem:[#allocation9_spill]] %s1473_s27  ;;  %s306_s28 = sadd.s32 1, %s1366_s23 }
   0xa   : > { %s303_s29 = ssub.s32 %s1370_s24, %s1473_s27  ;;  %p316_p0 = scmp.ne.s32.totalorder %s1366_s23, %s1362_s22 }
   0xb   : > { %p304_p1 = scmp.eq.s32.totalorder %s303_s29, 0  ;;  %p317_p2 = scmp.eq.s32.totalorder %s1469_s25, 1 }
   0xc   : > { %p322_p3 = scmp.ne.s32.totalorder %s1362_s22, %s1358_s21  ;;  %p323_p4 = scmp.eq.s32.totalorder %s1140_s26, 1 }
   0xd   : > { %s1484_s30 = scalar_select %p304_p1, %s1366_s23, %s306_s28  }
   0xe   : > { %p1486_p5 = por %p317_p2, %p316_p0  ;;  %p1490_p6 = por %p323_p4, %p322_p3 }
   0xf   : > { %1722 = sst [smem:[#allocation10_spill]] %s1484_s30  ;;  %p1141_p7 = scmp.ge.s32.totalorder %s1370_s24, 1 }
  0x10   : > { %s1724_s14 = scalar_select %p1490_p6, 1, 0 }
  0x11   : > { %p330_p8 = scmp.lt.s32.totalorder %s1370_s24, 3  ;;  %p1203_p9 = scmp.eq.s32.totalorder %s1469_s25, 0 }
  0x12   : > { %1725 = sst [smem:[#allocation11_spill]] %s1724_s14  ;;  %s1372_s18 = smov [#allocation2]  }
  0x13   : > { %p331_p10 = pnand %p1141_p7, %p330_p8  ;;  %s1726_s10 = sld [smem:[#allocation13_spill]] }
  0x14   : > { %s365_s19 = sshll.u32 %s1372_s18, 4  ;;  %s366_s19 = int_to_ptr.vmem [resolvable:$true] %s365_s19 }
  0x15   : > { %p1195_p11 = pneg %p331_p10 }
  0x16   : > { %400 = sbr.rel (%p331_p10) target bundleno = 1750 (0x6d6), region = 64 }
  0x17   : > { %p1196_p12 = pnand %p1203_p9, %p1195_p11 }
  0x19   : > { %s363_s17 = sshll.u32 %s1726_s10, 4  ;;  %s364_s17 = int_to_ptr.hbm [resolvable:$true] %s363_s17 }
  0x1a   : > { %1198 = dma.hbm_to_vmem [thread:$0]  (!%p1196_p12), %s364_s17, 16, %s366_s19, [#allocation3]  }
  0x1b   : > { %1349 = dma.done.wait (%p1203_p9), [#allocation3], 16  }
  0x1c   : > { %1351 = vsyncadd (%p1203_p9), [#allocation3], 4294967280  ;;  %p455_p13 = scmp.lt.s32.totalorder %s1469_s25, 1  ;;  %v510_v0 = vld [vmem:[%s1706_s5 + $0x18] sm:$0xff]  ;;  %v509_v1 = vld [vmem:[%s1706_s5 + $0x10] sm:$0xff]  ;;  %s1727_s0 = sld [smem:[#allocation12_spill]] }
  0x1d   : > { %533 = vmatpush.msra.mxu1 %v510_v0  ;;  %v476_v2 = vld [vmem:[%s1704_s3 + $0x18] sm:$0xff]  ;;  %v508_v3 = vld [vmem:[%s1706_s5 + $0x8] sm:$0xff]  ;;  %v475_v4 = vld [vmem:[%s1704_s3 + $0x10] sm:$0xff]  ;;  %vm481_vm0 = vcmask 261120   ;;  %s1373_s29 = smov 120   ;;  %vm557_vm1 = vcmask 64512  }
  0x1e   : > { %s456_s20 = scalar_select %p455_p13, %s1469_s25, 1  ;;  %497 = vmatpush.msra.mxu0 %v476_v2  ;;  %v507_v5 = vld [vmem:[%s1706_s5] sm:$0xff]  ;;  %v474_v6 = vld [vmem:[%s1704_s3 + $0x8] sm:$0xff]  ;;  %vm610_vm2 = vcmask 1041408   ;;  %vm589_vm4 = vcmask 80896  }
  0x1f   : > { %534 = vmatpush.msra.mxu1 %v509_v1  ;;  %v473_v8 = vld [vmem:[%s1704_s3] sm:$0xff]  ;;  %s1375_s16 = smov 88   ;;  %s1377_s23 = smov 104   ;;  %v546_v48 = vld [vmem:[%s1708_s7 + $0x8] sm:$0xff] }
  0x20   : > { %s1187_s26 = sshll.u32 %s456_s20, 4  ;;  %s1508_s18 = sshll.u32 %s456_s20, 3  ;;  %498 = vmatpush.msra.mxu0 %v475_v4  ;;  %v1250_v11 = vld [vmem:[%s1705_s4] ss:$0 sm:$0xff] }
  0x21   : > { %s463_s10 = scalar_lea.vmem %s1702_s1, %s1187_s26  ;;  %535 = vmatpush.msra.mxu1 %v508_v3  ;;  %v1249_v16 = vld [vmem:[%s1707_s6] ss:$0 sm:$0xff]  ;;  %s1376_s26 = smov 112  }
  0x22   : > { %s458_s17 = scalar_lea.vmem %s1727_s0, %s1508_s18  ;;  %v505_v7 = vld [vmem:[%s463_s10] sm:$0xff]  ;;  %499 = vmatpush.msra.mxu0 %v474_v6  ;;  %v506_v10 = vld [vmem:[%s463_s10 + $0x8] sm:$0x3]  ;;  %s1374_s10 = smov 96  }
  0x23   : > { %v1535_v9 = vld [vmem:[%s458_s17] sm:$0xff]  ;;  %536 = vmatpush.msra.mxu1 %v507_v5  ;;  %s467_s27 = scalar_lea.vmem %s1703_s2, %s1508_s18  ;;  %s452_s14 = sand.u32 1, %s1362_s22  }
  0x24   : > { %1153 = vmatmul.msk.f32.vlgmr.msra.gmra.mxu1 %vm481_vm0, %v505_v7  ;;  %500 = vmatpush.msra.mxu0 %v473_v8  ;;  %v1580_v24 = vld [vmem:[%s467_s27] sm:$0xff]  ;;  %s1146_s19 = sshll.u32 %s452_s14, 5  ;;  %s1188_s15 = sshll.u32 %s1469_s25, 5 }
  0x25   : > { %1152 = vmatmul.msk.f32.vlgmr.msra.gmra.mxu0 %vm481_vm0, %v1535_v9  ;;  %vm587_vm3 = vcmp.eq.s32.totalorder %v1580_v24, 0  ;;  %s1597_s28 = scalar_lea.vmem [#allocation5], %s1146_s19  ;;  %v545_v47 = vld [vmem:[%s1708_s7] sm:$0xff]  ;;  %s1000_s30 = scalar_lea.sflag [#allocation4], %s452_s14 }
  0x26   : > { %s1015_s20 = sshll.u32 %s1597_s28, 4  ;;  %s1324_s25 = scalar_lea.hbm %s1713_s12, 64  ;;  %s1016_s20 = int_to_ptr.vmem [resolvable:$true] %s1015_s20 }
  0x2c   : > { %1154 = vmatmul.msk.f32.gmra.mxu1 %vm481_vm0, %v506_v10 }
  0xa1   : > { %v538_v12 = vpop.f32.mrf.mxu1 }
  0xa2   : > { %v502_v13 = vpop.f32.mrf.mxu0  ;;  %v1555_v19 = vadd.f32 %v1249_v16, %v538_v12 }
  0xa3   : > { %v503_v14 = vadd.f32 %v1250_v11, %v502_v13 }
  0xa5   : > { %v1544_v15 = vmul.f32 0.35355338, %v503_v14 }
  0xa7   : > { %657 = vrot.lane.b32.xlu1 %v1544_v15, %s1373_s29 }
  0xa9   : > { %v541_v17 = vpop.f32.mrf.mxu1 }
  0xaa   : > { %v1550_v18 = vadd.f32 %v1249_v16, %v541_v17 }
  0xac   : > { %661 = vrot.lane.b32.xlu0 %v1550_v18, %s1373_s29  ;;  %1155 = vmatpush.xpose.msk.msra.mxu2 %vm557_vm1, %v1550_v18 }
  0xb0   : > { %1156 = vmatpush.xpose.msk.msra.mxu2 %vm557_vm1, %v1555_v19 }
  0xb3   : > { %1157 = vmatmul.msk.f32.vlgmr.msra.gmra.mxu2 %vm557_vm1, %v1544_v15 }
  0xb4   : > { %659 = vrot.lane.b32.xlu0 %v1555_v19, %s1373_s29 }
  0xbc   : > { %604 = vrot.lane.b32.xlu0 %v1550_v18, %s1374_s10 }
  0xc4   : > { %602 = vrot.lane.b32.xlu0 %v1555_v19, %s1374_s10 }
  0xcc   : > { %703 = vrot.lane.b32.xlu0 %v1555_v19, %s1375_s16 }
  0xd4   : > { %761 = vrot.lane.b32.xlu0 %v1550_v18, %s1376_s26 }
  0xdc   : > { %861 = vrot.lane.b32.xlu0 %v1550_v18, %s1377_s23 }
  0xe4   : > { %757 = vrot.lane.b32.xlu0 %v1544_v15, %s1376_s26 }
 0x119   : > { %v658_v22 = vpop.permute.xlu1 %657 }
 0x11e   : > { %v662_v20 = vpop.permute.xlu0 %661 }
 0x11f   : > { %1161 = vmatpush.xpose.msk.msrb.mxu0 %vm557_vm1, %v662_v20 }
 0x126   : > { %v660_v21 = vpop.permute.xlu0 %659 }
 0x127   : > { %1162 = vmatpush.xpose.msk.msrb.mxu0 %vm557_vm1, %v660_v21 }
 0x12a   : > { %1163 = vmatmul.msk.f32.vlgmr.msrb.gmra.mxu0 %vm557_vm1, %v658_v22 }
 0x12e   : > { %v605_v23 = vpop.permute.xlu0 %604 }
 0x12f   : > { %1158 = vmatpush.msk.msra.mxu3 %vm610_vm2, %v605_v23 }
 0x136   : > { %v603_v25 = vpop.permute.xlu0 %602  ;;  %v584_v26 = vpop.f32.mrf.mxu2 }
 0x137   : > { %v588_v27 = vsel %vm587_vm3, -1e+10, %v584_v26  ;;  %628 = vmatpush.msra.mxu3 %v603_v25  ;;  %v548_v26 = vld [vmem:[%s1708_s7 + $0x18] sm:$0xff] }
 0x138   : > { %v590_v28 = vsel %vm589_vm4, %v588_v27, -inf }
 0x139   : > { %591 = vmax.xlane.f32.xlu1 %v590_v28  ;;  %651 = vmatpush.msrb.mxu3 %v545_v47 }
 0x13e   : > { %v704_v29 = vpop.permute.xlu0 %703 }
 0x146   : > { %v762_v30 = vpop.permute.xlu0 %761 }
 0x147   : > { %1168 = vmatpush.xpose.msk.msra.mxu0 %vm557_vm1, %v762_v30 }
 0x14e   : > { %v862_v53 = vpop.permute.xlu0 %861 }
 0x152   : > { %859 = vrot.lane.b32.xlu1 %v1555_v19, %s1377_s23 }
 0x156   : > { %v758_v55 = vpop.permute.xlu0 %757 }
 0x1a7   : > { %v686_v31 = vpop.f32.mrf.mxu0 }
 0x1a8   : > { %v689_v32 = vsel %vm587_vm3, -1e+10, %v686_v31 }
 0x1a9   : > { %v690_v33 = vsel %vm589_vm4, %v689_v32, -inf }
 0x1aa   : > { %691 = vmax.xlane.f32.xlu2 %v690_v33 }
 0x1ac   : > { %v592_v34 = vpop.xlane.xlu1 %591 }
 0x1ad   : > { %v593_v35 = vsub.f32 %v588_v27, %v592_v34 }
 0x1af   : > { %v594_v36 = vmul.f32 1.442695, %v593_v35 }
 0x1b1   : > { %1254 = vpow2.f32 %v594_v36 }
 0x1b7   : > { %v1255_v37 = vpop.eup %1254 }
 0x1b8   : > { %v596_v38 = vsel %vm589_vm4, %v1255_v37, 0.0 }
 0x1b9   : > { %597 = vadd.xlane.f32.xlu2 %v596_v38  ;;  %v1380_v38 = vmov 32.0  }
 0x1c4   : > { %v860_v57 = vpop.permute.xlu1 %859 }
 0x21d   : > { %v692_v39 = vpop.xlane.xlu2 %691 }
 0x21e   : > { %v693_v40 = vsub.f32 %v689_v32, %v692_v39 }
 0x220   : > { %v694_v41 = vmul.f32 1.442695, %v693_v40 }
 0x222   : > { %1256 = vpow2.f32 %v694_v41 }
 0x228   : > { %v1257_v42 = vpop.eup %1256 }
 0x229   : > { %v696_v43 = vsel %vm589_vm4, %v1257_v42, 0.0 }
 0x22a   : > { %697 = vadd.xlane.f32.xlu2 %v696_v43 }
 0x22c   : > { %v598_v44 = vpop.xlane.xlu2 %597 }
 0x22d   : > { %1258 = vrcp.f32 %v598_v44 }
 0x233   : > { %v1259_v45 = vpop.eup %1258 }
 0x234   : > { %v600_v46 = vmul.f32 %v1259_v45, %v1255_v37 }
 0x236   : > { %601 = vst.msk [vmem:[%s1597_s28] sm:$0xff] %vm589_vm4, %v600_v46  ;;  %1159 = vmatmul.msk.f32.vlgmr.msra.gmra.mxu3 %vm589_vm4, %v600_v46 }
 0x237   : > { %751 = vmatpush.msra.mxu3 %v546_v48 }
 0x242   : > { %705 = vrot.lane.b32.xlu2 %v1550_v18, %s1375_s16  ;;  %s1378_s16 = smov 72  }
 0x24a   : > { %759 = vrot.lane.b32.xlu2 %v1555_v19, %s1376_s26  ;;  %s1379_s26 = smov 80  }
 0x252   : > { %857 = vrot.lane.b32.xlu2 %v1544_v15, %s1377_s23 }
 0x29d   : > { %v698_v49 = vpop.xlane.xlu2 %697 }
 0x29e   : > { %1260 = vrcp.f32 %v698_v49 }
 0x2a4   : > { %v1261_v50 = vpop.eup %1260 }
 0x2a5   : > { %v706_v51 = vpop.permute.xlu2 %705  ;;  %v700_v52 = vmul.f32 %v1261_v50, %v1257_v42 }
 0x2a6   : > { %1165 = vmatpush.msk.msrb.mxu2 %vm610_vm2, %v706_v51 }
 0x2a7   : > { %1164 = vst.msk [vmem:[%s1597_s28 + $0x8] sm:$0xff] %vm589_vm4, %v700_v52 }
 0x2a8   : > { %728 = vmatpush.msrb.mxu2 %v704_v29  ;;  %v1251_v29 = vld [vmem:[%s1709_s8] ss:$0 sm:$0xff] }
 0x2a9   : > { %1166 = vmatmul.msk.f32.vlgmr.msrb.gmra.mxu2 %vm589_vm4, %v700_v52  ;;  %v555_v30 = vadd.f32 %v1251_v29, %v1535_v9 }
 0x2ad   : > { %v760_v54 = vpop.permute.xlu2 %759 }
 0x2ae   : > { %1169 = vmatpush.xpose.msk.msra.mxu0 %vm557_vm1, %v760_v54 }
 0x2b1   : > { %1170 = vmatmul.msk.f32.vlgmr.msra.gmra.mxu0 %vm557_vm1, %v758_v55 }
 0x2b5   : > { %v858_v62 = vpop.permute.xlu2 %857 }
 0x2b9   : > { %v630_v56 = vpop.f32.mrf.mxu3 }
 0x2ba   : > { %1160 = vmatmul.msk.f32.vlgmr.msrb.gmra.mxu3 %vm557_vm1, %v630_v56 }
 0x2bb   : > { %1175 = vmatpush.xpose.msk.msrb.mxu3 %vm557_vm1, %v862_v53 }
 0x2bf   : > { %1176 = vmatpush.xpose.msk.msrb.mxu3 %vm557_vm1, %v860_v57 }
 0x32c   : > { %v730_v58 = vpop.f32.mrf.mxu2 }
 0x32d   : > { %1167 = vmatmul.msk.f32.vlgmr.msra.gmra.mxu3 %vm557_vm1, %v730_v58 }
 0x32e   : > { %v786_v59 = vpop.f32.mrf.mxu0 }
 0x32f   : > { %v789_v60 = vsel %vm587_vm3, -1e+10, %v786_v59 }
 0x330   : > { %v790_v61 = vsel %vm589_vm4, %v789_v60, -inf }
 0x331   : > { %791 = vmax.xlane.f32.xlu0 %v790_v61 }
 0x335   : > { %1177 = vmatmul.msk.f32.vlgmr.msrb.gmra.mxu3 %vm557_vm1, %v858_v62 }
 0x33d   : > { %v653_v2 = vpop.f32.mrf.mxu3 }
 0x33e   : > { %v656_v31 = vadd.f32 %v653_v2, %v555_v30 }
 0x3a4   : > { %v792_v63 = vpop.xlane.xlu0 %791 }
 0x3a5   : > { %v793_v0 = vsub.f32 %v789_v60, %v792_v63 }
 0x3a7   : > { %v794_v1 = vmul.f32 1.442695, %v793_v0 }
 0x3a9   : > { %1262 = vpow2.f32 %v794_v1 }
 0x3af   : > { %v1263_v3 = vpop.eup %1262 }
 0x3b0   : > { %v753_v4 = vpop.f32.mrf.mxu3  ;;  %v796_v5 = vsel %vm589_vm4, %v1263_v3, 0.0 }
 0x3b1   : > { %797 = vadd.xlane.f32.xlu1 %v796_v5  ;;  %v756_v32 = vadd.f32 %v753_v4, %v656_v31 }
 0x3b8   : > { %v886_v6 = vpop.f32.mrf.mxu3 }
 0x3b9   : > { %v889_v7 = vsel %vm587_vm3, -1e+10, %v886_v6 }
 0x3ba   : > { %v890_v8 = vsel %vm589_vm4, %v889_v7, -inf }
 0x3bb   : > { %891 = vmax.xlane.f32.xlu2 %v890_v8 }
 0x3ca   : > { %905 = vrot.lane.b32.xlu1 %v1550_v18, %s1378_s16 }
 0x3d3   : > { %805 = vrot.lane.b32.xlu2 %v1550_v18, %s1379_s26 }
 0x3db   : > { %903 = vrot.lane.b32.xlu2 %v1555_v19, %s1378_s16 }
 0x424   : > { %v798_v10 = vpop.xlane.xlu1 %797 }
 0x425   : > { %1264 = vrcp.f32 %v798_v10 }
 0x42b   : > { %v1265_v11 = vpop.eup %1264 }
 0x42c   : > { %v800_v12 = vmul.f32 %v1265_v11, %v1263_v3 }
 0x42e   : > { %v892_v13 = vpop.xlane.xlu2 %891  ;;  %1171 = vst.msk [vmem:[%s1597_s28 + $0x10] sm:$0xff] %vm589_vm4, %v800_v12 }
 0x42f   : > { %v893_v14 = vsub.f32 %v889_v7, %v892_v13 }
 0x431   : > { %v894_v15 = vmul.f32 1.442695, %v893_v14 }
 0x433   : > { %1266 = vpow2.f32 %v894_v15 }
 0x436   : > { %v806_v16 = vpop.permute.xlu2 %805 }
 0x437   : > { %1172 = vmatpush.msk.msrb.mxu1 %vm610_vm2, %v806_v16 }
 0x439   : > { %v1267_v17 = vpop.eup %1266 }
 0x43a   : > { %v896_v20 = vsel %vm589_vm4, %v1267_v17, 0.0 }
 0x43b   : > { %897 = vadd.xlane.f32.xlu0 %v896_v20 }
 0x43c   : > { %v906_v18 = vpop.permute.xlu1 %905 }
 0x43d   : > { %1179 = vmatpush.msk.msrb.mxu0 %vm610_vm2, %v906_v18 }
 0x43e   : > { %v904_v21 = vpop.permute.xlu2 %903 }
 0x43f   : > { %928 = vmatpush.msrb.mxu0 %v904_v21 }
 0x44f   : > { %803 = vrot.lane.b32.xlu0 %v1555_v19, %s1379_s26  ;;  %v547_v19 = vld [vmem:[%s1708_s7 + $0x10] sm:$0xff]  ;;  %s1014_s26 = scalar_lea.hbm %s1713_s12, %s1188_s15 }
 0x450   : > { %851 = vmatpush.msra.mxu2 %v547_v19  ;;  %s1017_s23 = sshll.u32 %s1014_s26, 4  ;;  %s1018_s23 = int_to_ptr.hbm [resolvable:$true] %s1017_s23 }
 0x451   : > { %s1318_s17 = sshra.s32 %s1018_s23, 4  ;;  %s1319_s17 = int_to_ptr.hbm [resolvable:$true] %s1318_s17 }
 0x452   : > { %s1320_s27 = scalar_lea.hbm %s1319_s17, 32  ;;  %p1325_p3 = scmp.lt.s32.totalorder %s1319_s17, %s1713_s12 }
 0x453   : > { %p1321_p0 = scmp.ne.s32.totalorder %s1319_s17, %s1320_s27  ;;  %p1326_p4 = scmp.lt.s32.totalorder %s1324_s25, %s1320_s27 }
 0x455   : > { %p1322_p1 = pnand %p1321_p0, %p1486_p5  ;;  %p1327_p7 = por %p1326_p4, %p1325_p3 }
 0x457   : > { %p1323_p2 = pneg %p1322_p1 }
 0x459   : > { %p1328_p8 = pnand %p1327_p7, %p1323_p2 }
 0x4ae   : > { %v898_v22 = vpop.xlane.xlu0 %897 }
 0x4af   : > { %1268 = vrcp.f32 %v898_v22 }
 0x4b0   : > { %1270 = vrcp.f32 %v1380_v38 }
 0x4b5   : > { %v1269_v23 = vpop.eup %1268 }
 0x4b6   : > { %v900_v24 = vmul.f32 %v1269_v23, %v1267_v17  ;;  %v1271_v39 = vpop.eup %1270 }
 0x4b7   : > { %v961_v40 = vmul.f32 32.0, %v1271_v39  ;;  %vm965_vm5 = vweird.f32 %v1271_v39 }
 0x4b8   : > { %1178 = vst.msk [vmem:[%s1597_s28 + $0x18] sm:$0xff] %vm589_vm4, %v900_v24  ;;  %1180 = vmatmul.msk.f32.vlgmr.msrb.gmra.mxu0 %vm589_vm4, %v900_v24 }
 0x4b9   : > { %v962_v41 = vsub.f32 1.0, %v961_v40 }
 0x4bb   : > { %v963_v42 = vmul.f32 %v1271_v39, %v962_v41 }
 0x4bd   : > { %v964_v43 = vadd.f32 %v1271_v39, %v963_v42 }
 0x4bf   : > { %v966_v9 = vsel %vm965_vm5, %v1271_v39, %v964_v43 }
 0x4c1   : > { %v804_v25 = vpop.permute.xlu0 %803 }
 0x4c2   : > { %828 = vmatpush.msrb.mxu1 %v804_v25 }
 0x4c3   : > { %1173 = vmatmul.msk.f32.vlgmr.msrb.gmra.mxu1 %vm589_vm4, %v800_v12 }
 0x4c4   : > { %951 = vmatpush.msra.mxu1 %v548_v26 }
 0x535   : > { %v930_v27 = vpop.f32.mrf.mxu0 }
 0x536   : > { %1181 = vmatmul.msk.f32.vlgmr.msra.gmra.mxu1 %vm557_vm1, %v930_v27 }
 0x540   : > { %v830_v28 = vpop.f32.mrf.mxu1 }
 0x541   : > { %1174 = vmatmul.msk.f32.vlgmr.msra.gmra.mxu2 %vm557_vm1, %v830_v28 }
 0x5b3   : > { %v953_v35 = vpop.f32.mrf.mxu1 }
 0x5c4   : > { %v853_v33 = vpop.f32.mrf.mxu2 }
 0x5c5   : > { %v856_v34 = vadd.f32 %v853_v33, %v756_v32 }
 0x5c7   : > { %v956_v36 = vadd.f32 %v953_v35, %v856_v34 }
 0x5c9   : > { %v957_v37 = vsel %vm481_vm0, %v956_v36, 0.0 }
 0x5ca   : > { %958 = vadd.xlane.f32.xlu0 %v957_v37 }
 0x63d   : > { %v959_v44 = vpop.xlane.xlu0 %958 }
 0x63e   : > { %v967_v45 = vmul.f32 %v966_v9, %v959_v44 }
 0x640   : > { %v968_v46 = vsub.f32 %v956_v36, %v967_v45 }
 0x642   : > { %v969_v47 = vmul.f32 %v968_v46, %v968_v46 }
 0x644   : > { %v970_v48 = vsel %vm481_vm0, %v969_v47, 0.0 }
 0x645   : > { %971 = vadd.xlane.f32.xlu2 %v970_v48 }
 0x646   : > { %1331 = shalt.err (!%p1328_p8)
}
 0x647   : > { %s1381_s14 = smov 128   ;;  %s1382_s15 = smov 8   ;;  %v1252_v58 = vld [vmem:[%s1710_s9] ss:$0 sm:$0xff] }
 0x648   : > { %1193 = dma.vmem_to_hbm [thread:$0]  (%p1486_p5), %s1016_s20, 512, %s1018_s23, %s1000_s30, %s1381_s14, %s1381_s14, %s1382_s15   ;;  %v1253_v60 = vld [vmem:[#allocation2] ss:$0 sm:$0xff] }
 0x649   : > { %s471_s16 = scalar_lea.vmem %s1712_s11, %s1508_s18 }
 0x6b8   : > { %v972_v49 = vpop.xlane.xlu2 %971 }
 0x6b9   : > { %v973_v50 = vmul.f32 %v972_v49, %v966_v9 }
 0x6bb   : > { %v974_v51 = vadd.f32 1e-05, %v973_v50 }
 0x6bd   : > { %1272 = vrsqrt.f32 %v974_v51  ;;  %vm981_vm7 = vweird.f32 %v974_v51 }
 0x6c3   : > { %v1273_v52 = vpop.eup %1272 }
 0x6c4   : > { %v976_v53 = vmul.f32 %v1273_v52, %v974_v51  ;;  %vm982_vm6 = vweird.f32 %v1273_v52 }
 0x6c5   : > { %vm983_vm8 = vmor %vm981_vm7, %vm982_vm6 }
 0x6c6   : > { %v977_v54 = vmul.f32 %v1273_v52, %v976_v53 }
 0x6c8   : > { %v978_v55 = vmul.f32 0.5, %v977_v54 }
 0x6ca   : > { %v979_v56 = vsub.f32 1.5, %v978_v55 }
 0x6cc   : > { %v980_v57 = vmul.f32 %v1273_v52, %v979_v56 }
 0x6ce   : > { %v984_v59 = vsel %vm983_vm8, %v1273_v52, %v980_v57 }
 0x6cf   : > { %v985_v61 = vmul.f32 %v984_v59, %v968_v46 }
 0x6d1   : > { %v989_v62 = vmul.f32 %v1252_v58, %v985_v61 }
 0x6d3   : > { %v993_v63 = vadd.f32 %v1253_v60, %v989_v62 }
 0x6d5   : > { %994 = vst.msk [vmem:[%s471_s16] sm:$0xff] %vm481_vm0, %v993_v63 }
 0x6d6 PF: > { %p1205_p5 = scmp.ge.s32.totalorder %s1370_s24, 2  ;;  %s1039_s23 = sand.u32 1, %s1358_s21  }
 0x6d7   : > { %s1040_s30 = scalar_lea.sflag [#allocation4], %s1039_s23 }
 0x6d8   : > { %p1200_p9 = pnand %p1205_p5, %p1490_p6 }
 0x6da   : > { %p1201_p10 = pneg %p1200_p9 }
 0x6dc   : > { %1353 = dma.done.wait (%p1201_p10), %s1040_s30, 512  }
 0x6dd   : > { %1355 = vsyncadd (%p1201_p10), %s1040_s30, 4294966784  ;;  %s1729_s24 = sld [smem:[#allocation9_spill]]  ;;  %s1732_s21 = smov %s1362_s22 }
 0x6de   : > { %s1730_s17 = sld [smem:[#allocation8_spill]] }
 0x6df   : > { %s1731_s23 = sld [smem:[#allocation10_spill]] }
 0x6e3   : > { %p24_p11 = scmp.ge.s32.totalorder %s1729_s24, 4  }
 0x6e4   : > { %s1733_s22 = smov %s1730_s17 }
 0x6e5   :  { %26 = sbr.rel (!%p24_p11) target bundleno = 7 (0x7), region = 125 }
 0x6ea   :  { %1046 = vsyncpa [#allocation3], 1 }
 0x6eb   :  { %1048 = vsyncpa [#allocation3 + $0x1], 1 }
 0x6ec   :  { %1049 = vsyncpa [#allocation4], 1 }
 0x6ed   :  { %1051 = vsyncpa [#allocation4 + $0x1], 1 }

// kernel: decoder_forward.8
= control target key start
LH: loop header
LB: loop body
LE: loop exit
PB: predicated region body
PF: predicated region fallthrough
CT: control target
= control target key end

     0   :  { %s1169_s17 = smov 0   ;;  %s1335_s0 = inlined_call_operand.vmem [shape: f32[2,8,32], index: 0, kind: input, shape index: {}]   ;;  %s1336_s1 = inlined_call_operand.vmem [shape: f32[2,10,32], index: 1, kind: input, shape index: {}]   ;;  %s1337_s2 = inlined_call_operand.vmem [shape: s32[2,8,10], index: 2, kind: input, shape index: {}]   ;;  %s1338_s3 = inlined_call_operand.vmem [shape: f32[32,32], index: 3, kind: input, shape index: {}]   ;;  %s1339_s4 = inlined_call_operand.vmem [shape: f32[1,32], index: 4, kind: input, shape index: {}]   ;;  %s1340_s5 = inlined_call_operand.vmem [shape: f32[32,64], index: 5, kind: input, shape index: {}]   ;;  %s1341_s6 = inlined_call_operand.vmem [shape: f32[1,64], index: 6, kind: input, shape index: {}]   ;;  %s1342_s7 = inlined_call_operand.vmem [shape: f32[32,32], index: 7, kind: input, shape index: {}]   ;;  %s1343_s8 = inlined_call_operand.vmem [shape: f32[1,32], index: 8, kind: input, shape index: {}]   ;;  %s1344_s9 = inlined_call_operand.vmem [shape: f32[1,32], index: 9, kind: input, shape index: {}]   ;;  %s1345_s10 = inlined_call_operand.vmem [shape: f32[1,32], index: 10, kind: input, shape index: {}]   ;;  %s1346_s11 = inlined_call_operand.vmem [shape: f32[2,8,32], index: 11, kind: output, shape index: {}]  }
   0x1 LB: > { %s1012_s18 = sadd.s32 4294967295, %s1099_s17   ;;  %p1016_p0 = scmp.ge.s32.totalorder %s1099_s17, 1  ;;  %s1099_s17 = sphi %s1169_s17, %s21_s17  }
   0x2   : > { %p355_p1 = scmp.lt.s32.totalorder %s1099_s17, 3 }
   0x4   : > { %p356_p2 = pnand %p1016_p0, %p355_p1 }
   0x5   : > { %p402_p3 = scmp.lt.s32.totalorder (!%p356_p2), %s1012_s18, 1  ;;  %s1101_s27 = smov (!%p356_p2), 120  }
   0x6   : > { %359 = sbr.rel (%p356_p2) target bundleno = 1733 (0x6c5), region = 64  ;;  %s1102_s30 = smov (!%p356_p2), 96  }
   0x7   : > { %s1103_s12 = smov (!%p356_p2), 88   ;;  %s1104_s13 = smov (!%p356_p2), 112  }
   0xb   : > { %v457_v0 = vld [vmem:[%s1340_s5 + $0x18] sm:$0xff]  ;;  %v456_v1 = vld [vmem:[%s1340_s5 + $0x10] sm:$0xff]  ;;  %v455_v4 = vld [vmem:[%s1340_s5 + $0x8] sm:$0xff]  ;;  %s1348_s18 = smov (!%p402_p3, %s1012_s18), 1  ;;  %vm428_vm0 = vcmask 261120   ;;  %vm504_vm1 = vcmask 64512  }
   0xc   : > { %480 = vmatpush.msra.mxu1 %v457_v0  ;;  %v423_v2 = vld [vmem:[%s1338_s3 + $0x18] sm:$0xff]  ;;  %v422_v3 = vld [vmem:[%s1338_s3 + $0x10] sm:$0xff]  ;;  %v454_v5 = vld [vmem:[%s1340_s5] sm:$0xff]  ;;  %s1051_s14 = sshll.u32 %s1348_s18, 4  ;;  %s1198_s15 = sshll.u32 %s1348_s18, 3  ;;  %vm556_vm2 = vcmask 1041408  }
   0xd   : > { %444 = vmatpush.msra.mxu0 %v423_v2  ;;  %v421_v6 = vld [vmem:[%s1338_s3 + $0x8] sm:$0xff]  ;;  %s410_s20 = scalar_lea.vmem %s1336_s1, %s1051_s14  ;;  %v420_v7 = vld [vmem:[%s1338_s3] sm:$0xff]  ;;  %s405_s25 = scalar_lea.vmem %s1335_s0, %s1198_s15  ;;  %vm536_vm4 = vcmask 80896  }
   0xe   : > { %481 = vmatpush.msra.mxu1 %v456_v1  ;;  %v452_v8 = vld [vmem:[%s410_s20] sm:$0xff]  ;;  %v453_v10 = vld [vmem:[%s410_s20 + $0x8] sm:$0x3]  ;;  %s1105_s14 = smov 104   ;;  %s414_s20 = scalar_lea.vmem %s1337_s2, %s1198_s15 }
   0xf   : > { %445 = vmatpush.msra.mxu0 %v422_v3  ;;  %v1210_v9 = vld [vmem:[%s405_s25] sm:$0xff]  ;;  %v493_v48 = vld [vmem:[%s1342_s7 + $0x8] sm:$0xff]  ;;  %s1106_s25 = smov 72   ;;  %s1107_s18 = smov 80  }
  0x10   : > { %482 = vmatpush.msra.mxu1 %v455_v4  ;;  %v1069_v11 = vld [vmem:[%s1339_s4] ss:$0 sm:$0xff]  ;;  %s418_s22 = scalar_lea.vmem %s1346_s11, %s1198_s15 }
  0x11   : > { %446 = vmatpush.msra.mxu0 %v421_v6  ;;  %v1068_v16 = vld [vmem:[%s1341_s6] ss:$0 sm:$0xff] }
  0x12   : > { %483 = vmatpush.msra.mxu1 %v454_v5  ;;  %v1255_v24 = vld [vmem:[%s414_s20] sm:$0xff] }
  0x13   : > { %1023 = vmatmul.msk.f32.vlgmr.msra.gmra.mxu1 %vm428_vm0, %v452_v8  ;;  %447 = vmatpush.msra.mxu0 %v420_v7  ;;  %vm534_vm3 = vcmp.eq.s32.totalorder %v1255_v24, 0  ;;  %v492_v47 = vld [vmem:[%s1342_s7] sm:$0xff] }
  0x14   : > { %1022 = vmatmul.msk.f32.vlgmr.msra.gmra.mxu0 %vm428_vm0, %v1210_v9 }
  0x1b   : > { %1024 = vmatmul.msk.f32.gmra.mxu1 %vm428_vm0, %v453_v10 }
  0x90   : > { %v485_v12 = vpop.f32.mrf.mxu1 }
  0x91   : > { %v449_v13 = vpop.f32.mrf.mxu0  ;;  %v1230_v19 = vadd.f32 %v1068_v16, %v485_v12 }
  0x92   : > { %v450_v14 = vadd.f32 %v1069_v11, %v449_v13 }
  0x94   : > { %v1219_v15 = vmul.f32 0.35355338, %v450_v14 }
  0x96   : > { %603 = vrot.lane.b32.xlu1 %v1219_v15, %s1101_s27 }
  0x98   : > { %v488_v17 = vpop.f32.mrf.mxu1 }
  0x99   : > { %v1225_v18 = vadd.f32 %v1068_v16, %v488_v17 }
  0x9b   : > { %607 = vrot.lane.b32.xlu0 %v1225_v18, %s1101_s27  ;;  %1025 = vmatpush.xpose.msk.msra.mxu2 %vm504_vm1, %v1225_v18 }
  0x9f   : > { %1026 = vmatpush.xpose.msk.msra.mxu2 %vm504_vm1, %v1230_v19 }
  0xa2   : > { %1027 = vmatmul.msk.f32.vlgmr.msra.gmra.mxu2 %vm504_vm1, %v1219_v15 }
  0xa3   : > { %605 = vrot.lane.b32.xlu0 %v1230_v19, %s1101_s27 }
  0xab   : > { %550 = vrot.lane.b32.xlu0 %v1225_v18, %s1102_s30 }
  0xb3   : > { %548 = vrot.lane.b32.xlu0 %v1230_v19, %s1102_s30 }
  0xbb   : > { %647 = vrot.lane.b32.xlu0 %v1230_v19, %s1103_s12 }
  0xc3   : > { %705 = vrot.lane.b32.xlu0 %v1225_v18, %s1104_s13 }
  0xcb   : > { %803 = vrot.lane.b32.xlu0 %v1225_v18, %s1105_s14 }
  0xd3   : > { %701 = vrot.lane.b32.xlu0 %v1219_v15, %s1104_s13 }
 0x108   : > { %v604_v22 = vpop.permute.xlu1 %603 }
 0x10d   : > { %v608_v20 = vpop.permute.xlu0 %607 }
 0x10e   : > { %1031 = vmatpush.xpose.msk.msrb.mxu0 %vm504_vm1, %v608_v20 }
 0x115   : > { %v606_v21 = vpop.permute.xlu0 %605 }
 0x116   : > { %1032 = vmatpush.xpose.msk.msrb.mxu0 %vm504_vm1, %v606_v21 }
 0x119   : > { %1033 = vmatmul.msk.f32.vlgmr.msrb.gmra.mxu0 %vm504_vm1, %v604_v22 }
 0x11d   : > { %v551_v23 = vpop.permute.xlu0 %550 }
 0x11e   : > { %1028 = vmatpush.msk.msra.mxu3 %vm556_vm2, %v551_v23 }
 0x125   : > { %v549_v25 = vpop.permute.xlu0 %548  ;;  %v531_v26 = vpop.f32.mrf.mxu2 }
 0x126   : > { %v535_v27 = vsel %vm534_vm3, -1e+10, %v531_v26  ;;  %574 = vmatpush.msra.mxu3 %v549_v25  ;;  %v495_v26 = vld [vmem:[%s1342_s7 + $0x18] sm:$0xff] }
 0x127   : > { %v537_v28 = vsel %vm536_vm4, %v535_v27, -inf }
 0x128   : > { %538 = vmax.xlane.f32.xlu1 %v537_v28  ;;  %597 = vmatpush.msrb.mxu3 %v492_v47 }
 0x12d   : > { %v648_v29 = vpop.permute.xlu0 %647 }
 0x135   : > { %v706_v30 = vpop.permute.xlu0 %705 }
 0x136   : > { %1037 = vmatpush.xpose.msk.msra.mxu0 %vm504_vm1, %v706_v30 }
 0x13d   : > { %v804_v52 = vpop.permute.xlu0 %803 }
 0x141   : > { %801 = vrot.lane.b32.xlu1 %v1230_v19, %s1105_s14 }
 0x145   : > { %v702_v55 = vpop.permute.xlu0 %701 }
 0x196   : > { %v632_v31 = vpop.f32.mrf.mxu0 }
 0x197   : > { %v635_v32 = vsel %vm534_vm3, -1e+10, %v632_v31 }
 0x198   : > { %v636_v33 = vsel %vm536_vm4, %v635_v32, -inf }
 0x199   : > { %637 = vmax.xlane.f32.xlu2 %v636_v33 }
 0x19b   : > { %v539_v34 = vpop.xlane.xlu1 %538 }
 0x19c   : > { %v540_v35 = vsub.f32 %v535_v27, %v539_v34 }
 0x19e   : > { %v541_v36 = vmul.f32 1.442695, %v540_v35 }
 0x1a0   : > { %1073 = vpow2.f32 %v541_v36 }
 0x1a6   : > { %v1074_v37 = vpop.eup %1073 }
 0x1a7   : > { %v543_v38 = vsel %vm536_vm4, %v1074_v37, 0.0 }
 0x1a8   : > { %544 = vadd.xlane.f32.xlu2 %v543_v38  ;;  %v1108_v38 = vmov 32.0  }
 0x1b3   : > { %v802_v57 = vpop.permute.xlu1 %801 }
 0x20c   : > { %v638_v39 = vpop.xlane.xlu2 %637 }
 0x20d   : > { %v639_v40 = vsub.f32 %v635_v32, %v638_v39 }
 0x20f   : > { %v640_v41 = vmul.f32 1.442695, %v639_v40 }
 0x211   : > { %1075 = vpow2.f32 %v640_v41 }
 0x217   : > { %v1076_v42 = vpop.eup %1075 }
 0x218   : > { %v642_v43 = vsel %vm536_vm4, %v1076_v42, 0.0 }
 0x219   : > { %643 = vadd.xlane.f32.xlu2 %v642_v43 }
 0x21b   : > { %v545_v44 = vpop.xlane.xlu2 %544 }
 0x21c   : > { %1077 = vrcp.f32 %v545_v44 }
 0x222   : > { %v1078_v45 = vpop.eup %1077 }
 0x223   : > { %v547_v46 = vmul.f32 %v1078_v45, %v1074_v37 }
 0x225   : > { %1029 = vmatmul.msk.f32.vlgmr.msra.gmra.mxu3 %vm536_vm4, %v547_v46 }
 0x226   : > { %695 = vmatpush.msra.mxu3 %v493_v48 }
 0x231   : > { %649 = vrot.lane.b32.xlu2 %v1225_v18, %s1103_s12 }
 0x239   : > { %703 = vrot.lane.b32.xlu2 %v1230_v19, %s1104_s13 }
 0x241   : > { %799 = vrot.lane.b32.xlu2 %v1219_v15, %s1105_s14 }
 0x28c   : > { %v644_v49 = vpop.xlane.xlu2 %643 }
 0x28d   : > { %1079 = vrcp.f32 %v644_v49 }
 0x293   : > { %v1080_v50 = vpop.eup %1079 }
 0x294   : > { %v650_v51 = vpop.permute.xlu2 %649  ;;  %v646_v53 = vmul.f32 %v1080_v50, %v1076_v42 }
 0x295   : > { %1034 = vmatpush.msk.msrb.mxu2 %vm556_vm2, %v650_v51 }
 0x297   : > { %672 = vmatpush.msrb.mxu2 %v648_v29  ;;  %v1070_v29 = vld [vmem:[%s1343_s8] ss:$0 sm:$0xff] }
 0x298   : > { %1035 = vmatmul.msk.f32.vlgmr.msrb.gmra.mxu2 %vm536_vm4, %v646_v53  ;;  %v502_v30 = vadd.f32 %v1070_v29, %v1210_v9 }
 0x29c   : > { %v704_v54 = vpop.permute.xlu2 %703 }
 0x29d   : > { %1038 = vmatpush.xpose.msk.msra.mxu0 %vm504_vm1, %v704_v54 }
 0x2a0   : > { %1039 = vmatmul.msk.f32.vlgmr.msra.gmra.mxu0 %vm504_vm1, %v702_v55 }
 0x2a4   : > { %v800_v62 = vpop.permute.xlu2 %799 }
 0x2a8   : > { %v576_v56 = vpop.f32.mrf.mxu3 }
 0x2a9   : > { %1030 = vmatmul.msk.f32.vlgmr.msrb.gmra.mxu3 %vm504_vm1, %v576_v56 }
 0x2aa   : > { %1043 = vmatpush.xpose.msk.msrb.mxu3 %vm504_vm1, %v804_v52 }
 0x2ae   : > { %1044 = vmatpush.xpose.msk.msrb.mxu3 %vm504_vm1, %v802_v57 }
 0x31b   : > { %v674_v58 = vpop.f32.mrf.mxu2 }
 0x31c   : > { %1036 = vmatmul.msk.f32.vlgmr.msra.gmra.mxu3 %vm504_vm1, %v674_v58  ;;  %v1071_v58 = vld [vmem:[%s1344_s9] ss:$0 sm:$0xff] }
 0x31d   : > { %v730_v59 = vpop.f32.mrf.mxu0 }
 0x31e   : > { %v733_v60 = vsel %vm534_vm3, -1e+10, %v730_v59 }
 0x31f   : > { %v734_v61 = vsel %vm536_vm4, %v733_v60, -inf }
 0x320   : > { %735 = vmax.xlane.f32.xlu0 %v734_v61 }
 0x324   : > { %1045 = vmatmul.msk.f32.vlgmr.msrb.gmra.mxu3 %vm504_vm1, %v800_v62 }
 0x32c   : > { %v599_v2 = vpop.f32.mrf.mxu3 }
 0x32d   : > { %v602_v31 = vadd.f32 %v599_v2, %v502_v30 }
 0x393   : > { %v736_v63 = vpop.xlane.xlu0 %735 }
 0x394   : > { %v737_v0 = vsub.f32 %v733_v60, %v736_v63  ;;  %v1072_v60 = vld [vmem:[%s1345_s10] ss:$0 sm:$0xff] }
 0x396   : > { %v738_v1 = vmul.f32 1.442695, %v737_v0 }
 0x398   : > { %1081 = vpow2.f32 %v738_v1 }
 0x39e   : > { %v1082_v3 = vpop.eup %1081 }
 0x39f   : > { %v697_v4 = vpop.f32.mrf.mxu3  ;;  %v740_v5 = vsel %vm536_vm4, %v1082_v3, 0.0 }
 0x3a0   : > { %741 = vadd.xlane.f32.xlu1 %v740_v5  ;;  %v700_v32 = vadd.f32 %v697_v4, %v602_v31 }
 0x3a7   : > { %v828_v6 = vpop.f32.mrf.mxu3 }
 0x3a8   : > { %v831_v7 = vsel %vm534_vm3, -1e+10, %v828_v6 }
 0x3a9   : > { %v832_v8 = vsel %vm536_vm4, %v831_v7, -inf }
 0x3aa   : > { %833 = vmax.xlane.f32.xlu2 %v832_v8 }
 0x3b9   : > { %845 = vrot.lane.b32.xlu1 %v1225_v18, %s1106_s25 }
 0x3c2   : > { %747 = vrot.lane.b32.xlu2 %v1225_v18, %s1107_s18 }
 0x3ca   : > { %843 = vrot.lane.b32.xlu2 %v1230_v19, %s1106_s25 }
 0x413   : > { %v742_v13 = vpop.xlane.xlu1 %741 }
 0x41d   : > { %v834_v10 = vpop.xlane.xlu2 %833 }
 0x41e   : > { %v835_v11 = vsub.f32 %v831_v7, %v834_v10 }
 0x420   : > { %v836_v12 = vmul.f32 1.442695, %v835_v11 }
 0x422   : > { %1083 = vpow2.f32 %v836_v12 }
 0x425   : > { %v748_v14 = vpop.permute.xlu2 %747 }
 0x426   : > { %1040 = vmatpush.msk.msrb.mxu1 %vm556_vm2, %v748_v14 }
 0x428   : > { %v1084_v15 = vpop.eup %1083 }
 0x429   : > { %v838_v16 = vsel %vm536_vm4, %v1084_v15, 0.0 }
 0x42a   : > { %839 = vadd.xlane.f32.xlu0 %v838_v16 }
 0x42b   : > { %v846_v17 = vpop.permute.xlu1 %845 }
 0x42c   : > { %1046 = vmatpush.msk.msrb.mxu0 %vm556_vm2, %v846_v17 }
 0x42d   : > { %v844_v20 = vpop.permute.xlu2 %843 }
 0x42e   : > { %868 = vmatpush.msrb.mxu0 %v844_v20 }
 0x43e   : > { %745 = vrot.lane.b32.xlu0 %v1230_v19, %s1107_s18  ;;  %v494_v19 = vld [vmem:[%s1342_s7 + $0x10] sm:$0xff] }
 0x43f   : > { %793 = vmatpush.msra.mxu2 %v494_v19 }
 0x49d   : > { %v840_v18 = vpop.xlane.xlu0 %839 }
 0x49e   : > { %1085 = vrcp.f32 %v840_v18 }
 0x49f   : > { %1087 = vrcp.f32 %v742_v13 }
 0x4a0   : > { %1089 = vrcp.f32 %v1108_v38 }
 0x4a4   : > { %v1086_v21 = vpop.eup %1085 }
 0x4a5   : > { %v842_v22 = vmul.f32 %v1086_v21, %v1084_v15  ;;  %v1088_v23 = vpop.eup %1087 }
 0x4a6   : > { %v744_v25 = vmul.f32 %v1088_v23, %v1082_v3  ;;  %v1090_v39 = vpop.eup %1089 }
 0x4a7   : > { %1047 = vmatmul.msk.f32.vlgmr.msrb.gmra.mxu0 %vm536_vm4, %v842_v22  ;;  %v901_v40 = vmul.f32 32.0, %v1090_v39  ;;  %vm905_vm5 = vweird.f32 %v1090_v39 }
 0x4a9   : > { %v902_v41 = vsub.f32 1.0, %v901_v40 }
 0x4ab   : > { %v903_v42 = vmul.f32 %v1090_v39, %v902_v41 }
 0x4ad   : > { %v904_v43 = vadd.f32 %v1090_v39, %v903_v42 }
 0x4af   : > { %v906_v44 = vsel %vm905_vm5, %v1090_v39, %v904_v43 }
 0x4b0   : > { %v746_v24 = vpop.permute.xlu0 %745 }
 0x4b1   : > { %770 = vmatpush.msrb.mxu1 %v746_v24 }
 0x4b2   : > { %1041 = vmatmul.msk.f32.vlgmr.msrb.gmra.mxu1 %vm536_vm4, %v744_v25 }
 0x4b3   : > { %891 = vmatpush.msra.mxu1 %v495_v26 }
 0x524   : > { %v870_v27 = vpop.f32.mrf.mxu0 }
 0x525   : > { %1048 = vmatmul.msk.f32.vlgmr.msra.gmra.mxu1 %vm504_vm1, %v870_v27 }
 0x52f   : > { %v772_v28 = vpop.f32.mrf.mxu1 }
 0x530   : > { %1042 = vmatmul.msk.f32.vlgmr.msra.gmra.mxu2 %vm504_vm1, %v772_v28 }
 0x5a2   : > { %v893_v35 = vpop.f32.mrf.mxu1 }
 0x5b3   : > { %v795_v33 = vpop.f32.mrf.mxu2 }
 0x5b4   : > { %v798_v34 = vadd.f32 %v795_v33, %v700_v32 }
 0x5b6   : > { %v896_v36 = vadd.f32 %v893_v35, %v798_v34 }
 0x5b8   : > { %v897_v37 = vsel %vm428_vm0, %v896_v36, 0.0 }
 0x5b9   : > { %898 = vadd.xlane.f32.xlu0 %v897_v37 }
 0x62c   : > { %v899_v45 = vpop.xlane.xlu0 %898 }
 0x62d   : > { %v907_v9 = vmul.f32 %v906_v44, %v899_v45 }
 0x62f   : > { %v908_v46 = vsub.f32 %v896_v36, %v907_v9 }
 0x631   : > { %v909_v47 = vmul.f32 %v908_v46, %v908_v46 }
 0x633   : > { %v910_v48 = vsel %vm428_vm0, %v909_v47, 0.0 }
 0x634   : > { %911 = vadd.xlane.f32.xlu2 %v910_v48 }
 0x6a7   : > { %v912_v49 = vpop.xlane.xlu2 %911 }
 0x6a8   : > { %v913_v50 = vmul.f32 %v912_v49, %v906_v44 }
 0x6aa   : > { %v914_v51 = vadd.f32 1e-05, %v913_v50 }
 0x6ac   : > { %1091 = vrsqrt.f32 %v914_v51  ;;  %vm921_vm7 = vweird.f32 %v914_v51 }
 0x6b2   : > { %v1092_v52 = vpop.eup %1091 }
 0x6b3   : > { %v916_v53 = vmul.f32 %v1092_v52, %v914_v51  ;;  %vm922_vm6 = vweird.f32 %v1092_v52 }
 0x6b4   : > { %vm923_vm8 = vmor %vm921_vm7, %vm922_vm6 }
 0x6b5   : > { %v917_v54 = vmul.f32 %v1092_v52, %v916_v53 }
 0x6b7   : > { %v918_v55 = vmul.f32 0.5, %v917_v54 }
 0x6b9   : > { %v919_v56 = vsub.f32 1.5, %v918_v55 }
 0x6bb   : > { %v920_v57 = vmul.f32 %v1092_v52, %v919_v56 }
 0x6bd   : > { %v924_v59 = vsel %vm923_vm8, %v1092_v52, %v920_v57 }
 0x6be   : > { %v925_v61 = vmul.f32 %v924_v59, %v908_v46 }
 0x6c0   : > { %v929_v62 = vmul.f32 %v1071_v58, %v925_v61 }
 0x6c2   : > { %v933_v63 = vadd.f32 %v1072_v60, %v929_v62 }
 0x6c4   : > { %934 = vst.msk [vmem:[%s418_s22] sm:$0xff] %vm428_vm0, %v933_v63 }
 0x6c5 PF: > { %s21_s17 = sadd.s32 1, %s1099_s17  }
 0x6c6   : > { %p18_p4 = scmp.ge.s32.totalorder %s21_s17, 4  }
 0x6c8   :  { %20 = sbr.rel (!%p18_p4) target bundleno = 1 (0x1), region = 100 }

// kernel: decoder_forward.13
= control target key start
LH: loop header
LB: loop body
LE: loop exit
PB: predicated region body
PF: predicated region fallthrough
CT: control target
= control target key end

     0   :  { %8 = vsyncpa [#allocation3], 0  ;;  %s510_s0 = inlined_call_operand.vmem [shape: f32[2,8,32], index: 0, kind: input, shape index: {}]   ;;  %s511_s1 = inlined_call_operand.vmem [shape: f32[32,128], index: 1, kind: input, shape index: {}]   ;;  %s512_s2 = inlined_call_operand.vmem [shape: f32[1,128], index: 2, kind: input, shape index: {}]   ;;  %s513_s3 = inlined_call_operand.hbm [shape: f32[2,8,128], index: 3, kind: output, shape index: {}]  }
   0x1   :  { %10 = vsyncpa [#allocation3 + $0x1], 0  ;;  %s410_s12 = smov 0   ;;  %s412_s13 = smov 0  }
   0x2   :  { %s414_s14 = smov 0   ;;  %s416_s15 = smov 0  }
   0x3 LB: > { %s431_s16 = sadd.s32 4294967295, %s388_s15   ;;  %s275_s17 = sadd.s32 4294967294, %s388_s15   ;;  %s388_s15 = sphi %s416_s15, %s519_s15   ;;  %s384_s14 = sphi %s414_s14, %s518_s14   ;;  %s380_s13 = sphi %s412_s13, %s517_s13   ;;  %s376_s12 = sphi %s410_s12, %s516_s12  }
   0x4   : > { %s435_s18 = sadd.s32 1, %s388_s15   ;;  %s91_s19 = sadd.s32 1, %s384_s14 }
   0x5   : > { %s88_s20 = ssub.s32 %s388_s15, %s435_s18  ;;  %p101_p0 = scmp.ne.s32.totalorder %s384_s14, %s380_s13 }
   0x6   : > { %p89_p1 = scmp.eq.s32.totalorder %s88_s20, 0  ;;  %p102_p2 = scmp.eq.s32.totalorder %s431_s16, 1 }
   0x7   : > { %p107_p3 = scmp.ne.s32.totalorder %s380_s13, %s376_s12  ;;  %p108_p4 = scmp.eq.s32.totalorder %s275_s17, 1 }
   0x8   : > { %s446_s21 = scalar_select %p89_p1, %s384_s14, %s91_s19  }
   0x9   : > { %p448_p5 = por %p102_p2, %p101_p0  ;;  %p452_p6 = por %p108_p4, %p107_p3 }
   0xa   : > { %p278_p7 = scmp.ge.s32.totalorder %s388_s15, 1  ;;  %p139_p8 = scmp.lt.s32.totalorder %s388_s15, 3 }
   0xc   : > { %p140_p9 = pnand %p278_p7, %p139_p8 }
   0xd   : > { %p162_p10 = scmp.lt.s32.totalorder (!%p140_p9), %s431_s16, 1  ;;  %s159_s10 = sand.u32 (!%p140_p9), 1, %s380_s13  }
   0xe   : > { %143 = sbr.rel (%p140_p9) target bundleno = 158 (0x9e), region = 32  ;;  %s279_s11 = sshll.u32 (!%p140_p9), %s159_s10, 3 }
   0xf   : > { %s283_s17 = sshll.u32 (!%p140_p9), %s431_s16, 3  ;;  %s161_s27 = scalar_lea.vmem (!%p140_p9), [#allocation2], %s279_s11 }
  0x10   : > { %s211_s24 = scalar_lea.hbm (!%p140_p9), %s513_s3, %s283_s17  ;;  %s213_s28 = sshll.u32 (!%p140_p9), %s161_s27, 4  ;;  %s214_s28 = int_to_ptr.vmem [resolvable:$true] %s213_s28 }
  0x11   : > { %s215_s29 = sshll.u32 (!%p140_p9), %s211_s24, 4  ;;  %s346_s7 = scalar_lea.hbm (!%p140_p9), %s513_s3, 16  ;;  %s216_s29 = int_to_ptr.hbm [resolvable:$true] %s215_s29 }
  0x12   : > { %s340_s4 = sshra.s32 (!%p140_p9), %s216_s29, 4  ;;  %s341_s4 = int_to_ptr.hbm [resolvable:$true] %s340_s4 }
  0x13   : > { %v170_v0 = vld [vmem:[%s511_s1 + $0x18] sm:$0xff]  ;;  %v169_v1 = vld [vmem:[%s511_s1 + $0x10] sm:$0xff]  ;;  %v168_v2 = vld [vmem:[%s511_s1 + $0x8] sm:$0xff]  ;;  %s163_s30 = scalar_select %p162_p10, %s431_s16, 1  ;;  %vm175_vm0 = vcmask 261120  }
  0x14   : > { %191 = vmatpush.msra.mxu0 %v170_v0  ;;  %v167_v3 = vld [vmem:[%s511_s1] sm:$0xff]  ;;  %s342_s16 = scalar_lea.hbm %s341_s4, 8  ;;  %p347_p0 = scmp.lt.s32.totalorder %s341_s4, %s513_s3 }
  0x15   : > { %s280_s6 = sshll.u32 %s163_s30, 3  ;;  %v325_v5 = vld [vmem:[%s512_s2] ss:$0 sm:$0xff]  ;;  %s201_s30 = scalar_lea.sflag [#allocation3], %s159_s10 }
  0x16   : > { %192 = vmatpush.msra.mxu0 %v169_v1  ;;  %s165_s9 = scalar_lea.vmem %s510_s0, %s280_s6  ;;  %p343_p11 = scmp.ne.s32.totalorder %s341_s4, %s342_s16 }
  0x17   : > { %v166_v4 = vld [vmem:[%s165_s9] sm:$0xff]  ;;  %p348_p1 = scmp.lt.s32.totalorder %s346_s7, %s342_s16 }
  0x18   : > { %193 = vmatpush.msra.mxu0 %v168_v2  ;;  %p344_p12 = pnand %p343_p11, %p448_p5 }
  0x19   : > { %p349_p2 = por %p348_p1, %p347_p0 }
  0x1a   : > { %194 = vmatpush.msra.mxu0 %v167_v3  ;;  %p345_p13 = pneg %p344_p12 }
  0x1b   : > { %281 = vmatmul.msk.f32.vlgmr.msra.gmra.mxu0 %vm175_vm0, %v166_v4 }
  0x1c   : > { %p350_p3 = pnand %p349_p2, %p345_p13 }
  0x98   : > { %v196_v6 = vpop.f32.mrf.mxu0 }
  0x99   : > { %v197_v7 = vadd.f32 %v325_v5, %v196_v6 }
  0x9b   : > { %199 = vst [vmem:[%s161_s27] sm:$0xff] %v197_v7 }
  0x9c   : > { %353 = shalt.err (!%p350_p3)
}
  0x9d   : > { %286 = dma.vmem_to_hbm [thread:$0]  (%p448_p5), %s214_s28, 128, %s216_s29, %s201_s30  }
  0x9e PF: > { %p292_p4 = scmp.ge.s32.totalorder %s388_s15, 2  ;;  %s227_s10 = sand.u32 1, %s376_s12  }
  0x9f   : > { %s228_s11 = scalar_lea.sflag [#allocation3], %s227_s10 }
  0xa0   : > { %p289_p7 = pnand %p292_p4, %p452_p6 }
  0xa2   : > { %p290_p8 = pneg %p289_p7 }
  0xa4   : > { %371 = dma.done.wait (%p290_p8), %s228_s11, 128  }
  0xa5   : > { %373 = vsyncadd (%p290_p8), %s228_s11, 4294967168  ;;  %p13_p9 = scmp.ge.s32.totalorder %s435_s18, 4   ;;  %s516_s12 = smov %s380_s13 }
  0xa6   : > { %s517_s13 = smov %s384_s14  ;;  %s518_s14 = smov %s446_s21 }
  0xa7   : > { %s519_s15 = smov %s435_s18  ;;  %15 = sbr.rel (!%p13_p9) target bundleno = 3 (0x3), region = 67 }
  0xac   :  { %234 = vsyncpa [#allocation3], 1 }
  0xad   :  { %236 = vsyncpa [#allocation3 + $0x1], 1 }

</bundles_post_ra>
